<compile_context>
chip_gen: v7x
topology: tpu7x:2x2x1
jax: 0.10.0
libtpu: 0.0.40
codegen_flags: <defaults>
</compile_context>

<pallas_src>
import jax
import jax.numpy as jnp
from jax.experimental import pallas as pl
from jax.experimental.pallas import tpu as pltpu

LANE = 128  # TPU lane width; channel dims are zero-padded to multiples of this.


def _round_up(v, m):
    return (v + m - 1) // m * m


def _vmem_budgets():
    """Generation-aware (scratch-band budget, scoped VMEM limit) in bytes."""
    try:
        cap = pltpu.get_tpu_info().vmem_capacity_bytes  # 128 MiB v5e/v6e, 64 MiB v7x
    except Exception:
        cap = 128 << 20
    return cap // 16, min(cap // 2, 64 << 20)


def _pick_tile_rows(N, H, W, Hd, band_budget_bytes):
    """Largest row tile TH dividing H whose (TH+2, W, Hd) f32 band fits the
    budget.  Rows are only force-split (>= 2 tiles) when the batch axis alone
    cannot feed both v7x TensorCores (N == 1)."""
    # TODO(synk): for prime H switch to cdiv + a masked last tile instead of TH=1.
    cap = H if (N >= 2 or H <= 8) else max(1, H // 2)
    best = 1
    for th in range(1, cap + 1):
        if H % th == 0 and (th + 2) * W * Hd * 4 <= band_budget_bytes:
            best = th
    return best


# ----------------------------------------------------------------------------
# Fused kernel.  Grid: (N, H // TH); each step produces TH output rows of one
# image.  Refs:
#   x_ref   : (1, H+2, W, Cp)  full row-padded image (VMEM-resident across the
#                              row tiles of one image)
#   w1_ref  : (Cp, Hd) bf16    s1/b1: (1, Hd) f32    pw-expand + folded BN
#   wdw_ref : (9, Hd)  f32     s2/b2: (1, Hd) f32    depthwise 3x3 + folded BN
#   w2_ref  : (Hd, Cop) bf16   s3/b3: (1, Cop) f32   pw-project + folded BN
#   o_ref   : (1, TH, W, Cop)  output row band
#   h_ref   : VMEM (TH+2, W, Hd) f32 scratch — expanded activations + halo rows
# ----------------------------------------------------------------------------
def _fused_mv2_kernel(x_ref, w1_ref, s1_ref, b1_ref, wdw_ref, s2_ref, b2_ref,
                      w2_ref, s3_ref, b3_ref, o_ref, h_ref):
    _, TH, W, Cop = o_ref.shape
    Hd = w1_ref.shape[1]
    Cp = x_ref.shape[-1]
    t = pl.program_id(1)
    nT = pl.num_programs(1)
    row0 = pl.multiple_of(t * TH, TH)
    m = TH * W

    def silu(y):  # y * sigmoid(y); the divide stays on the EUP slot
        return y * pl.reciprocal(1.0 + jnp.exp(-y), approx=True)

    # --- 1) pw-expand 1x1 + BN + SiLU for the whole (TH+2)-row halo band in
    #        ONE matmul (x is row-padded, so the band load is always in range).
    xb = x_ref[0, pl.ds(row0, TH + 2), :, :]                  # (TH+2, W, Cp) f32
    y1 = jnp.dot(xb.reshape((TH + 2) * W, Cp).astype(jnp.bfloat16),
                 w1_ref[...], preferred_element_type=jnp.float32)
    y1 = y1 * s1_ref[...] + b1_ref[...]
    h_ref[...] = silu(y1).reshape(TH + 2, W, Hd)

    # --- 2) zero ONLY the out-of-image halo rows (vertical part of the
    #        depthwise zero-padding ring); no full-scratch zeroing.
    @pl.when(t == 0)
    def _():
        h_ref[0, :, :] = jnp.zeros((W, Hd), jnp.float32)

    @pl.when(t == nT - 1)
    def _():
        h_ref[TH + 1, :, :] = jnp.zeros((W, Hd), jnp.float32)

    # --- 3) depthwise 3x3 + BN + SiLU.  All scratch loads are sublane-aligned
    #        (no horizontal padding columns); the +/-1 column taps are realised
    #        with pltpu.roll (XLU) on the flattened row-major axis, masking the
    #        wrapped column at the image's left/right borders.
    wdw = wdw_ref[...]
    htop = h_ref[0:TH, :, :].reshape(m, Hd)
    hmid = h_ref[1:TH + 1, :, :].reshape(m, Hd)
    hbot = h_ref[2:TH + 2, :, :].reshape(m, Hd)
    center = htop * wdw[1] + hmid * wdw[4] + hbot * wdw[7]
    pre_l = htop * wdw[0] + hmid * wdw[3] + hbot * wdw[6]     # needs column w-1
    pre_r = htop * wdw[2] + hmid * wdw[5] + hbot * wdw[8]     # needs column w+1
    col = jax.lax.broadcasted_iota(jnp.int32, (TH, W, Hd), 1).reshape(m, Hd)
    acc = center
    acc = acc + jnp.where(col > 0, pltpu.roll(pre_l, shift=1, axis=0), 0.0)
    acc = acc + jnp.where(col < W - 1, pltpu.roll(pre_r, shift=m - 1, axis=0), 0.0)
    y2 = acc * s2_ref[...] + b2_ref[...]
    a2 = silu(y2)

    # --- 4) pw-project 1x1 + BN + residual (Cp == Cop on this stride-1 branch).
    y3 = jnp.dot(a2.astype(jnp.bfloat16), w2_ref[...],
                 preferred_element_type=jnp.float32)
    y3 = y3 * s3_ref[...] + b3_ref[...]
    y3 = y3 + xb[1:TH + 1, :, :].reshape(m, Cop)
    o_ref[0] = y3.reshape(TH, W, Cop)


# ----------------------------------------------------------------------------
# Parameter construction (deterministic, synthetic) + BN folding + lane padding
# ----------------------------------------------------------------------------
def _fold_bn(gamma, beta, mean, var, eps=1e-5):
    scale = gamma / jnp.sqrt(var + eps)
    bias = beta - mean * scale
    return scale.reshape(1, -1), bias.reshape(1, -1)


def make_params(key, in_channels, out_channels, expansion_factor=4):
    hidden = int(in_channels * expansion_factor)
    ks = jax.random.split(key, 12)

    def bn(kg, kb, km, kv, c):
        gamma = 1.0 + 0.1 * jax.random.normal(kg, (c,), jnp.float32)
        beta = 0.1 * jax.random.normal(kb, (c,), jnp.float32)
        mean = 0.05 * jax.random.normal(km, (c,), jnp.float32)
        var = 1.0 + 0.1 * jax.random.uniform(kv, (c,), jnp.float32)
        return _fold_bn(gamma, beta, mean, var)

    # pw expand: torch weight (hidden, Cin, 1, 1) -> matrix (Cin, hidden)
    w1 = 0.2 * jax.random.normal(ks[0], (in_channels, hidden), jnp.float32)
    s1, b1 = bn(ks[1], ks[2], ks[3], ks[4], hidden)
    # depthwise: torch weight (hidden, 1, 3, 3) -> (9, hidden)
    wdw = 0.2 * jax.random.normal(ks[5], (9, hidden), jnp.float32)
    s2, b2 = bn(ks[6], ks[7], ks[8], ks[9], hidden)
    # pw project: torch weight (Cout, hidden, 1, 1) -> matrix (hidden, Cout)
    w2 = 0.2 * jax.random.normal(ks[10], (hidden, out_channels), jnp.float32)
    kg, kb, km, kv = jax.random.split(ks[11], 4)
    s3, b3 = bn(kg, kb, km, kv, out_channels)
    return dict(w1=w1, s1=s1, b1=b1, wdw=wdw, s2=s2, b2=b2, w2=w2, s3=s3, b3=b3)


def pad_params(p):
    """Zero-pad channel dims to LANE multiples once (padded channels stay
    exactly zero end-to-end) and pre-cast the MXU-operand weights to bf16."""
    Cin, hidden = p["w1"].shape
    Cout = p["w2"].shape[1]
    Cp, Hd, Cop = (_round_up(Cin, LANE), _round_up(hidden, LANE),
                   _round_up(Cout, LANE))

    def pad2(a, r, c):
        return jnp.pad(a, ((0, r - a.shape[0]), (0, c - a.shape[1])))

    return dict(
        w1=pad2(p["w1"], Cp, Hd).astype(jnp.bfloat16),
        s1=pad2(p["s1"], 1, Hd), b1=pad2(p["b1"], 1, Hd),
        wdw=pad2(p["wdw"], 9, Hd),                 # depthwise stays f32 (VPU path)
        s2=pad2(p["s2"], 1, Hd), b2=pad2(p["b2"], 1, Hd),
        w2=pad2(p["w2"], Hd, Cop).astype(jnp.bfloat16),
        s3=pad2(p["s3"], 1, Cop), b3=pad2(p["b3"], 1, Cop))


# ----------------------------------------------------------------------------
# Forward wrapper
# ----------------------------------------------------------------------------
# TODO(synk): stride=2 (non-residual) path not wired; this instance uses
# stride=1 with in_channels == out_channels (residual branch active).
@jax.jit
def inverted_residual(x_nchw, pp):
    N, Cin, H, W = x_nchw.shape
    Cp, Hd = pp["w1"].shape
    Cop = pp["w2"].shape[1]
    assert W % 8 == 0, "W must be a multiple of 8 (sublane) for in-kernel reshapes"
    assert Cp == Cop, "stride=1 residual branch requires in_channels == out_channels"

    band_budget, vmem_limit = _vmem_budgets()
    TH = _pick_tile_rows(N, H, W, Hd, band_budget)
    T = H // TH

    # Layout glue: NCHW -> NHWC once; zero-pad channels to the lane width and
    # rows by 1 top/bottom so every tile's halo-band load is in range.
    # TODO(synk): at Cin=4 the 128-lane channel pad amplifies x/out HBM traffic;
    # pack (W, C) jointly into lanes if a profile shows the op HBM-bound.
    x = jnp.transpose(x_nchw, (0, 2, 3, 1)).astype(jnp.float32)
    x = jnp.pad(x, ((0, 0), (1, 1), (0, 0), (0, Cp - Cin)))

    out = pl.pallas_call(
        _fused_mv2_kernel,
        grid=(N, T),
        out_shape=jax.ShapeDtypeStruct((N, H, W, Cop), jnp.float32),
        in_specs=[
            # Full (row-padded) image; block index depends only on n, so it
            # stays VMEM-resident across the row tiles of one image.
            # TODO(synk): for very large H*W, switch to a banded x BlockSpec +
            # manual halo DMA and pl.Buffered(1) on the constant-index inputs.
            pl.BlockSpec((1, H + 2, W, Cp), lambda n, t: (n, 0, 0, 0)),
            pl.BlockSpec((Cp, Hd), lambda n, t: (0, 0)),
            pl.BlockSpec((1, Hd), lambda n, t: (0, 0)),
            pl.BlockSpec((1, Hd), lambda n, t: (0, 0)),
            pl.BlockSpec((9, Hd), lambda n, t: (0, 0)),
            pl.BlockSpec((1, Hd), lambda n, t: (0, 0)),
            pl.BlockSpec((1, Hd), lambda n, t: (0, 0)),
            pl.BlockSpec((Hd, Cop), lambda n, t: (0, 0)),
            pl.BlockSpec((1, Cop), lambda n, t: (0, 0)),
            pl.BlockSpec((1, Cop), lambda n, t: (0, 0)),
        ],
        out_specs=pl.BlockSpec((1, TH, W, Cop), lambda n, t: (n, t, 0, 0)),
        scratch_shapes=[pltpu.VMEM((TH + 2, W, Hd), jnp.float32)],
        compiler_params=pltpu.CompilerParams(
            # N axis alone feeds both v7x TensorCores when N >= 2; only make the
            # row axis parallel when it is the sole source of parallelism.
            dimension_semantics=(("parallel", "arbitrary") if N >= 2
                                 else ("parallel", "parallel")),
            vmem_limit_bytes=int(vmem_limit)),
    )(x, pp["w1"], pp["s1"], pp["b1"], pp["wdw"], pp["s2"], pp["b2"],
      pp["w2"], pp["s3"], pp["b3"])

    # Drop channel padding, NHWC -> NCHW.
    return jnp.transpose(out[..., :Cin], (0, 3, 1, 2))


# ----------------------------------------------------------------------------
# Pure-JAX reference (natural, unpadded shapes).  matmul_dtype lets us build a
# bf16-operand twin of the kernel's numerics for a tight check.
# ----------------------------------------------------------------------------
def _reference(x_nchw, params, matmul_dtype=jnp.float32):
    N, Cin, H, W = x_nchw.shape
    hidden = params["w1"].shape[1]
    x = jnp.transpose(x_nchw, (0, 2, 3, 1)).astype(jnp.float32)
    h = jnp.dot(x.reshape(-1, Cin).astype(matmul_dtype),
                params["w1"].astype(matmul_dtype),
                preferred_element_type=jnp.float32)
    h = h * params["s1"] + params["b1"]
    h = h * jax.nn.sigmoid(h)
    h = h.reshape(N, H, W, hidden)
    hp = jnp.pad(h, ((0, 0), (1, 1), (1, 1), (0, 0)))
    acc = jnp.zeros_like(h)
    for dh in range(3):
        for dw in range(3):
            acc = acc + hp[:, dh:dh + H, dw:dw + W, :] * params["wdw"][dh * 3 + dw]
    y = acc * params["s2"] + params["b2"]
    y = y * jax.nn.sigmoid(y)
    o = jnp.dot(y.reshape(-1, hidden).astype(matmul_dtype),
                params["w2"].astype(matmul_dtype),
                preferred_element_type=jnp.float32)
    o = o * params["s3"] + params["b3"]
    o = o + x.reshape(-1, Cin)
    return jnp.transpose(o.reshape(N, H, W, -1), (0, 3, 1, 2))


if __name__ == "__main__":
    key = jax.random.PRNGKey(0)
    kx, kp = jax.random.split(key)

    N, C, H, W = 2, 4, 16, 16          # in_channels == out_channels, stride=1
    x = jax.random.normal(kx, (N, C, H, W), jnp.float32)
    params = make_params(kp, in_channels=C, out_channels=C, expansion_factor=4)
    pparams = pad_params(params)       # lane-pad + bf16-cast once, outside hot path

    out = jax.block_until_ready(inverted_residual(x, pparams))
    assert out.shape == (N, C, H, W)

    # Tight check vs a reference with the same bf16 matmul operands, plus a
    # loosened check vs the pure-f32 spec (bf16 MXU inputs + approx reciprocal).
    ref_bf16 = _reference(x, params, matmul_dtype=jnp.bfloat16)
    ref_f32 = _reference(x, params)
    assert jnp.allclose(out, ref_bf16, atol=1e-2, rtol=1e-2), "mismatch vs bf16-op reference"
    assert jnp.allclose(out, ref_f32, atol=5e-2, rtol=5e-2), "mismatch vs f32 reference"

    print("KERNEL_OK")
</pallas_src>

<mosaic_0001>
module attributes {stable_mosaic.version = 11 : i64} {
  func.func @_fused_mv2_kernel(%arg0: i32, %arg1: i32, %arg2: memref<1x18x16x128xf32, #tpu.memory_space<vmem>>, %arg3: memref<128x128xbf16, #tpu.memory_space<vmem>>, %arg4: memref<1x128xf32, #tpu.memory_space<vmem>>, %arg5: memref<1x128xf32, #tpu.memory_space<vmem>>, %arg6: memref<9x128xf32, #tpu.memory_space<vmem>>, %arg7: memref<1x128xf32, #tpu.memory_space<vmem>>, %arg8: memref<1x128xf32, #tpu.memory_space<vmem>>, %arg9: memref<128x128xbf16, #tpu.memory_space<vmem>>, %arg10: memref<1x128xf32, #tpu.memory_space<vmem>>, %arg11: memref<1x128xf32, #tpu.memory_space<vmem>>, %arg12: memref<1x16x16x128xf32, #tpu.memory_space<vmem>>, %arg13: memref<18x16x128xf32, #tpu.memory_space<vmem>>) attributes {dimension_semantics = [#tpu.dimension_semantics<parallel>, #tpu.dimension_semantics<arbitrary>], iteration_bounds = array<i64: 2, 1>, scalar_prefetch = 0 : i64, scratch_operands = 1 : i64, tpu.core_type = #tpu.core_type<tc>, window_params = [{transform_indices = @transform_0, window_bounds = array<i64: 1, 18, 16, 128>}, {pipeline_mode = #tpu.pipeline_mode<synchronous>, transform_indices = @transform_1, window_bounds = array<i64: 128, 128>}, {pipeline_mode = #tpu.pipeline_mode<synchronous>, transform_indices = @transform_2, window_bounds = array<i64: 1, 128>}, {pipeline_mode = #tpu.pipeline_mode<synchronous>, transform_indices = @transform_3, window_bounds = array<i64: 1, 128>}, {pipeline_mode = #tpu.pipeline_mode<synchronous>, transform_indices = @transform_4, window_bounds = array<i64: 9, 128>}, {pipeline_mode = #tpu.pipeline_mode<synchronous>, transform_indices = @transform_5, window_bounds = array<i64: 1, 128>}, {pipeline_mode = #tpu.pipeline_mode<synchronous>, transform_indices = @transform_6, window_bounds = array<i64: 1, 128>}, {pipeline_mode = #tpu.pipeline_mode<synchronous>, transform_indices = @transform_7, window_bounds = array<i64: 128, 128>}, {pipeline_mode = #tpu.pipeline_mode<synchronous>, transform_indices = @transform_8, window_bounds = array<i64: 1, 128>}, {pipeline_mode = #tpu.pipeline_mode<synchronous>, transform_indices = @transform_9, window_bounds = array<i64: 1, 128>}, {transform_indices = @transform_10, window_bounds = array<i64: 1, 16, 16, 128>}]} {
    %c16_i32 = arith.constant 16 : i32
    %0 = arith.muli %arg1, %c16_i32 : i32
    %1 = tpu.assume_multiple %0, 16 : i32
    %c0 = arith.constant 0 : index
    %2 = arith.index_cast %1 : i32 to index
    %c0_0 = arith.constant 0 : index
    %c0_1 = arith.constant 0 : index
    %3 = vector.load %arg2[%c0, %2, %c0_0, %c0_1] : memref<1x18x16x128xf32, #tpu.memory_space<vmem>>, vector<1x18x16x128xf32>
    %4 = vector.shape_cast %3 : vector<1x18x16x128xf32> to vector<18x16x128xf32>
    %5 = vector.shape_cast %4 : vector<18x16x128xf32> to vector<288x128xf32>
    %6 = arith.truncf %5 : vector<288x128xf32> to vector<288x128xbf16>
    %c0_2 = arith.constant 0 : index
    %c0_3 = arith.constant 0 : index
    %7 = vector.load %arg3[%c0_2, %c0_3] : memref<128x128xbf16, #tpu.memory_space<vmem>>, vector<128x128xbf16>
    %cst = arith.constant dense<0.000000e+00> : vector<288x128xf32>
    %8 = tpu.matmul %6, %7, %cst {dimension_numbers = #tpu.dot_dimension_numbers<[1], [0], [0], [1], [0, 0, 1, 1], [], []>} : vector<288x128xbf16>, vector<128x128xbf16>, vector<288x128xf32> -> vector<288x128xf32>
    %c0_4 = arith.constant 0 : index
    %c0_5 = arith.constant 0 : index
    %9 = vector.load %arg4[%c0_4, %c0_5] : memref<1x128xf32, #tpu.memory_space<vmem>>, vector<1x128xf32>
    %10 = vector.broadcast %9 : vector<1x128xf32> to vector<288x128xf32>
    %11 = arith.mulf %8, %10 : vector<288x128xf32>
    %c0_6 = arith.constant 0 : index
    %c0_7 = arith.constant 0 : index
    %12 = vector.load %arg5[%c0_6, %c0_7] : memref<1x128xf32, #tpu.memory_space<vmem>>, vector<1x128xf32>
    %13 = vector.broadcast %12 : vector<1x128xf32> to vector<288x128xf32>
    %14 = arith.addf %11, %13 : vector<288x128xf32>
    %cst_8 = arith.constant 0.000000e+00 : f32
    %15 = vector.broadcast %cst_8 : f32 to vector<288x128xf32>
    %16 = arith.subf %15, %14 : vector<288x128xf32>
    %17 = math.exp %16 : vector<288x128xf32>
    %cst_9 = arith.constant 1.000000e+00 : f32
    %18 = vector.broadcast %cst_9 : f32 to vector<288x128xf32>
    %19 = arith.addf %18, %17 : vector<288x128xf32>
    %20 = tpu.reciprocal %19 {approx = true} : vector<288x128xf32> -> vector<288x128xf32>
    %21 = arith.mulf %14, %20 : vector<288x128xf32>
    %22 = vector.shape_cast %21 : vector<288x128xf32> to vector<18x16x128xf32>
    %c0_10 = arith.constant 0 : index
    %c0_11 = arith.constant 0 : index
    %c0_12 = arith.constant 0 : index
    %23 = vector.load %arg13[%c0_10, %c0_11, %c0_12] : memref<18x16x128xf32, #tpu.memory_space<vmem>>, vector<18x16x128xf32>
    tpu.vector_store %arg13[%c0_10, %c0_11, %c0_12], %22 {strides = array<i32>} : memref<18x16x128xf32, #tpu.memory_space<vmem>>, vector<18x16x128xf32>,
    %c0_i32 = arith.constant 0 : i32
    %24 = arith.cmpi eq, %arg1, %c0_i32 : i32
    %25 = arith.extui %24 : i1 to i32
    %c0_i32_13 = arith.constant 0 : i32
    %26 = arith.cmpi ne, %25, %c0_i32_13 : i32
    scf.if %26 {
      %cst_45 = arith.constant 0.000000e+00 : f32
      %131 = vector.broadcast %cst_45 : f32 to vector<16x128xf32>
      %c0_46 = arith.constant 0 : index
      %c0_47 = arith.constant 0 : index
      %c0_48 = arith.constant 0 : index
      %132 = vector.load %arg13[%c0_46, %c0_47, %c0_48] : memref<18x16x128xf32, #tpu.memory_space<vmem>>, vector<1x16x128xf32>
      %133 = vector.shape_cast %132 : vector<1x16x128xf32> to vector<16x128xf32>
      %134 = vector.shape_cast %131 : vector<16x128xf32> to vector<1x16x128xf32>
      tpu.vector_store %arg13[%c0_46, %c0_47, %c0_48], %134 {strides = array<i32>} : memref<18x16x128xf32, #tpu.memory_space<vmem>>, vector<1x16x128xf32>,
    } else {
    }
    %c0_i32_14 = arith.constant 0 : i32
    %27 = arith.cmpi eq, %arg1, %c0_i32_14 : i32
    %28 = arith.extui %27 : i1 to i32
    %c0_i32_15 = arith.constant 0 : i32
    %29 = arith.cmpi ne, %28, %c0_i32_15 : i32
    scf.if %29 {
      %cst_45 = arith.constant 0.000000e+00 : f32
      %131 = vector.broadcast %cst_45 : f32 to vector<16x128xf32>
      %c17 = arith.constant 17 : index
      %c0_46 = arith.constant 0 : index
      %c0_47 = arith.constant 0 : index
      %132 = vector.load %arg13[%c17, %c0_46, %c0_47] : memref<18x16x128xf32, #tpu.memory_space<vmem>>, vector<1x16x128xf32>
      %133 = vector.shape_cast %132 : vector<1x16x128xf32> to vector<16x128xf32>
      %134 = vector.shape_cast %131 : vector<16x128xf32> to vector<1x16x128xf32>
      tpu.vector_store %arg13[%c17, %c0_46, %c0_47], %134 {strides = array<i32>} : memref<18x16x128xf32, #tpu.memory_space<vmem>>, vector<1x16x128xf32>,
    } else {
    }
    %c0_16 = arith.constant 0 : index
    %c0_17 = arith.constant 0 : index
    %30 = vector.load %arg6[%c0_16, %c0_17] : memref<9x128xf32, #tpu.memory_space<vmem>>, vector<9x128xf32>
    %c0_18 = arith.constant 0 : index
    %c0_19 = arith.constant 0 : index
    %c0_20 = arith.constant 0 : index
    %31 = vector.load %arg13[%c0_18, %c0_19, %c0_20] : memref<18x16x128xf32, #tpu.memory_space<vmem>>, vector<16x16x128xf32>
    %32 = vector.shape_cast %31 : vector<16x16x128xf32> to vector<256x128xf32>
    %c1 = arith.constant 1 : index
    %c0_21 = arith.constant 0 : index
    %c0_22 = arith.constant 0 : index
    %33 = vector.load %arg13[%c1, %c0_21, %c0_22] : memref<18x16x128xf32, #tpu.memory_space<vmem>>, vector<16x16x128xf32>
    %34 = vector.shape_cast %33 : vector<16x16x128xf32> to vector<256x128xf32>
    %c2 = arith.constant 2 : index
    %c0_23 = arith.constant 0 : index
    %c0_24 = arith.constant 0 : index
    %35 = vector.load %arg13[%c2, %c0_23, %c0_24] : memref<18x16x128xf32, #tpu.memory_space<vmem>>, vector<16x16x128xf32>
    %36 = vector.shape_cast %35 : vector<16x16x128xf32> to vector<256x128xf32>
    %37 = vector.extract_strided_slice %30 {offsets = [1, 0], sizes = [1, 128], strides = [1, 1]} : vector<9x128xf32> to vector<1x128xf32>
    %38 = vector.shape_cast %37 : vector<1x128xf32> to vector<128xf32>
    %39 = vector.shape_cast %38 : vector<128xf32> to vector<1x128xf32>
    %40 = vector.broadcast %39 : vector<1x128xf32> to vector<256x128xf32>
    %41 = arith.mulf %32, %40 : vector<256x128xf32>
    %42 = vector.extract_strided_slice %30 {offsets = [4, 0], sizes = [1, 128], strides = [1, 1]} : vector<9x128xf32> to vector<1x128xf32>
    %43 = vector.shape_cast %42 : vector<1x128xf32> to vector<128xf32>
    %44 = vector.shape_cast %43 : vector<128xf32> to vector<1x128xf32>
    %45 = vector.broadcast %44 : vector<1x128xf32> to vector<256x128xf32>
    %46 = arith.mulf %34, %45 : vector<256x128xf32>
    %47 = arith.addf %41, %46 : vector<256x128xf32>
    %48 = vector.extract_strided_slice %30 {offsets = [7, 0], sizes = [1, 128], strides = [1, 1]} : vector<9x128xf32> to vector<1x128xf32>
    %49 = vector.shape_cast %48 : vector<1x128xf32> to vector<128xf32>
    %50 = vector.shape_cast %49 : vector<128xf32> to vector<1x128xf32>
    %51 = vector.broadcast %50 : vector<1x128xf32> to vector<256x128xf32>
    %52 = arith.mulf %36, %51 : vector<256x128xf32>
    %53 = arith.addf %47, %52 : vector<256x128xf32>
    %54 = vector.extract_strided_slice %30 {offsets = [0, 0], sizes = [1, 128], strides = [1, 1]} : vector<9x128xf32> to vector<1x128xf32>
    %55 = vector.shape_cast %54 : vector<1x128xf32> to vector<128xf32>
    %56 = vector.shape_cast %55 : vector<128xf32> to vector<1x128xf32>
    %57 = vector.broadcast %56 : vector<1x128xf32> to vector<256x128xf32>
    %58 = arith.mulf %32, %57 : vector<256x128xf32>
    %59 = vector.extract_strided_slice %30 {offsets = [3, 0], sizes = [1, 128], strides = [1, 1]} : vector<9x128xf32> to vector<1x128xf32>
    %60 = vector.shape_cast %59 : vector<1x128xf32> to vector<128xf32>
    %61 = vector.shape_cast %60 : vector<128xf32> to vector<1x128xf32>
    %62 = vector.broadcast %61 : vector<1x128xf32> to vector<256x128xf32>
    %63 = arith.mulf %34, %62 : vector<256x128xf32>
    %64 = arith.addf %58, %63 : vector<256x128xf32>
    %65 = vector.extract_strided_slice %30 {offsets = [6, 0], sizes = [1, 128], strides = [1, 1]} : vector<9x128xf32> to vector<1x128xf32>
    %66 = vector.shape_cast %65 : vector<1x128xf32> to vector<128xf32>
    %67 = vector.shape_cast %66 : vector<128xf32> to vector<1x128xf32>
    %68 = vector.broadcast %67 : vector<1x128xf32> to vector<256x128xf32>
    %69 = arith.mulf %36, %68 : vector<256x128xf32>
    %70 = arith.addf %64, %69 : vector<256x128xf32>
    %71 = vector.extract_strided_slice %30 {offsets = [2, 0], sizes = [1, 128], strides = [1, 1]} : vector<9x128xf32> to vector<1x128xf32>
    %72 = vector.shape_cast %71 : vector<1x128xf32> to vector<128xf32>
    %73 = vector.shape_cast %72 : vector<128xf32> to vector<1x128xf32>
    %74 = vector.broadcast %73 : vector<1x128xf32> to vector<256x128xf32>
    %75 = arith.mulf %32, %74 : vector<256x128xf32>
    %76 = vector.extract_strided_slice %30 {offsets = [5, 0], sizes = [1, 128], strides = [1, 1]} : vector<9x128xf32> to vector<1x128xf32>
    %77 = vector.shape_cast %76 : vector<1x128xf32> to vector<128xf32>
    %78 = vector.shape_cast %77 : vector<128xf32> to vector<1x128xf32>
    %79 = vector.broadcast %78 : vector<1x128xf32> to vector<256x128xf32>
    %80 = arith.mulf %34, %79 : vector<256x128xf32>
    %81 = arith.addf %75, %80 : vector<256x128xf32>
    %82 = vector.extract_strided_slice %30 {offsets = [8, 0], sizes = [1, 128], strides = [1, 1]} : vector<9x128xf32> to vector<1x128xf32>
    %83 = vector.shape_cast %82 : vector<1x128xf32> to vector<128xf32>
    %84 = vector.shape_cast %83 : vector<128xf32> to vector<1x128xf32>
    %85 = vector.broadcast %84 : vector<1x128xf32> to vector<256x128xf32>
    %86 = arith.mulf %36, %85 : vector<256x128xf32>
    %87 = arith.addf %81, %86 : vector<256x128xf32>
    %88 = tpu.iota {dimensions = array<i32: 1>} : vector<16x16x128xi32>
    %89 = vector.shape_cast %88 : vector<16x16x128xi32> to vector<256x128xi32>
    %c0_i32_25 = arith.constant 0 : i32
    %90 = vector.broadcast %c0_i32_25 : i32 to vector<256x128xi32>
    %91 = arith.cmpi sgt, %89, %90 : vector<256x128xi32>
    %c1_i32 = arith.constant 1 : i32
    %92 = tpu.dynamic_rotate %70 by %c1_i32 dim 0 : vector<256x128xf32>, i32 -> vector<256x128xf32>
    %cst_26 = arith.constant 0.000000e+00 : f32
    %93 = vector.broadcast %cst_26 : f32 to vector<256x128xf32>
    %94 = arith.select %91, %92, %93 : vector<256x128xi1>, vector<256x128xf32>
    %95 = arith.addf %53, %94 : vector<256x128xf32>
    %c15_i32 = arith.constant 15 : i32
    %96 = vector.broadcast %c15_i32 : i32 to vector<256x128xi32>
    %97 = arith.cmpi slt, %89, %96 : vector<256x128xi32>
    %c255_i32 = arith.constant 255 : i32
    %98 = tpu.dynamic_rotate %87 by %c255_i32 dim 0 : vector<256x128xf32>, i32 -> vector<256x128xf32>
    %cst_27 = arith.constant 0.000000e+00 : f32
    %99 = vector.broadcast %cst_27 : f32 to vector<256x128xf32>
    %100 = arith.select %97, %98, %99 : vector<256x128xi1>, vector<256x128xf32>
    %101 = arith.addf %95, %100 : vector<256x128xf32>
    %c0_28 = arith.constant 0 : index
    %c0_29 = arith.constant 0 : index
    %102 = vector.load %arg7[%c0_28, %c0_29] : memref<1x128xf32, #tpu.memory_space<vmem>>, vector<1x128xf32>
    %103 = vector.broadcast %102 : vector<1x128xf32> to vector<256x128xf32>
    %104 = arith.mulf %101, %103 : vector<256x128xf32>
    %c0_30 = arith.constant 0 : index
    %c0_31 = arith.constant 0 : index
    %105 = vector.load %arg8[%c0_30, %c0_31] : memref<1x128xf32, #tpu.memory_space<vmem>>, vector<1x128xf32>
    %106 = vector.broadcast %105 : vector<1x128xf32> to vector<256x128xf32>
    %107 = arith.addf %104, %106 : vector<256x128xf32>
    %cst_32 = arith.constant 0.000000e+00 : f32
    %108 = vector.broadcast %cst_32 : f32 to vector<256x128xf32>
    %109 = arith.subf %108, %107 : vector<256x128xf32>
    %110 = math.exp %109 : vector<256x128xf32>
    %cst_33 = arith.constant 1.000000e+00 : f32
    %111 = vector.broadcast %cst_33 : f32 to vector<256x128xf32>
    %112 = arith.addf %111, %110 : vector<256x128xf32>
    %113 = tpu.reciprocal %112 {approx = true} : vector<256x128xf32> -> vector<256x128xf32>
    %114 = arith.mulf %107, %113 : vector<256x128xf32>
    %115 = arith.truncf %114 : vector<256x128xf32> to vector<256x128xbf16>
    %c0_34 = arith.constant 0 : index
    %c0_35 = arith.constant 0 : index
    %116 = vector.load %arg9[%c0_34, %c0_35] : memref<128x128xbf16, #tpu.memory_space<vmem>>, vector<128x128xbf16>
    %cst_36 = arith.constant dense<0.000000e+00> : vector<256x128xf32>
    %117 = tpu.matmul %115, %116, %cst_36 {dimension_numbers = #tpu.dot_dimension_numbers<[1], [0], [0], [1], [0, 0, 1, 1], [], []>} : vector<256x128xbf16>, vector<128x128xbf16>, vector<256x128xf32> -> vector<256x128xf32>
    %c0_37 = arith.constant 0 : index
    %c0_38 = arith.constant 0 : index
    %118 = vector.load %arg10[%c0_37, %c0_38] : memref<1x128xf32, #tpu.memory_space<vmem>>, vector<1x128xf32>
    %119 = vector.broadcast %118 : vector<1x128xf32> to vector<256x128xf32>
    %120 = arith.mulf %117, %119 : vector<256x128xf32>
    %c0_39 = arith.constant 0 : index
    %c0_40 = arith.constant 0 : index
    %121 = vector.load %arg11[%c0_39, %c0_40] : memref<1x128xf32, #tpu.memory_space<vmem>>, vector<1x128xf32>
    %122 = vector.broadcast %121 : vector<1x128xf32> to vector<256x128xf32>
    %123 = arith.addf %120, %122 : vector<256x128xf32>
    %124 = vector.extract_strided_slice %4 {offsets = [1, 0, 0], sizes = [16, 16, 128], strides = [1, 1, 1]} : vector<18x16x128xf32> to vector<16x16x128xf32>
    %125 = vector.shape_cast %124 : vector<16x16x128xf32> to vector<256x128xf32>
    %126 = arith.addf %123, %125 : vector<256x128xf32>
    %127 = vector.shape_cast %126 : vector<256x128xf32> to vector<16x16x128xf32>
    %c0_41 = arith.constant 0 : index
    %c0_42 = arith.constant 0 : index
    %c0_43 = arith.constant 0 : index
    %c0_44 = arith.constant 0 : index
    %128 = vector.load %arg12[%c0_41, %c0_42, %c0_43, %c0_44] : memref<1x16x16x128xf32, #tpu.memory_space<vmem>>, vector<1x16x16x128xf32>
    %129 = vector.shape_cast %128 : vector<1x16x16x128xf32> to vector<16x16x128xf32>
    %130 = vector.shape_cast %127 : vector<16x16x128xf32> to vector<1x16x16x128xf32>
    tpu.vector_store %arg12[%c0_41, %c0_42, %c0_43, %c0_44], %130 {strides = array<i32>} : memref<1x16x16x128xf32, #tpu.memory_space<vmem>>, vector<1x16x16x128xf32>,
    return
  }
  func.func @transform_0(%arg0: i32, %arg1: i32) -> (i32, i32, i32, i32) {
    %c0_i32 = arith.constant 0 : i32
    %c0_i32_0 = arith.constant 0 : i32
    %c0_i32_1 = arith.constant 0 : i32
    %c0_i32_2 = arith.constant 0 : i32
    return %arg0, %c0_i32, %c0_i32_0, %c0_i32_1 : i32, i32, i32, i32
  }
  func.func @transform_1(%arg0: i32, %arg1: i32) -> (i32, i32) {
    %c0_i32 = arith.constant 0 : i32
    %c0_i32_0 = arith.constant 0 : i32
    %c0_i32_1 = arith.constant 0 : i32
    return %c0_i32, %c0_i32_0 : i32, i32
  }
  func.func @transform_2(%arg0: i32, %arg1: i32) -> (i32, i32) {
    %c0_i32 = arith.constant 0 : i32
    %c0_i32_0 = arith.constant 0 : i32
    %c0_i32_1 = arith.constant 0 : i32
    return %c0_i32, %c0_i32_0 : i32, i32
  }
  func.func @transform_3(%arg0: i32, %arg1: i32) -> (i32, i32) {
    %c0_i32 = arith.constant 0 : i32
    %c0_i32_0 = arith.constant 0 : i32
    %c0_i32_1 = arith.constant 0 : i32
    return %c0_i32, %c0_i32_0 : i32, i32
  }
  func.func @transform_4(%arg0: i32, %arg1: i32) -> (i32, i32) {
    %c0_i32 = arith.constant 0 : i32
    %c0_i32_0 = arith.constant 0 : i32
    %c0_i32_1 = arith.constant 0 : i32
    return %c0_i32, %c0_i32_0 : i32, i32
  }
  func.func @transform_5(%arg0: i32, %arg1: i32) -> (i32, i32) {
    %c0_i32 = arith.constant 0 : i32
    %c0_i32_0 = arith.constant 0 : i32
    %c0_i32_1 = arith.constant 0 : i32
    return %c0_i32, %c0_i32_0 : i32, i32
  }
  func.func @transform_6(%arg0: i32, %arg1: i32) -> (i32, i32) {
    %c0_i32 = arith.constant 0 : i32
    %c0_i32_0 = arith.constant 0 : i32
    %c0_i32_1 = arith.constant 0 : i32
    return %c0_i32, %c0_i32_0 : i32, i32
  }
  func.func @transform_7(%arg0: i32, %arg1: i32) -> (i32, i32) {
    %c0_i32 = arith.constant 0 : i32
    %c0_i32_0 = arith.constant 0 : i32
    %c0_i32_1 = arith.constant 0 : i32
    return %c0_i32, %c0_i32_0 : i32, i32
  }
  func.func @transform_8(%arg0: i32, %arg1: i32) -> (i32, i32) {
    %c0_i32 = arith.constant 0 : i32
    %c0_i32_0 = arith.constant 0 : i32
    %c0_i32_1 = arith.constant 0 : i32
    return %c0_i32, %c0_i32_0 : i32, i32
  }
  func.func @transform_9(%arg0: i32, %arg1: i32) -> (i32, i32) {
    %c0_i32 = arith.constant 0 : i32
    %c0_i32_0 = arith.constant 0 : i32
    %c0_i32_1 = arith.constant 0 : i32
    return %c0_i32, %c0_i32_0 : i32, i32
  }
  func.func @transform_10(%arg0: i32, %arg1: i32) -> (i32, i32, i32, i32) {
    %c0_i32 = arith.constant 0 : i32
    %c0_i32_0 = arith.constant 0 : i32
    %c0_i32_1 = arith.constant 0 : i32
    return %arg0, %arg1, %c0_i32, %c0_i32_0 : i32, i32, i32, i32
  }
}

</mosaic_0001>

<bundles_post_ra>
// kernel: inverted_residual.1
= control target key start
LH: loop header
LB: loop body
LE: loop exit
PB: predicated region body
PF: predicated region fallthrough
CT: control target
= control target key end

     0   :  { %s6116_s0 = inlined_call_operand.hbm [shape: f32[2,18,16,128], index: 0, kind: input, shape index: {}]   ;;  %s6117_s1 = inlined_call_operand.hbm [shape: bf16[128,128], index: 1, kind: input, shape index: {}]   ;;  %s6118_s2 = inlined_call_operand.hbm [shape: f32[1,128], index: 2, kind: input, shape index: {}]   ;;  %s6119_s3 = inlined_call_operand.hbm [shape: f32[1,128], index: 3, kind: input, shape index: {}]   ;;  %s6120_s4 = inlined_call_operand.hbm [shape: f32[9,128], index: 4, kind: input, shape index: {}]   ;;  %s6121_s5 = inlined_call_operand.hbm [shape: f32[1,128], index: 5, kind: input, shape index: {}]   ;;  %s6122_s6 = inlined_call_operand.hbm [shape: f32[1,128], index: 6, kind: input, shape index: {}]   ;;  %s6123_s7 = inlined_call_operand.hbm [shape: bf16[128,128], index: 7, kind: input, shape index: {}]   ;;  %s6124_s8 = inlined_call_operand.hbm [shape: f32[1,128], index: 8, kind: input, shape index: {}]   ;;  %s6125_s9 = inlined_call_operand.hbm [shape: f32[1,128], index: 9, kind: input, shape index: {}]   ;;  %s6126_s10 = inlined_call_operand.hbm [shape: f32[2,16,16,128], index: 10, kind: output, shape index: {}]  }
   0x1   :  { %6167 = sst [smem:[#allocation45_spill]] %s6116_s0 }
   0x2   :  { %6168 = sst [smem:[#allocation46_spill]] %s6117_s1 }
   0x3   :  { %6169 = sst [smem:[#allocation47_spill]] %s6118_s2 }
   0x4   :  { %6170 = sst [smem:[#allocation48_spill]] %s6119_s3 }
   0x5   :  { %6171 = sst [smem:[#allocation49_spill]] %s6126_s10 }
   0x6   :  { %15 = vsyncpa [#allocation4], 0 }
   0x7   :  { %17 = vsyncpa [#allocation4 + $0x1], 0 }
   0x8   :  { %18 = vsyncpa [#allocation7], 0 }
   0x9   :  { %19 = vsyncpa [#allocation10], 0 }
   0xa   :  { %20 = vsyncpa [#allocation13], 0 }
   0xb   :  { %21 = vsyncpa [#allocation16], 0 }
   0xc   :  { %22 = vsyncpa [#allocation19], 0 }
   0xd   :  { %23 = vsyncpa [#allocation5], 0 }
   0xe   :  { %25 = vsyncpa [#allocation5 + $0x1], 0  ;;  %s4012_s13 = smov 0   ;;  %s4014_s14 = smov 0  }
   0xf   :  { %s4016_s15 = smov 0   ;;  %s4018_s16 = smov 0  }
  0x10   :  { %s4020_s17 = smov 0   ;;  %s4022_s18 = smov 0  }
  0x11 LB: > { %6172 = sst [smem:[#allocation28_spill]] %s3930_s16  ;;  %s6127_s19 = sadd.s32 4294967295, %s3938_s18   ;;  %s3938_s18 = sphi %s4022_s18, %s31_s18   ;;  %s3934_s17 = sphi %s4020_s17, %s6249_s17   ;;  %s3930_s16 = sphi %s4018_s16, %s6248_s16   ;;  %s3926_s15 = sphi %s4016_s15, %s6247_s15   ;;  %s3922_s14 = sphi %s4014_s14, %s6246_s14   ;;  %s3918_s13 = sphi %s4012_s13, %s6245_s13  }
  0x12   : > { %p2883_p0 = scmp.ge.s32.totalorder %s3938_s18, 1  ;;  %p4046_p1 = scmp.eq.s32.totalorder %s6127_s19, 0 }
  0x13   : > { %p291_p2 = scmp.lt.s32.totalorder %s3938_s18, 3  ;;  %s3940_s22 = smov [#allocation6]  }
  0x14   : > { %s6173_s20 = scalar_select %p4046_p1, 1, 0 }
  0x15   : > { %p4051_p3 = pnand %p2883_p0, %p291_p2  ;;  %s303_s23 = sshll.u32 %s3940_s22, 4  ;;  %s4055_s23 = int_to_ptr.vmem [resolvable:$true] %s303_s23 }
  0x16   : > { %s3941_s25 = smov [#allocation9]   ;;  %s3942_s27 = smov [#allocation12]  }
  0x17   : > { %s6174_s21 = scalar_select %p4051_p3, 1, 0 }
  0x18   : > { %p3128_p4 = pneg %p4051_p3  ;;  %s328_s26 = sshll.u32 %s3941_s25, 4  ;;  %s4066_s26 = int_to_ptr.vmem [resolvable:$true] %s328_s26 }
  0x19   : > { %6175 = sst [smem:[#allocation29_spill]] %s6174_s21  ;;  %s4068_s28 = sshll.u32 %s3942_s27, 4  ;;  %s353_s28 = int_to_ptr.vmem [resolvable:$true] %s4068_s28 }
  0x1a   : > { %p4062_p6 = pnand %p3128_p4, %p4046_p1  ;;  %s6177_s1 = sld [smem:[#allocation46_spill]] }
  0x1c   : > { %p4078_p8 = pneg %p4062_p6 }
  0x20   : > { %s3554_s11 = scalar_lea.hbm %s6177_s1, 1024 }
  0x21   : > { %p3555_p7 = scmp.ne.s32.totalorder %s6177_s1, %s3554_s11  ;;  %p3561_p11 = scmp.lt.u32.totalorder %s3554_s11, %s6177_s1 }
  0x23   : > { %p3557_p9 = pnand %p4078_p8, %p3555_p7 }
  0x25   : > { %p3558_p10 = pneg %p3557_p9 }
  0x27   : > { %p3563_p12 = pnand %p3561_p11, %p3558_p10 }
  0x29   : > { %3566 = shalt.err (!%p3563_p12)
}
  0x2a   : > { %s3567_s29 = scalar_lea.vmem %s4055_s23, 1024  ;;  %p3575_p4 = scmp.lt.s32.totalorder %s4055_s23, %s4055_s23 }
  0x2b   : > { %p3568_p13 = scmp.ne.s32.totalorder %s4055_s23, %s3567_s29  ;;  %p3576_p5 = scmp.lt.s32.totalorder %s3567_s29, %s3567_s29 }
  0x2d   : > { %p3570_p0 = pnand %p3568_p13, %p4078_p8  ;;  %p3577_p7 = por %p3576_p5, %p3575_p4 }
  0x2f   : > { %p3571_p2 = pneg %p3570_p0 }
  0x31   : > { %p3578_p9 = pnand %p3577_p7, %p3571_p2 }
  0x33   : > { %3581 = shalt.err (!%p3578_p9)
}
  0x34   : > { %s6134_s30 = smov 64   ;;  %s3944_s11 = smov 4  }
  0x35   : > { %3131 = dma.hbm_to_vmem [thread:$0]  (!%p4062_p6), %s6177_s1, 1024, %s4055_s23, [#allocation7], %s6134_s30, %s6134_s30, %s3944_s11  }
  0x36   : > { %s6179_s3 = sld [smem:[#allocation48_spill]] }
  0x3c   : > { %s3582_s29 = scalar_lea.hbm %s6179_s3, 16 }
  0x3d   : > { %p3583_p5 = scmp.ne.s32.totalorder %s6179_s3, %s3582_s29  ;;  %p3589_p12 = scmp.lt.u32.totalorder %s3582_s29, %s6179_s3 }
  0x3f   : > { %p3585_p10 = pnand %p3583_p5, %p4078_p8 }
  0x41   : > { %p3586_p11 = pneg %p3585_p10 }
  0x43   : > { %p3591_p13 = pnand %p3589_p12, %p3586_p11 }
  0x45   : > { %3594 = shalt.err (!%p3591_p13)
}
  0x46   : > { %s3595_s23 = scalar_lea.vmem %s4066_s26, 16  ;;  %s3602_s10 = scalar_lea.vmem %s4066_s26, 32 }
  0x47   : > { %p3596_p0 = scmp.ne.s32.totalorder %s4066_s26, %s3595_s23  ;;  %p3603_p7 = scmp.lt.s32.totalorder %s4066_s26, %s4066_s26 }
  0x48   : > { %p3604_p9 = scmp.lt.s32.totalorder %s3602_s10, %s3595_s23 }
  0x49   : > { %p3598_p2 = pnand %p3596_p0, %p4078_p8 }
  0x4a   : > { %p3605_p5 = por %p3604_p9, %p3603_p7 }
  0x4b   : > { %p3599_p4 = pneg %p3598_p2 }
  0x4d   : > { %p3606_p10 = pnand %p3605_p5, %p3599_p4 }
  0x4f   : > { %3609 = shalt.err (!%p3606_p10)
}
  0x50   : > { %3137 = dma.hbm_to_vmem [thread:$0]  (!%p4062_p6), %s6179_s3, 16, %s4066_s26, [#allocation10]  }
  0x51   : > { %s3610_s22 = scalar_lea.hbm %s6121_s5, 16 }
  0x52   : > { %p3611_p11 = scmp.ne.s32.totalorder %s6121_s5, %s3610_s22  ;;  %p3617_p0 = scmp.lt.u32.totalorder %s3610_s22, %s6121_s5 }
  0x54   : > { %p3613_p12 = pnand %p3611_p11, %p4078_p8 }
  0x56   : > { %p3614_p13 = pneg %p3613_p12 }
  0x58   : > { %p3619_p2 = pnand %p3617_p0, %p3614_p13 }
  0x5a   : > { %3622 = shalt.err (!%p3619_p2)
}
  0x5b   : > { %s3623_s10 = scalar_lea.vmem %s353_s28, 16  ;;  %s3630_s26 = scalar_lea.vmem %s353_s28, 32 }
  0x5c   : > { %p3624_p4 = scmp.ne.s32.totalorder %s353_s28, %s3623_s10  ;;  %p3631_p5 = scmp.lt.s32.totalorder %s353_s28, %s353_s28 }
  0x5d   : > { %p3632_p10 = scmp.lt.s32.totalorder %s3630_s26, %s3623_s10 }
  0x5e   : > { %p3626_p7 = pnand %p3624_p4, %p4078_p8 }
  0x5f   : > { %p3633_p3 = por %p3632_p10, %p3631_p5 }
  0x60   : > { %p3627_p9 = pneg %p3626_p7 }
  0x62   : > { %p3634_p1 = pnand %p3633_p3, %p3627_p9 }
  0x64   : > { %3637 = shalt.err (!%p3634_p1)
}
  0x65   : > { %3143 = dma.hbm_to_vmem [thread:$0]  (!%p4062_p6), %s6121_s5, 16, %s353_s28, [#allocation13]  }
  0x66   : > { %s3945_s21 = smov [#allocation15]   ;;  %s3946_s22 = smov [#allocation8]  }
  0x67   : > { %s373_s12 = sshll.u32 %s3945_s21, 4  ;;  %s317_s25 = sshll.u32 %s3946_s22, 4  ;;  %s374_s12 = int_to_ptr.vmem [resolvable:$true] %s373_s12  ;;  %s318_s25 = int_to_ptr.vmem [resolvable:$true] %s317_s25 }
  0x68   : > { %s3638_s23 = scalar_lea.hbm %s6123_s7, 1024 }
  0x69   : > { %p3639_p1 = scmp.ne.s32.totalorder %s6123_s7, %s3638_s23  ;;  %p3645_p12 = scmp.lt.u32.totalorder %s3638_s23, %s6123_s7 }
  0x6b   : > { %p3641_p3 = pnand %p3639_p1, %p4078_p8 }
  0x6d   : > { %p3642_p11 = pneg %p3641_p3 }
  0x6f   : > { %p3647_p13 = pnand %p3645_p12, %p3642_p11 }
  0x71   : > { %3650 = shalt.err (!%p3647_p13)
}
  0x72   : > { %s3651_s28 = scalar_lea.vmem %s374_s12, 1024  ;;  %p3659_p7 = scmp.lt.s32.totalorder %s374_s12, %s374_s12 }
  0x73   : > { %p3652_p0 = scmp.ne.s32.totalorder %s374_s12, %s3651_s28  ;;  %p3660_p9 = scmp.lt.s32.totalorder %s3651_s28, %s3651_s28 }
  0x75   : > { %p3654_p2 = pnand %p3652_p0, %p4078_p8  ;;  %p3661_p5 = por %p3660_p9, %p3659_p7 }
  0x77   : > { %p3655_p4 = pneg %p3654_p2 }
  0x79   : > { %p3662_p10 = pnand %p3661_p5, %p3655_p4 }
  0x7b   : > { %3665 = shalt.err (!%p3662_p10)
}
  0x7c   : > { %s6180_s16 = smov 64   ;;  %s6181_s2 = sld [smem:[#allocation47_spill]] }
  0x7d   : > { %3149 = dma.hbm_to_vmem [thread:$0]  (!%p4062_p6), %s6123_s7, 1024, %s374_s12, [#allocation16], %s6180_s16, %s6180_s16, %s3944_s11  }
  0x82   : > { %s3666_s29 = scalar_lea.hbm %s6181_s2, 16 }
  0x83   : > { %p3667_p1 = scmp.ne.s32.totalorder %s6181_s2, %s3666_s29  ;;  %p3673_p12 = scmp.lt.u32.totalorder %s3666_s29, %s6181_s2 }
  0x85   : > { %p3669_p3 = pnand %p3667_p1, %p4078_p8 }
  0x87   : > { %p3670_p11 = pneg %p3669_p3 }
  0x89   : > { %p3675_p13 = pnand %p3673_p12, %p3670_p11 }
  0x8b   : > { %3678 = shalt.err (!%p3675_p13)
}
  0x8c   : > { %s3679_s28 = scalar_lea.vmem %s318_s25, 16  ;;  %s3686_s11 = scalar_lea.vmem %s318_s25, 32 }
  0x8d   : > { %p3680_p0 = scmp.ne.s32.totalorder %s318_s25, %s3679_s28  ;;  %p3687_p7 = scmp.lt.s32.totalorder %s318_s25, %s318_s25 }
  0x8e   : > { %p3688_p9 = scmp.lt.s32.totalorder %s3686_s11, %s3679_s28 }
  0x8f   : > { %p3682_p2 = pnand %p3680_p0, %p4078_p8 }
  0x90   : > { %p3689_p5 = por %p3688_p9, %p3687_p7 }
  0x91   : > { %p3683_p4 = pneg %p3682_p2 }
  0x93   : > { %p3690_p10 = pnand %p3689_p5, %p3683_p4 }
  0x95   : > { %3693 = shalt.err (!%p3690_p10)
}
  0x96   : > { %3134 = dma.hbm_to_vmem [thread:$0]  (!%p4062_p6), %s6181_s2, 16, %s318_s25, [#allocation7]  }
  0x97   : > { %s3947_s30 = smov [#allocation11]   ;;  %s3694_s29 = scalar_lea.hbm %s6120_s4, 256 }
  0x98   : > { %s338_s21 = sshll.u32 %s3947_s30, 4  ;;  %p3695_p1 = scmp.ne.s32.totalorder %s6120_s4, %s3694_s29  ;;  %s339_s21 = int_to_ptr.vmem [resolvable:$true] %s338_s21 }
  0x99   : > { %p3701_p12 = scmp.lt.u32.totalorder %s3694_s29, %s6120_s4 }
  0x9a   : > { %p3697_p3 = pnand %p3695_p1, %p4078_p8 }
  0x9c   : > { %p3698_p11 = pneg %p3697_p3 }
  0x9e   : > { %p3703_p13 = pnand %p3701_p12, %p3698_p11 }
  0xa0   : > { %3706 = shalt.err (!%p3703_p13)
}
  0xa1   : > { %s3707_s25 = scalar_lea.vmem %s339_s21, 256  ;;  %p3715_p7 = scmp.lt.s32.totalorder %s339_s21, %s339_s21 }
  0xa2   : > { %p3708_p0 = scmp.ne.s32.totalorder %s339_s21, %s3707_s25  ;;  %p3716_p9 = scmp.lt.s32.totalorder %s3707_s25, %s3707_s25 }
  0xa4   : > { %p3710_p2 = pnand %p3708_p0, %p4078_p8  ;;  %p3717_p5 = por %p3716_p9, %p3715_p7 }
  0xa6   : > { %p3711_p4 = pneg %p3710_p2 }
  0xa8   : > { %p3718_p10 = pnand %p3717_p5, %p3711_p4 }
  0xaa   : > { %3721 = shalt.err (!%p3718_p10)
}
  0xab   : > { %s6135_s28 = smov 128   ;;  %s6136_s11 = smov 8  }
  0xac   : > { %3140 = dma.hbm_to_vmem [thread:$0]  (!%p4062_p6), %s6120_s4, 256, %s339_s21, [#allocation10], %s6135_s28, %s6135_s28, %s6136_s11  }
  0xad   : > { %s3950_s30 = smov [#allocation14]   ;;  %s3951_s27 = smov [#allocation17]  }
  0xae   : > { %s363_s22 = sshll.u32 %s3950_s30, 4  ;;  %s387_s29 = sshll.u32 %s3951_s27, 4  ;;  %s364_s22 = int_to_ptr.vmem [resolvable:$true] %s363_s22  ;;  %s4205_s29 = int_to_ptr.vmem [resolvable:$true] %s387_s29 }
  0xaf   : > { %s3722_s26 = scalar_lea.hbm %s6122_s6, 16 }
  0xb0   : > { %p3723_p1 = scmp.ne.s32.totalorder %s6122_s6, %s3722_s26  ;;  %p3729_p12 = scmp.lt.u32.totalorder %s3722_s26, %s6122_s6 }
  0xb2   : > { %p3725_p3 = pnand %p3723_p1, %p4078_p8 }
  0xb4   : > { %p3726_p11 = pneg %p3725_p3 }
  0xb6   : > { %p3731_p13 = pnand %p3729_p12, %p3726_p11 }
  0xb8   : > { %3734 = shalt.err (!%p3731_p13)
}
  0xb9   : > { %s3735_s16 = scalar_lea.vmem %s364_s22, 16  ;;  %s3742_s30 = scalar_lea.vmem %s364_s22, 32 }
  0xba   : > { %p3736_p0 = scmp.ne.s32.totalorder %s364_s22, %s3735_s16  ;;  %p3743_p7 = scmp.lt.s32.totalorder %s364_s22, %s364_s22 }
  0xbb   : > { %p3744_p9 = scmp.lt.s32.totalorder %s3742_s30, %s3735_s16 }
  0xbc   : > { %p3738_p2 = pnand %p3736_p0, %p4078_p8 }
  0xbd   : > { %p3745_p5 = por %p3744_p9, %p3743_p7 }
  0xbe   : > { %p3739_p4 = pneg %p3738_p2 }
  0xc0   : > { %p3746_p10 = pnand %p3745_p5, %p3739_p4 }
  0xc2   : > { %3749 = shalt.err (!%p3746_p10)
}
  0xc3   : > { %3146 = dma.hbm_to_vmem [thread:$0]  (!%p4062_p6), %s6122_s6, 16, %s364_s22, [#allocation13]  }
  0xc4   : > { %s3750_s0 = scalar_lea.hbm %s6124_s8, 16 }
  0xc5   : > { %p3751_p1 = scmp.ne.s32.totalorder %s6124_s8, %s3750_s0  ;;  %p3757_p12 = scmp.lt.u32.totalorder %s3750_s0, %s6124_s8 }
  0xc7   : > { %p3753_p3 = pnand %p3751_p1, %p4078_p8 }
  0xc9   : > { %p3754_p11 = pneg %p3753_p3 }
  0xcb   : > { %p3759_p13 = pnand %p3757_p12, %p3754_p11 }
  0xcd   : > { %3762 = shalt.err (!%p3759_p13)
}
  0xce   : > { %s3763_s22 = scalar_lea.vmem %s4205_s29, 16  ;;  %s3770_s30 = scalar_lea.vmem %s4205_s29, 32 }
  0xcf   : > { %p3764_p0 = scmp.ne.s32.totalorder %s4205_s29, %s3763_s22  ;;  %p3771_p7 = scmp.lt.s32.totalorder %s4205_s29, %s4205_s29 }
  0xd0   : > { %p3772_p9 = scmp.lt.s32.totalorder %s3770_s30, %s3763_s22 }
  0xd1   : > { %p3766_p2 = pnand %p3764_p0, %p4078_p8 }
  0xd2   : > { %p3773_p5 = por %p3772_p9, %p3771_p7 }
  0xd3   : > { %p3767_p4 = pneg %p3766_p2 }
  0xd5   : > { %p3774_p10 = pnand %p3773_p5, %p3767_p4 }
  0xd7   : > { %3777 = shalt.err (!%p3774_p10)
}
  0xd8   : > { %3152 = dma.hbm_to_vmem [thread:$0]  (!%p4062_p6), %s6124_s8, 16, %s4205_s29, [#allocation16]  }
  0xd9   : > { %s3952_s10 = smov [#allocation18]   ;;  %s3778_s12 = scalar_lea.hbm %s6125_s9, 16 }
  0xda   : > { %s398_s26 = sshll.u32 %s3952_s10, 4  ;;  %p3779_p1 = scmp.ne.s32.totalorder %s6125_s9, %s3778_s12  ;;  %s399_s26 = int_to_ptr.vmem [resolvable:$true] %s398_s26 }
  0xdb   : > { %p3785_p12 = scmp.lt.u32.totalorder %s3778_s12, %s6125_s9 }
  0xdc   : > { %p3781_p3 = pnand %p3779_p1, %p4078_p8 }
  0xde   : > { %p3782_p11 = pneg %p3781_p3 }
  0xe0   : > { %p3787_p13 = pnand %p3785_p12, %p3782_p11 }
  0xe2   : > { %3790 = shalt.err (!%p3787_p13)
}
  0xe3   : > { %s3791_s29 = scalar_lea.vmem %s399_s26, 16  ;;  %s3798_s27 = scalar_lea.vmem %s399_s26, 32 }
  0xe4   : > { %p3792_p0 = scmp.ne.s32.totalorder %s399_s26, %s3791_s29  ;;  %p3799_p7 = scmp.lt.s32.totalorder %s399_s26, %s399_s26 }
  0xe5   : > { %p3800_p9 = scmp.lt.s32.totalorder %s3798_s27, %s3791_s29 }
  0xe6   : > { %p3794_p2 = pnand %p3792_p0, %p4078_p8 }
  0xe7   : > { %p3801_p5 = por %p3800_p9, %p3799_p7 }
  0xe8   : > { %p3795_p4 = pneg %p3794_p2 }
  0xea   : > { %p3802_p10 = pnand %p3801_p5, %p3795_p4 }
  0xec   : > { %3805 = shalt.err (!%p3802_p10)
}
  0xed   : > { %3155 = dma.hbm_to_vmem [thread:$0]  (!%p4062_p6), %s6125_s9, 16, %s399_s26, [#allocation19]  }
  0xee   : > { %s2882_s19 = sadd.s32 4294967294, %s3938_s18   ;;  %s43_s0 = sadd.s32 1, %s3934_s17 }
  0xef   : > { %s50_s24 = sadd.s32 1, %s3926_s15  ;;  %p45_p8 = scmp.ge.s32.totalorder %s43_s0, 2 }
  0xf0   : > { %p57_p1 = scmp.ne.s32.totalorder %s3926_s15, %s3922_s14  ;;  %p58_p3 = scmp.eq.s32.totalorder %s3938_s18, 0 }
  0xf1   : > { %p63_p11 = scmp.ne.s32.totalorder %s3922_s14, %s3918_s13  ;;  %s6251_s0 = smov (%p45_p8, %s43_s0), 0 }
  0xf2   : > { %p4277_p12 = por %p58_p3, %p57_p1  ;;  %p6183_p13 = scmp.ne.s32.totalorder %s6173_s20, 0 }
  0xf3   : > { %s47_s12 = ssub.s32 %s3934_s17, %s6251_s0  ;;  %s6185_s21 = sadd.s32 4294967295, %s3938_s18  }
  0xf4   : > { %p4283_p6 = por %p6183_p13, %p63_p11  ;;  %p278_p0 = scmp.eq.s32.totalorder %s6185_s21, 1 }
  0xf5   : > { %p48_p2 = scmp.eq.s32.totalorder %s47_s12, 0  ;;  %p284_p4 = scmp.eq.s32.totalorder %s2882_s19, 1 }
  0xf6   : > { %p4291_p7 = por %p278_p0, %p57_p1  ;;  %p3173_p9 = scmp.lt.s32.totalorder %s3938_s18, 2 }
  0xf7   : > { %s4297_s22 = scalar_select %p48_p2, %s3926_s15, %s50_s24  }
  0xf8   : > { %s6186_s16 = scalar_select %p4291_p7, 1, 0 }
  0xf9   : > { %p4299_p5 = por %p284_p4, %p63_p11  ;;  %s409_s29 = sand.u32 1, %s3926_s15  }
  0xfa   : > { %s3085_s27 = smul.u32 288, %s409_s29  ;;  %p4307_p10 = pnand %p3173_p9, %p4277_p12 }
  0xfb   : > { %s6187_s30 = scalar_select %p4299_p5, 1, 0 }
  0xfc   : > { %s3086_s23 = smul.u32 4608, %s3934_s17  ;;  %s6189_s21 = sld [smem:[#allocation45_spill]] }
  0xfd   : > { %s413_s24 = scalar_lea.vmem [#allocation3], %s3085_s27  ;;  %s4318_s25 = scalar_lea.sflag [#allocation4], %s409_s29 }
  0xfe   : > { %s420_s11 = sshll.u32 %s413_s24, 4  ;;  %p3808_p1 = pneg %p4307_p10  ;;  %s4316_s11 = int_to_ptr.vmem [resolvable:$true] %s420_s11 }
 0x102   : > { %s4314_s28 = scalar_lea.hbm %s6189_s21, %s3086_s23  ;;  %s3811_s12 = scalar_lea.hbm %s6189_s21, 9216 }
 0x103   : > { %s3806_s1 = scalar_lea.hbm %s4314_s28, 4608  ;;  %p3812_p12 = scmp.lt.u32.totalorder %s4314_s28, %s6189_s21 }
 0x104   : > { %p3807_p8 = scmp.ne.s32.totalorder %s4314_s28, %s3806_s1  ;;  %p3813_p13 = scmp.lt.u32.totalorder %s3811_s12, %s3806_s1 }
 0x105   : > { %p3815_p2 = scmp.lt.u32.totalorder %s3806_s1, %s4314_s28 }
 0x106   : > { %p3809_p3 = pnand %p3808_p1, %p3807_p8  ;;  %p3814_p0 = por %p3813_p13, %p3812_p12 }
 0x108   : > { %p3810_p11 = pneg %p3809_p3  ;;  %p3816_p4 = por %p3815_p2, %p3814_p0 }
 0x10a   : > { %p3817_p9 = pnand %p3816_p4, %p3810_p11 }
 0x10c   : > { %3820 = shalt.err (!%p3817_p9)
}
 0x10d   : > { %s3821_s29 = scalar_lea.vmem %s4316_s11, 4608  ;;  %s3953_s27 = smov [#allocation3]  }
 0x10e   : > { %p3822_p8 = scmp.ne.s32.totalorder %s4316_s11, %s3821_s29  ;;  %s3826_s24 = sshll.u32 %s3953_s27, 4  ;;  %s3827_s24 = int_to_ptr.vmem [resolvable:$false] %s3826_s24 }
 0x10f   : > { %s3828_s2 = scalar_lea.vmem %s3827_s24, 9216  ;;  %p3829_p7 = scmp.lt.s32.totalorder %s4316_s11, %s3827_s24 }
 0x110   : > { %p3824_p3 = pnand %p3822_p8, %p3808_p1  ;;  %p3830_p12 = scmp.lt.s32.totalorder %s3828_s2, %s3821_s29 }
 0x112   : > { %p3825_p5 = pneg %p3824_p3  ;;  %p3831_p13 = por %p3830_p12, %p3829_p7 }
 0x114   : > { %p3832_p0 = pnand %p3831_p13, %p3825_p5 }
 0x116   : > { %3835 = shalt.err (!%p3832_p0)
}
 0x117   : > { %s6190_s1 = smov 8   ;;  %s6191_s3 = smov 128  }
 0x118   : > { %3159 = dma.hbm_to_vmem [thread:$0]  (!%p4307_p10), %s4314_s28, 4608, %s4316_s11, %s4318_s25, %s6191_s3, %s6191_s3, %s6190_s1  }
 0x119   : > { %s6192_s23 = sld [smem:[#allocation29_spill]] }
 0x11f   : > { %p6193_p1 = scmp.ne.s32.totalorder %s6192_s23, 0 }
 0x121   : > { %432 = sbr.rel (%p6193_p1) target bundleno = 1150 (0x47e), region = 60 }
 0x128   : > { %s4352_s19 = sand.u32 1, %s3922_s14  }
 0x129   : > { %s3087_s12 = smul.u32 288, %s4352_s19  ;;  %s435_s29 = scalar_lea.sflag [#allocation4], %s4352_s19 }
 0x12b   : > { %s4356_s27 = scalar_lea.vmem [#allocation3], %s3087_s12 }
 0x12c   : > { %3889 = dma.done.wait (%p4283_p6), %s435_s29, 4608  }
 0x12d   : > { %3891 = vsyncadd (%p4283_p6), %s435_s29, 4294962688  ;;  %p6194_p7 = scmp.ne.s32.totalorder %s6173_s20, 0 }
 0x12f   : > { %3893 = dma.done.wait (%p6194_p7), [#allocation7], 1040  }
 0x130   : > { %3895 = vsyncadd (%p6194_p7), [#allocation7], 4294966256 }
 0x131   : > { %3897 = dma.done.wait (%p6194_p7), [#allocation10], 272  }
 0x132   : > { %3899 = vsyncadd (%p6194_p7), [#allocation10], 4294967024 }
 0x133   : > { %3901 = dma.done.wait (%p6194_p7), [#allocation13], 32  }
 0x134   : > { %3903 = vsyncadd (%p6194_p7), [#allocation13], 4294967264 }
 0x135   : > { %3905 = dma.done.wait (%p6194_p7), [#allocation16], 1040  }
 0x136   : > { %3907 = vsyncadd (%p6194_p7), [#allocation16], 4294966256 }
 0x137   : > { %3909 = dma.done.wait (%p6194_p7), [#allocation19], 16  }
 0x138   : > { %3911 = vsyncadd (%p6194_p7), [#allocation19], 4294967280  ;;  %v3247_v0 = vld [vmem:[#allocation6] sm:$0xff]   ;;  %v3248_v1 = vld [vmem:[#allocation6 + $0x8] sm:$0xff]   ;;  %s2905_s20 = sshll.u32 %s4352_s19, 8  ;;  %s6240_s11 = sld [smem:[#allocation28_spill]] }
 0x139   : > { %2985 = vmatprep.subr.bf16.mxu0 %v3247_v0  ;;  %v3249_v2 = vld [vmem:[#allocation6 + $0x10] sm:$0xff]   ;;  %v3250_v3 = vld [vmem:[#allocation6 + $0x18] sm:$0xff]   ;;  %v516_v4 = vld [vmem:[%s4356_s27] sm:$0xff]  ;;  %s5940_s28 = scalar_lea.vmem [#allocation20], %s2905_s20  ;;  %s6241_s2 = sld [smem:[#allocation49_spill]] }
 0x13a   : > { %2986 = vmatpush3.bf16.msra.mxu0 %v3247_v0  ;;  %v517_v5 = vld [vmem:[%s4356_s27 + $0x8] sm:$0xff]  ;;  %v3251_v7 = vld [vmem:[#allocation6 + $0x20] sm:$0xff]   ;;  %v3253_v9 = vld [vmem:[#allocation6 + $0x30] sm:$0xff]   ;;  %s2709_s10 = sshll.u32 %s5940_s28, 4  ;;  %s2693_s3 = scalar_lea.sflag [#allocation5], %s4352_s19  ;;  %s6063_s10 = int_to_ptr.vmem [resolvable:$true] %s2709_s10 }
 0x13b   : > { %2987 = vmatprep.subr.bf16.mxu0 %v3248_v1  ;;  %v552_v6 = vpack.c.bf16 %v517_v5, %v516_v4  ;;  %v3252_v8 = vld [vmem:[#allocation6 + $0x28] sm:$0xff]   ;;  %v3254_v10 = vld [vmem:[#allocation6 + $0x38] sm:$0xff]   ;;  %v518_v11 = vld [vmem:[%s4356_s27 + $0x10] sm:$0xff]  ;;  %s3836_s23 = scalar_lea.vmem %s6063_s10, 4096  ;;  %p6242_p5 = scmp.ne.s32.totalorder %s6186_s16, 0 }
 0x13c   : > { %v519_v12 = vld [vmem:[%s4356_s27 + $0x18] sm:$0xff]  ;;  %v520_v13 = vld [vmem:[%s4356_s27 + $0x20] sm:$0xff]  ;;  %v521_v14 = vld [vmem:[%s4356_s27 + $0x28] sm:$0xff]  ;;  %p3837_p6 = scmp.ne.s32.totalorder %s6063_s10, %s3836_s23  ;;  %s3954_s12 = smov [#allocation20]  }
 0x13d   : > { %3001 = vmatprep.mubr.bf16.mxu0 %v552_v6  ;;  %v553_v15 = vpack.c.bf16 %v519_v12, %v518_v11  ;;  %v554_v16 = vpack.c.bf16 %v521_v14, %v520_v13  ;;  %v522_v17 = vld [vmem:[%s4356_s27 + $0x30] sm:$0xff]  ;;  %v523_v18 = vld [vmem:[%s4356_s27 + $0x38] sm:$0xff]  ;;  %v524_v19 = vld [vmem:[%s4356_s27 + $0x40] sm:$0xff]  ;;  %s3840_s29 = sshll.u32 %s3954_s12, 4  ;;  %s3841_s29 = int_to_ptr.vmem [resolvable:$false] %s3840_s29 }
 0x13e   : > { %2988 = vmatpush3.bf16.msra.mxu0 %v3248_v1  ;;  %v525_v20 = vld [vmem:[%s4356_s27 + $0x48] sm:$0xff]  ;;  %v555_v21 = vpack.c.bf16 %v523_v18, %v522_v17  ;;  %v526_v23 = vld [vmem:[%s4356_s27 + $0x50] sm:$0xff]  ;;  %v527_v24 = vld [vmem:[%s4356_s27 + $0x58] sm:$0xff]  ;;  %s2934_s26 = sshll.u32 %s6240_s11, 12  ;;  %p3838_p10 = pnand %p3837_p6, %p6242_p5 }
 0x13f   : > { %2989 = vmatprep.subr.bf16.mxu0 %v3249_v2  ;;  %v556_v22 = vpack.c.bf16 %v525_v20, %v524_v19  ;;  %v528_v25 = vld [vmem:[%s4356_s27 + $0x60] sm:$0xff]  ;;  %v529_v26 = vld [vmem:[%s4356_s27 + $0x68] sm:$0xff]  ;;  %v557_v27 = vpack.c.bf16 %v527_v24, %v526_v23  ;;  %v530_v29 = vld [vmem:[%s4356_s27 + $0x70] sm:$0xff]  ;;  %s6061_s1 = scalar_lea.hbm %s6241_s2, %s2934_s26  ;;  %s3842_s20 = scalar_lea.vmem %s3841_s29, 8192 }
 0x140   : > { %v558_v28 = vpack.c.bf16 %v529_v26, %v528_v25  ;;  %v531_v30 = vld [vmem:[%s4356_s27 + $0x78] sm:$0xff]  ;;  %v532_v31 = vld [vmem:[%s4356_s27 + $0x80] sm:$0xff]  ;;  %v533_v32 = vld [vmem:[%s4356_s27 + $0x88] sm:$0xff]  ;;  %p3839_p11 = pneg %p3838_p10  ;;  %p3843_p2 = scmp.lt.s32.totalorder %s6063_s10, %s3841_s29 }
 0x141   : > { %v559_v33 = vpack.c.bf16 %v531_v30, %v530_v29  ;;  %v560_v34 = vpack.c.bf16 %v533_v32, %v532_v31  ;;  %v534_v35 = vld [vmem:[%s4356_s27 + $0x90] sm:$0xff]  ;;  %v535_v36 = vld [vmem:[%s4356_s27 + $0x98] sm:$0xff]  ;;  %v536_v37 = vld [vmem:[%s4356_s27 + $0xa0] sm:$0xff]  ;;  %p3844_p4 = scmp.lt.s32.totalorder %s3842_s20, %s3836_s23 }
 0x142   : > { %2990 = vmatpush3.bf16.msra.mxu0 %v3249_v2  ;;  %v537_v38 = vld [vmem:[%s4356_s27 + $0xa8] sm:$0xff]  ;;  %v561_v39 = vpack.c.bf16 %v535_v36, %v534_v35  ;;  %v538_v41 = vld [vmem:[%s4356_s27 + $0xb0] sm:$0xff]  ;;  %v539_v42 = vld [vmem:[%s4356_s27 + $0xb8] sm:$0xff] }
 0x143   : > { %2991 = vmatprep.subr.bf16.mxu0 %v3250_v3  ;;  %v562_v40 = vpack.c.bf16 %v537_v38, %v536_v37  ;;  %v540_v43 = vld [vmem:[%s4356_s27 + $0xc0] sm:$0xff]  ;;  %v541_v44 = vld [vmem:[%s4356_s27 + $0xc8] sm:$0xff]  ;;  %v563_v45 = vpack.c.bf16 %v539_v42, %v538_v41  ;;  %v542_v47 = vld [vmem:[%s4356_s27 + $0xd0] sm:$0xff]  ;;  %p3845_p9 = por %p3844_p4, %p3843_p2 }
 0x144   : > { %v564_v46 = vpack.c.bf16 %v541_v44, %v540_v43  ;;  %v543_v48 = vld [vmem:[%s4356_s27 + $0xd8] sm:$0xff]  ;;  %v544_v49 = vld [vmem:[%s4356_s27 + $0xe0] sm:$0xff]  ;;  %v545_v50 = vld [vmem:[%s4356_s27 + $0xe8] sm:$0xff] }
 0x145   : > { %v565_v51 = vpack.c.bf16 %v543_v48, %v542_v47  ;;  %v566_v52 = vpack.c.bf16 %v545_v50, %v544_v49  ;;  %v546_v53 = vld [vmem:[%s4356_s27 + $0xf0] sm:$0xff]  ;;  %v547_v54 = vld [vmem:[%s4356_s27 + $0xf8] sm:$0xff]  ;;  %v548_v55 = vld [vmem:[%s4356_s27 + $0x100] sm:$0xff]  ;;  %p3846_p8 = pnand %p3845_p9, %p3839_p11 }
 0x146   : > { %2992 = vmatpush3.bf16.msra.mxu0 %v3250_v3  ;;  %v549_v56 = vld [vmem:[%s4356_s27 + $0x108] sm:$0xff]  ;;  %v567_v57 = vpack.c.bf16 %v547_v54, %v546_v53  ;;  %v550_v59 = vld [vmem:[%s4356_s27 + $0x110] sm:$0xff]  ;;  %v551_v60 = vld [vmem:[%s4356_s27 + $0x118] sm:$0xff] }
 0x147   : > { %2993 = vmatprep.subr.bf16.mxu0 %v3251_v7  ;;  %v568_v58 = vpack.c.bf16 %v549_v56, %v548_v55  ;;  %v569_v61 = vpack.c.bf16 %v551_v60, %v550_v59  ;;  %v3255_v62 = vld [vmem:[#allocation15] sm:$0xff]   ;;  %v3256_v63 = vld [vmem:[#allocation15 + $0x8] sm:$0xff]   ;;  %v3257_v0 = vld [vmem:[#allocation15 + $0x10] sm:$0xff]  }
 0x148   : > { %3037 = vmatprep.subr.bf16.mxu1 %v3255_v62  ;;  %v3258_v1 = vld [vmem:[#allocation15 + $0x18] sm:$0xff]   ;;  %v3259_v2 = vld [vmem:[#allocation15 + $0x20] sm:$0xff]   ;;  %v3260_v3 = vld [vmem:[#allocation15 + $0x28] sm:$0xff]  }
 0x149   : > { %3038 = vmatpush3.bf16.msra.mxu1 %v3255_v62  ;;  %v3261_v4 = vld [vmem:[#allocation15 + $0x30] sm:$0xff]   ;;  %v4418_v5 = vld [vmem:[#allocation8] ss:$0 sm:$0xff]  ;;  %v3262_v6 = vld [vmem:[#allocation15 + $0x38] sm:$0xff]  }
 0x14a   : > { %2994 = vmatpush3.bf16.msra.mxu0 %v3251_v7  ;;  %3039 = vmatprep.subr.bf16.mxu1 %v3256_v63 }
 0x14b   : > { %2995 = vmatprep.subr.bf16.mxu0 %v3252_v8 }
 0x14d   : > { %3040 = vmatpush3.bf16.msra.mxu1 %v3256_v63 }
 0x14e   : > { %2996 = vmatpush3.bf16.msra.mxu0 %v3252_v8  ;;  %3041 = vmatprep.subr.bf16.mxu1 %v3257_v0  ;;  %v4420_v8 = vld [vmem:[#allocation9] ss:$0 sm:$0xff] }
 0x14f   : > { %2997 = vmatprep.subr.bf16.mxu0 %v3253_v9 }
 0x151   : > { %3042 = vmatpush3.bf16.msra.mxu1 %v3257_v0 }
 0x152   : > { %2998 = vmatpush3.bf16.msra.mxu0 %v3253_v9  ;;  %3043 = vmatprep.subr.bf16.mxu1 %v3258_v1 }
 0x153   : > { %2999 = vmatprep.subr.bf16.mxu0 %v3254_v10 }
 0x155   : > { %3044 = vmatpush3.bf16.msra.mxu1 %v3258_v1 }
 0x156   : > { %3000 = vmatpush3.bf16.msra.mxu0 %v3254_v10  ;;  %3045 = vmatprep.subr.bf16.mxu1 %v3259_v2 }
 0x159   : > { %3002 = vmatmul.mubr.bf16.vlgmr.msra.gmra.mrb[0].mxu0 %v553_v15  ;;  %3046 = vmatpush3.bf16.msra.mxu1 %v3259_v2  ;;  %v1258_v15 = vlaneseq }
 0x15a   : > { %3005 = vmatprep.mubr.bf16.mxu0 %v554_v16  ;;  %3047 = vmatprep.subr.bf16.mxu1 %v3260_v3 }
 0x15b   : > { %v4432_v20 = vshrl.u32 %v1258_v15, 7 }
 0x15d   : > { %3048 = vmatpush3.bf16.msra.mxu1 %v3260_v3  ;;  %v1432_v30 = vsub.s32 0, %v4432_v20  ;;  %v1468_v38 = vsub.s32 3, %v4432_v20  ;;  %v1260_v41 = vsub.s32 1, %v4432_v20  ;;  %v1296_v50 = vsub.s32 4, %v4432_v20 }
 0x15e   : > { %3049 = vmatprep.subr.bf16.mxu1 %v3261_v4  ;;  %v1364_v3 = vsub.s32 7, %v4432_v20  ;;  %vm1811_vm0 = vcmp.lt.s32.totalorder %v4432_v20, 1  ;;  %vm1942_vm1 = vcmp.lt.s32.totalorder %v4432_v20, 7  ;;  %vm1777_vm3 = vcmp.gt.s32.totalorder %v4432_v20, 0 }
 0x161   : > { %3006 = vmatmul.mubr.bf16.gmra.mrb[4].mxu0 %v555_v21  ;;  %3050 = vmatpush3.bf16.msra.mxu1 %v3261_v4 }
 0x162   : > { %3009 = vmatprep.mubr.bf16.mxu0 %v556_v22  ;;  %3051 = vmatprep.subr.bf16.mxu1 %v3262_v6 }
 0x165   : > { %3052 = vmatpush3.bf16.msra.mxu1 %v3262_v6 }
 0x169   : > { %3010 = vmatmul.mubr.bf16.gmra.mrb[8].mxu0 %v557_v27 }
 0x16a   : > { %3013 = vmatprep.mubr.bf16.mxu0 %v558_v28 }
 0x171   : > { %3014 = vmatmul.mubr.bf16.gmra.mrb[12].mxu0 %v559_v33  ;;  %v4445_v33 = vld [vmem:[#allocation11] sm:$0xff] }
 0x172   : > { %3017 = vmatprep.mubr.bf16.mxu0 %v560_v34  ;;  %v4459_v42 = vrot.slane %v4445_v33, %v1432_v30  ;;  %v4467_v54 = vrot.slane %v4445_v33, %v1468_v38  ;;  %v4474_v59 = vrot.slane %v4445_v33, %v1260_v41 }
 0x174   : > { %6195 = vst [vmem:[#allocation30_spill] sm:$0xff] %v4459_v42 }
 0x179   : > { %3018 = vmatmul.mubr.bf16.gmra.mrb[16].mxu0 %v561_v39 }
 0x17a   : > { %3021 = vmatprep.mubr.bf16.mxu0 %v562_v40 }
 0x181   : > { %3022 = vmatmul.mubr.bf16.gmra.mrb[20].mxu0 %v563_v45 }
 0x182   : > { %3025 = vmatprep.mubr.bf16.mxu0 %v564_v46  ;;  %v1640_v46 = vsub.s32 5, %v4432_v20 }
 0x184   : > { %v4485_v2 = vrot.slane %v4445_v33, %v1640_v46 }
 0x189   : > { %3026 = vmatmul.mubr.bf16.gmra.mrb[24].mxu0 %v565_v51 }
 0x18a   : > { %3029 = vmatprep.mubr.bf16.mxu0 %v566_v52 }
 0x191   : > { %3030 = vmatmul.mubr.bf16.gmra.mrb[28].mxu0 %v567_v57 }
 0x192   : > { %3033 = vmatprep.mubr.bf16.mxu0 %v568_v58 }
 0x199   : > { %3034 = vmatmul.mubr.bf16.gmra.mrb[32].mxu0 %v569_v61 }
 0x22c   : > { %v3003_v7 = vpop.f32.mrb[0].mxu0 }
 0x22d   : > { %v820_v9 = vmul.f32 %v3003_v7, %v4418_v5  ;;  %v668_v10 = vpop.f32.mrb[1].mxu0 }
 0x22e   : > { %v3004_v11 = vpop.f32.mrb[2].mxu0 }
 0x22f   : > { %v4424_v12 = vadd.f32 %v4420_v8, %v820_v9  ;;  %v821_v13 = vmul.f32 %v3004_v11, %v4418_v5  ;;  %v671_v14 = vpop.f32.mrb[3].mxu0  ;;  %v4494_v11 = vrot.slane %v4445_v33, %v1296_v50 }
 0x231   : > { %v899_v16 = vsub.f32 0.0, %v4424_v12  ;;  %v4429_v17 = vadd.f32 %v4420_v8, %v821_v13  ;;  %v1604_v13 = vsub.s32 2, %v4432_v20 }
 0x233   : > { %v937_v18 = vmul.f32 1.442695, %v899_v16  ;;  %v900_v19 = vsub.f32 0.0, %v4429_v17 }
 0x234   : > { %v3007_v21 = vpop.f32.mrb[4].mxu0 }
 0x235   : > { %3263 = vpow2.f32 %v937_v18  ;;  %v939_v22 = vmul.f32 1.442695, %v900_v19  ;;  %v824_v23 = vmul.f32 %v3007_v21, %v4418_v5  ;;  %v684_v24 = vpop.f32.mrb[5].mxu0  ;;  %v4499_v18 = vmul.f32 0.0, %v4474_v59 }
 0x236   : > { %v822_v25 = vmul.f32 %v4418_v5, %v684_v24  ;;  %v3008_v26 = vpop.f32.mrb[6].mxu0 }
 0x237   : > { %3265 = vpow2.f32 %v939_v22  ;;  %v4437_v27 = vadd.f32 %v4420_v8, %v824_v23  ;;  %v825_v28 = vmul.f32 %v3008_v26, %v4418_v5  ;;  %v687_v29 = vpop.f32.mrb[7].mxu0  ;;  %v4503_v23 = vmul.f32 0.0, %v4459_v42 }
 0x238   : > { %v4442_v31 = vadd.f32 %v4420_v8, %v822_v25  ;;  %v823_v32 = vmul.f32 %v4418_v5, %v687_v29 }
 0x239   : > { %v903_v34 = vsub.f32 0.0, %v4437_v27  ;;  %v4449_v35 = vadd.f32 %v4420_v8, %v825_v28  ;;  %v4507_v28 = vrot.slane %v4445_v33, %v1364_v3 }
 0x23a   : > { %v901_v36 = vsub.f32 0.0, %v4442_v31  ;;  %v4453_v37 = vadd.f32 %v4420_v8, %v823_v32 }
 0x23b   : > { %v945_v39 = vmul.f32 1.442695, %v903_v34  ;;  %v904_v40 = vsub.f32 0.0, %v4449_v35 }
 0x23c   : > { %v941_v43 = vmul.f32 1.442695, %v901_v36  ;;  %v902_v44 = vsub.f32 0.0, %v4453_v37  ;;  %v3011_v45 = vpop.f32.mrb[8].mxu0  ;;  %v4514_v36 = vrot.slane %v4445_v33, %v1604_v13 }
 0x23d   : > { %3267 = vpow2.f32 %v945_v39  ;;  %v947_v47 = vmul.f32 1.442695, %v904_v40  ;;  %v828_v48 = vmul.f32 %v3011_v45, %v4418_v5  ;;  %v700_v49 = vpop.f32.mrb[9].mxu0 }
 0x23e   : > { %3269 = vpow2.f32 %v941_v43  ;;  %v943_v51 = vmul.f32 1.442695, %v902_v44  ;;  %v826_v52 = vmul.f32 %v4418_v5, %v700_v49  ;;  %v3012_v53 = vpop.f32.mrb[10].mxu0 }
 0x23f   : > { %v3264_v55 = vpop.eup %3263  ;;  %3271 = vpow2.f32 %v947_v47  ;;  %v4470_v56 = vadd.f32 %v4420_v8, %v828_v48  ;;  %v829_v57 = vmul.f32 %v3012_v53, %v4418_v5  ;;  %v703_v58 = vpop.f32.mrb[11].mxu0  ;;  %v1536_v47 = vsub.s32 6, %v4432_v20 }
 0x240   : > { %v1007_v60 = vadd.f32 1.0, %v3264_v55  ;;  %3273 = vpow2.f32 %v943_v51  ;;  %v4477_v61 = vadd.f32 %v4420_v8, %v826_v52  ;;  %v827_v62 = vmul.f32 %v4418_v5, %v703_v58 }
 0x241   : > { %v3266_v63 = vpop.eup %3265  ;;  %v907_v0 = vsub.f32 0.0, %v4470_v56  ;;  %v4482_v1 = vadd.f32 %v4420_v8, %v829_v57 }
 0x242   : > { %3275 = vrcp.f32 %v1007_v60  ;;  %v1008_v4 = vadd.f32 1.0, %v3266_v63  ;;  %v905_v6 = vsub.f32 0.0, %v4477_v61  ;;  %v4490_v7 = vadd.f32 %v4420_v8, %v827_v62 }
 0x243   : > { %v953_v9 = vmul.f32 1.442695, %v907_v0  ;;  %v908_v10 = vsub.f32 0.0, %v4482_v1  ;;  %v4532_v63 = vmul.f32 0.0, %v4514_v36 }
 0x244   : > { %3277 = vrcp.f32 %v1008_v4  ;;  %v949_v14 = vmul.f32 1.442695, %v905_v6  ;;  %v906_v15 = vsub.f32 0.0, %v4490_v7  ;;  %v3015_v16 = vpop.f32.mrb[12].mxu0  ;;  %v4536_v6 = vrot.slane %v4445_v33, %v1536_v47 }
 0x245   : > { %3279 = vpow2.f32 %v953_v9  ;;  %v955_v19 = vmul.f32 1.442695, %v908_v10  ;;  %v832_v21 = vmul.f32 %v3015_v16, %v4418_v5  ;;  %v716_v22 = vpop.f32.mrb[13].mxu0 }
 0x246   : > { %3281 = vpow2.f32 %v949_v14  ;;  %v951_v24 = vmul.f32 1.442695, %v906_v15  ;;  %v830_v25 = vmul.f32 %v4418_v5, %v716_v22  ;;  %v3016_v26 = vpop.f32.mrb[14].mxu0  ;;  %v4540_v15 = vadd.s32 8, %v4432_v20 }
 0x247   : > { %v3268_v29 = vpop.eup %3267  ;;  %3283 = vpow2.f32 %v955_v19  ;;  %v4510_v30 = vadd.f32 %v4420_v8, %v832_v21  ;;  %v833_v32 = vmul.f32 %v3016_v26, %v4418_v5  ;;  %v719_v34 = vpop.f32.mrb[15].mxu0  ;;  %v4549_v33 = vmul.f32 0.0, %v4536_v6 }
 0x248   : > { %v3270_v38 = vpop.eup %3269  ;;  %v1011_v39 = vadd.f32 1.0, %v3268_v29  ;;  %3285 = vpow2.f32 %v951_v24  ;;  %v4517_v40 = vadd.f32 %v4420_v8, %v830_v25  ;;  %v831_v41 = vmul.f32 %v4418_v5, %v719_v34 }
 0x249   : > { %v3272_v43 = vpop.eup %3271  ;;  %v1009_v44 = vadd.f32 1.0, %v3270_v38  ;;  %v911_v45 = vsub.f32 0.0, %v4510_v30  ;;  %v4522_v46 = vadd.f32 %v4420_v8, %v833_v32  ;;  %6196 = vst [vmem:[#allocation31_spill] sm:$0xff] %v4549_v33  ;;  %vm1909_vm2 = vcmp.lt.s32.totalorder %v4540_v15, 15 }
 0x24a   : > { %v3274_v48 = vpop.eup %3273  ;;  %3287 = vrcp.f32 %v1011_v39  ;;  %v1012_v49 = vadd.f32 1.0, %v3272_v43  ;;  %v909_v50 = vsub.f32 0.0, %v4517_v40  ;;  %v4527_v51 = vadd.f32 %v4420_v8, %v831_v41 }
 0x24b   : > { %3289 = vrcp.f32 %v1009_v44  ;;  %v1010_v52 = vadd.f32 1.0, %v3274_v48  ;;  %v961_v53 = vmul.f32 1.442695, %v911_v45  ;;  %v912_v55 = vsub.f32 0.0, %v4522_v46 }
 0x24c   : > { %v3276_v57 = vpop.eup %3275  ;;  %3291 = vrcp.f32 %v1012_v49  ;;  %v957_v58 = vmul.f32 1.442695, %v909_v50  ;;  %v910_v60 = vsub.f32 0.0, %v4527_v51  ;;  %v3019_v62 = vpop.f32.mrb[16].mxu0 }
 0x24d   : > { %3293 = vrcp.f32 %v1010_v52  ;;  %v963_v0 = vmul.f32 1.442695, %v912_v55  ;;  %v836_v3 = vmul.f32 %v3019_v62, %v4418_v5  ;;  %v732_v4 = vpop.f32.mrb[17].mxu0  ;;  %v4543_v19 = vmul.f32 %v3276_v57, %v4424_v12 }
 0x24e   : > { %v3278_v9 = vpop.eup %3277  ;;  %3295 = vpow2.f32 %v961_v53  ;;  %v959_v10 = vmul.f32 1.442695, %v910_v60  ;;  %v834_v13 = vmul.f32 %v4418_v5, %v732_v4  ;;  %v3020_v14 = vpop.f32.mrb[18].mxu0 }
 0x24f   : > { %v3280_v16 = vpop.eup %3279  ;;  %3297 = vpow2.f32 %v957_v58  ;;  %v4546_v21 = vadd.f32 %v4420_v8, %v836_v3  ;;  %v735_v22 = vpop.f32.mrb[19].mxu0  ;;  %v837_v29 = vmul.f32 %v3020_v14, %v4418_v5  ;;  %v4556_v12 = vmul.f32 %v3278_v9, %v4429_v17 }
 0x250   : > { %v3282_v24 = vpop.eup %3281  ;;  %v1015_v25 = vadd.f32 1.0, %v3280_v16  ;;  %3299 = vpow2.f32 %v963_v0  ;;  %v4552_v26 = vadd.f32 %v4420_v8, %v834_v13  ;;  %v835_v48 = vmul.f32 %v4418_v5, %v735_v22 }
 0x251   : > { %v3284_v32 = vpop.eup %3283  ;;  %v1013_v34 = vadd.f32 1.0, %v3282_v24  ;;  %3301 = vpow2.f32 %v959_v10  ;;  %v915_v38 = vsub.f32 0.0, %v4546_v21  ;;  %v4561_v44 = vadd.f32 %v4420_v8, %v837_v29 }
 0x252   : > { %v3286_v39 = vpop.eup %3285  ;;  %3303 = vrcp.f32 %v1015_v25  ;;  %v1016_v41 = vadd.f32 1.0, %v3284_v32  ;;  %v913_v43 = vsub.f32 0.0, %v4552_v26  ;;  %v4566_v17 = vmul.f32 %v4459_v42, %v4543_v19 }
 0x253   : > { %3305 = vrcp.f32 %v1013_v34  ;;  %v1014_v45 = vadd.f32 1.0, %v3286_v39  ;;  %v969_v47 = vmul.f32 1.442695, %v915_v38  ;;  %v916_v52 = vsub.f32 0.0, %v4561_v44 }
 0x254   : > { %v3288_v49 = vpop.eup %3287  ;;  %3307 = vrcp.f32 %v1016_v41  ;;  %v965_v50 = vmul.f32 1.442695, %v913_v43  ;;  %v3023_v53 = vpop.f32.mrb[20].mxu0  ;;  %v4571_v57 = vmul.f32 %v4459_v42, %v4556_v12  ;;  %v4574_v58 = vadd.f32 %v4420_v8, %v835_v48 }
 0x255   : > { %v3290_v55 = vpop.eup %3289  ;;  %3309 = vrcp.f32 %v1014_v45  ;;  %v840_v60 = vmul.f32 %v3023_v53, %v4418_v5  ;;  %v748_v62 = vpop.f32.mrb[21].mxu0  ;;  %v971_v3 = vmul.f32 1.442695, %v916_v52  ;;  %v4580_v10 = vmul.f32 %v4494_v11, %v4543_v19 }
 0x256   : > { %v3292_v0 = vpop.eup %3291  ;;  %3311 = vpow2.f32 %v969_v47  ;;  %v838_v4 = vmul.f32 %v4418_v5, %v748_v62  ;;  %v3024_v9 = vpop.f32.mrb[22].mxu0  ;;  %v4583_v14 = vmul.f32 %v3288_v49, %v4437_v27  ;;  %v914_v16 = vsub.f32 0.0, %v4574_v58 }
 0x257   : > { %v3294_v13 = vpop.eup %3293  ;;  %3313 = vpow2.f32 %v965_v50  ;;  %v4587_v22 = vadd.f32 %v4420_v8, %v840_v60  ;;  %v751_v24 = vpop.f32.mrb[23].mxu0  ;;  %v4590_v29 = vmul.f32 %v3290_v55, %v4442_v31  ;;  %v841_v34 = vmul.f32 %v3024_v9, %v4418_v5 }
 0x258   : > { %v3296_v25 = vpop.eup %3295  ;;  %3315 = vpow2.f32 %v971_v3  ;;  %v4593_v32 = vadd.f32 %v4420_v8, %v838_v4  ;;  %v4597_v27 = vmul.f32 %v3292_v0, %v4449_v35  ;;  %v839_v43 = vmul.f32 %v4418_v5, %v751_v24 }
 0x259   : > { %v3298_v38 = vpop.eup %3297  ;;  %v1019_v39 = vadd.f32 1.0, %v3296_v25  ;;  %v919_v41 = vsub.f32 0.0, %v4587_v22  ;;  %v4602_v47 = vmul.f32 %v3294_v13, %v4453_v37  ;;  %v4606_v49 = vadd.f32 %v4420_v8, %v841_v34 }
 0x25a   : > { %v3300_v45 = vpop.eup %3299  ;;  %v1017_v31 = vadd.f32 1.0, %v3298_v38  ;;  %v917_v48 = vsub.f32 0.0, %v4593_v32  ;;  %v967_v35 = vmul.f32 1.442695, %v914_v16  ;;  %v4609_v53 = vadd.f32 %v4420_v8, %v839_v43 }
 0x25b   : > { %v3302_v50 = vpop.eup %3301  ;;  %3317 = vrcp.f32 %v1019_v39  ;;  %v1020_v52 = vadd.f32 1.0, %v3300_v45  ;;  %v977_v62 = vmul.f32 1.442695, %v919_v41  ;;  %v920_v37 = vsub.f32 0.0, %v4606_v49 }
 0x25c   : > { %v3304_v55 = vpop.eup %3303  ;;  %3319 = vrcp.f32 %v1017_v31  ;;  %v1018_v60 = vadd.f32 1.0, %v3302_v50  ;;  %v3027_v0 = vpop.f32.mrb[24].mxu0  ;;  %v973_v4 = vmul.f32 1.442695, %v917_v48  ;;  %v918_v9 = vsub.f32 0.0, %v4609_v53 }
 0x25d   : > { %v3306_v3 = vpop.eup %3305  ;;  %3321 = vrcp.f32 %v1020_v52  ;;  %v844_v13 = vmul.f32 %v3027_v0, %v4418_v5  ;;  %v764_v24 = vpop.f32.mrb[25].mxu0  ;;  %v979_v16 = vmul.f32 1.442695, %v920_v37  ;;  %v1299_v39 = vmul.f32 %v4494_v11, %v4556_v12 }
 0x25e   : > { %v3308_v25 = vpop.eup %3307  ;;  %3323 = vrcp.f32 %v1018_v60  ;;  %v842_v34 = vmul.f32 %v4418_v5, %v764_v24  ;;  %v3028_v38 = vpop.f32.mrb[26].mxu0  ;;  %v4618_v43 = vmul.f32 %v3304_v55, %v4470_v56  ;;  %v4621_v45 = vmul.f32 %v3306_v3, %v4477_v61 }
 0x25f   : > { %v3310_v41 = vpop.eup %3309  ;;  %3325 = vpow2.f32 %v967_v35  ;;  %v4624_v31 = vadd.f32 %v4420_v8, %v844_v13  ;;  %v767_v48 = vpop.f32.mrb[27].mxu0  ;;  %v975_v52 = vmul.f32 1.442695, %v918_v9  ;;  %v845_v37 = vmul.f32 %v3028_v38, %v4418_v5 }
 0x260   : > { %6197 = vst [vmem:[#allocation32_spill] sm:$0xff] %v4618_v43  ;;  %v3312_v50 = vpop.eup %3311  ;;  %3327 = vpow2.f32 %v977_v62  ;;  %v4627_v60 = vadd.f32 %v4420_v8, %v842_v34  ;;  %v843_v61 = vmul.f32 %v4418_v5, %v767_v48 }
 0x261   : > { %v3314_v0 = vpop.eup %3313  ;;  %v1023_v24 = vadd.f32 1.0, %v3312_v50  ;;  %3329 = vpow2.f32 %v973_v4  ;;  %v923_v56 = vsub.f32 0.0, %v4624_v31  ;;  %v4634_v62 = vadd.f32 %v4420_v8, %v845_v37 }
 0x262   : > { %v3316_v35 = vpop.eup %3315  ;;  %v1021_v55 = vadd.f32 1.0, %v3314_v0  ;;  %3331 = vpow2.f32 %v979_v16  ;;  %v921_v3 = vsub.f32 0.0, %v4627_v60  ;;  %v4637_v34 = vadd.f32 %v4420_v8, %v843_v61 }
 0x263   : > { %3333 = vrcp.f32 %v1023_v24  ;;  %v1024_v9 = vadd.f32 1.0, %v3316_v35  ;;  %v985_v13 = vmul.f32 1.442695, %v923_v56  ;;  %v4640_v4 = vmul.f32 %v3308_v25, %v4482_v1 }
 0x264   : > { %3335 = vrcp.f32 %v1021_v55  ;;  %v981_v38 = vmul.f32 1.442695, %v921_v3  ;;  %v924_v48 = vsub.f32 0.0, %v4634_v62  ;;  %v3031_v50 = vpop.f32.mrb[28].mxu0  ;;  %v4644_v0 = vmul.f32 %v3310_v41, %v4490_v7 }
 0x265   : > { %6198 = vst [vmem:[#allocation33_spill] sm:$0xff] %v4640_v4  ;;  %v3318_v16 = vpop.eup %3317  ;;  %3337 = vrcp.f32 %v1024_v9  ;;  %v922_v37 = vsub.f32 0.0, %v4637_v34  ;;  %v848_v24 = vmul.f32 %v3031_v50, %v4418_v5  ;;  %v780_v56 = vpop.f32.mrb[29].mxu0  ;;  %v1330_v55 = vadd.f32 %v4580_v10, %v4499_v18 }
 0x266   : > { %v3320_v61 = vpop.eup %3319  ;;  %3339 = vpow2.f32 %v975_v52  ;;  %v987_v35 = vmul.f32 1.442695, %v924_v48  ;;  %v846_v1 = vmul.f32 %v4418_v5, %v780_v56  ;;  %v3032_v25 = vpop.f32.mrb[30].mxu0  ;;  %v1331_v9 = vadd.f32 %v1299_v39, %v4499_v18 }
 0x267   : > { %v3322_v3 = vpop.eup %3321  ;;  %3341 = vpow2.f32 %v985_v13  ;;  %v983_v4 = vmul.f32 1.442695, %v922_v37  ;;  %v4652_v7 = vadd.f32 %v4420_v8, %v848_v24  ;;  %v783_v41 = vpop.f32.mrb[31].mxu0  ;;  %v4656_v43 = vmul.f32 %v3318_v16, %v4510_v30 }
 0x268   : > { %v3324_v50 = vpop.eup %3323  ;;  %3343 = vpow2.f32 %v981_v38  ;;  %v4659_v52 = vadd.f32 %v4420_v8, %v846_v1  ;;  %v849_v48 = vmul.f32 %v3032_v25, %v4418_v5  ;;  %v4663_v13 = vmul.f32 %v3320_v61, %v4517_v40 }
 0x269   : > { %6199 = vst [vmem:[#allocation34_spill] sm:$0xff] %v4656_v43  ;;  %v3326_v10 = vpop.eup %3325  ;;  %3345 = vpow2.f32 %v987_v35  ;;  %v927_v37 = vsub.f32 0.0, %v4652_v7  ;;  %v847_v24 = vmul.f32 %v4418_v5, %v783_v41  ;;  %v4672_v56 = vmul.f32 %v3322_v3, %v4522_v46 }
 0x26a   : > { %6200 = vst [vmem:[#allocation35_spill] sm:$0xff] %v4663_v13  ;;  %v3328_v18 = vpop.eup %3327  ;;  %v1022_v39 = vadd.f32 1.0, %v3326_v10  ;;  %3347 = vpow2.f32 %v983_v4  ;;  %v925_v30 = vsub.f32 0.0, %v4659_v52  ;;  %v4669_v38 = vadd.f32 %v4420_v8, %v849_v48 }
 0x26b   : > { %v3330_v16 = vpop.eup %3329  ;;  %6201 = vst [vmem:[#allocation36_spill] sm:$0xff] %v4672_v56  ;;  %v1027_v1 = vadd.f32 1.0, %v3328_v18  ;;  %v4675_v40 = vadd.f32 %v4420_v8, %v847_v24  ;;  %v1366_v61 = vmul.f32 %v4507_v28, %v4590_v29  ;;  %v993_v4 = vmul.f32 1.442695, %v927_v37 }
 0x26c   : > { %v3332_v35 = vpop.eup %3331  ;;  %3349 = vrcp.f32 %v1022_v39  ;;  %v1025_v25 = vadd.f32 1.0, %v3330_v16  ;;  %v928_v41 = vsub.f32 0.0, %v4669_v38  ;;  %v3035_v10 = vpop.f32.mrb[32].mxu0  ;;  %v989_v13 = vmul.f32 1.442695, %v925_v30 }
 0x26d   : > { %v3334_v48 = vpop.eup %3333  ;;  %3351 = vrcp.f32 %v1027_v1  ;;  %v1028_v43 = vadd.f32 1.0, %v3332_v35  ;;  %v796_v46 = vpop.f32.mrb[33].mxu0  ;;  %v1367_v3 = vmul.f32 %v4507_v28, %v4602_v47  ;;  %v4683_v18 = vmul.f32 %v3324_v50, %v4527_v51 }
 0x26e   : > { %v3336_v24 = vpop.eup %3335  ;;  %3353 = vrcp.f32 %v1025_v25  ;;  %v995_v56 = vmul.f32 1.442695, %v928_v41  ;;  %v850_v39 = vmul.f32 %v4418_v5, %v796_v46  ;;  %v3036_v37 = vpop.f32.mrb[34].mxu0  ;;  %v4687_v10 = vmul.f32 %v3334_v48, %v4546_v21 }
 0x26f   : > { %v3338_v16 = vpop.eup %3337  ;;  %3355 = vrcp.f32 %v1028_v43  ;;  %v926_v30 = vsub.f32 0.0, %v4675_v40  ;;  %v799_v1 = vpop.f32.mrb[35].mxu0  ;;  %v4690_v35 = vadd.f32 %v1366_v61, %v1330_v55  ;;  %v4693_v42 = vmul.f32 %v3336_v24, %v4552_v26 }
 0x270   : > { %v3340_v33 = vpop.eup %3339  ;;  %3357 = vpow2.f32 %v993_v4  ;;  %v4696_v51 = vadd.f32 %v4420_v8, %v850_v39  ;;  %v851_v50 = vmul.f32 %v4418_v5, %v799_v1  ;;  %v4699_v21 = vadd.f32 %v1367_v3, %v1331_v9 }
 0x271   : > { %v3342_v25 = vpop.eup %3341  ;;  %v1026_v41 = vadd.f32 1.0, %v3340_v33  ;;  %3359 = vpow2.f32 %v989_v13  ;;  %v1470_v43 = vmul.f32 %v4467_v54, %v4543_v19  ;;  %v991_v5 = vmul.f32 1.442695, %v926_v30 }
 0x272   : > { %v3344_v55 = vpop.eup %3343  ;;  %v1031_v61 = vadd.f32 1.0, %v3342_v25  ;;  %3361 = vpow2.f32 %v995_v56  ;;  %v929_v26 = vsub.f32 0.0, %v4696_v51  ;;  %v4705_v4 = vadd.f32 %v4420_v8, %v851_v50 }
 0x273   : > { %v3346_v48 = vpop.eup %3345  ;;  %3363 = vrcp.f32 %v1026_v41  ;;  %v1029_v46 = vadd.f32 1.0, %v3344_v55  ;;  %v1471_v33 = vmul.f32 %v4467_v54, %v4556_v12  ;;  %v1502_v56 = vadd.f32 %v1470_v43, %v4503_v23  ;;  %v4720_v43 = vld [vmem:[#allocation11 + $0x8] ss:$0 sm:$0xff] }
 0x274   : > { %v3348_v9 = vpop.eup %3347  ;;  %3365 = vrcp.f32 %v1031_v61  ;;  %v1032_v13 = vadd.f32 1.0, %v3346_v48  ;;  %v930_v3 = vsub.f32 0.0, %v4705_v4  ;;  %v997_v8 = vmul.f32 1.442695, %v929_v26 }
 0x275   : > { %3367 = vrcp.f32 %v1029_v46  ;;  %v1030_v24 = vadd.f32 1.0, %v3348_v9  ;;  %v1538_v39 = vmul.f32 %v4536_v6, %v4590_v29  ;;  %v1503_v1 = vadd.f32 %v1471_v33, %v4503_v23 }
 0x276   : > { %v3350_v37 = vpop.eup %3349  ;;  %3369 = vrcp.f32 %v1032_v13  ;;  %v999_v30 = vmul.f32 1.442695, %v930_v3  ;;  %v1539_v50 = vmul.f32 %v4536_v6, %v4602_v47  ;;  %v4718_v41 = vmul.f32 %v3338_v16, %v4561_v44 }
 0x277   : > { %v3352_v25 = vpop.eup %3351  ;;  %3371 = vrcp.f32 %v1030_v24  ;;  %v4722_v55 = vadd.f32 %v1538_v39, %v1502_v56  ;;  %v1642_v61 = vmul.f32 %v4485_v2, %v4543_v19  ;;  %v1608_v48 = vmul.f32 %v4514_v36, %v4543_v19 }
 0x278   : > { %v3354_v26 = vpop.eup %3353  ;;  %3373 = vpow2.f32 %v991_v5  ;;  %v4727_v23 = vadd.f32 %v1539_v50, %v1503_v1  ;;  %v1643_v44 = vmul.f32 %v4485_v2, %v4556_v12  ;;  %v4735_v46 = vmul.f32 %v3350_v37, %v4574_v58 }
 0x279   : > { %v3356_v16 = vpop.eup %3355  ;;  %v4738_v33 = vmul.f32 %v3352_v25, %v4587_v22  ;;  %3375 = vpow2.f32 %v997_v8  ;;  %v1644_v5 = vmul.f32 %v4485_v2, %v4590_v29  ;;  %v1674_v13 = vadd.f32 %v1642_v61, %v4532_v63 }
 0x27a   : > { %v3358_v9 = vpop.eup %3357  ;;  %3377 = vpow2.f32 %v999_v30  ;;  %v1675_v3 = vadd.f32 %v1643_v44, %v4532_v63  ;;  %v1710_v56 = vmul.f32 %v4720_v43, %v4590_v29  ;;  %v1711_v22 = vmul.f32 %v4720_v43, %v4602_v47 }
 0x27b   : > { %6202 = vst [vmem:[#allocation37_spill] sm:$0xff] %v4738_v33  ;;  %v3360_v24 = vpop.eup %3359  ;;  %v1035_v39 = vadd.f32 1.0, %v3358_v9  ;;  %v1676_v58 = vadd.f32 %v1644_v5, %v1608_v48  ;;  %v1712_v8 = vmul.f32 %v4720_v43, %v4583_v14  ;;  %v6147_v30 = vrot.slane %v4722_v55, 7 }
 0x27c   : > { %v3362_v37 = vpop.eup %3361  ;;  %v1033_v1 = vadd.f32 1.0, %v3360_v24  ;;  %v4750_v50 = vadd.f32 %v1710_v56, %v1674_v13  ;;  %v6149_v63 = vrot.slane %v4727_v23, 7  ;;  %v1743_v44 = vadd.f32 %v1711_v22, %v1675_v3 }
 0x27d   : > { %v3364_v25 = vpop.eup %3363  ;;  %3379 = vrcp.f32 %v1035_v39  ;;  %v1036_v61 = vadd.f32 1.0, %v3362_v37  ;;  %v4754_v9 = vadd.f32 %v1712_v8, %v1676_v58  ;;  %v4757_v5 = vmul.f32 %v3354_v26, %v4593_v32 }
 0x27e   : > { %6203 = vst [vmem:[#allocation38_spill] sm:$0xff] %v4750_v50  ;;  %v3366_v48 = vpop.eup %3365  ;;  %v4760_v33 = vmul.f32 %v3356_v16, %v4606_v49  ;;  %3381 = vrcp.f32 %v1033_v1  ;;  %v1842_v13 = vsel %vm1811_vm0, %v6147_v30, %v6149_v63  ;;  %v4769_v3 = vmul.f32 %v3364_v25, %v4609_v53 }
 0x27f   : > { %v3368_v56 = vpop.eup %3367  ;;  %3383 = vrcp.f32 %v1036_v61  ;;  %v1877_v24 = vadd.f32 %v1842_v13, %v4699_v21  ;;  %v1911_v32 = vrot.slane %v1743_v44, 1  ;;  %v4773_v49 = vmul.f32 %v3366_v48, %v4624_v31 }
 0x280   : > { %v3370_v26 = vpop.eup %3369  ;;  %v4776_v16 = vmul.f32 %v3368_v56, %v4627_v60  ;;  %v6148_v58 = vrot.slane %v4754_v9, 1  ;;  %v1264_v53 = vmul.f32 %v4474_v59, %v4543_v19  ;;  %v1265_v8 = vmul.f32 %v4474_v59, %v4556_v12 }
 0x281   : > { %6204 = vst [vmem:[#allocation39_spill] sm:$0xff] %v4773_v49  ;;  %v3372_v22 = vpop.eup %3371  ;;  %v1300_v21 = vmul.f32 %v4494_v11, %v4590_v29  ;;  %v1301_v31 = vmul.f32 %v4494_v11, %v4602_v47  ;;  %v4789_v60 = vmul.f32 %v3370_v26, %v4634_v62  ;;  %v1368_v19 = vmul.f32 %v4507_v28, %v4583_v14  ;;  %v4802_v62 = vld [vmem:[#allocation12] ss:$0 sm:$0xff] }
 0x282   : > { %6205 = vst [vmem:[#allocation40_spill] sm:$0xff] %v4776_v16  ;;  %v3374_v37 = vpop.eup %3373  ;;  %v1972_v1 = vsel %vm1942_vm1, %v1911_v32, %v6148_v58  ;;  %v1369_v25 = vmul.f32 %v4507_v28, %v4597_v27  ;;  %v1472_v63 = vmul.f32 %v4467_v54, %v4590_v29  ;;  %v1473_v39 = vmul.f32 %v4467_v54, %v4602_v47 }
 0x283   : > { %6206 = vst [vmem:[#allocation41_spill] sm:$0xff] %v4789_v60  ;;  %v3376_v61 = vpop.eup %3375  ;;  %v1034_v44 = vadd.f32 1.0, %v3374_v37  ;;  %v1976_v48 = vsel %vm1909_vm2, %v1972_v1, 0.0  ;;  %v1332_v13 = vadd.f32 %v1300_v21, %v1264_v53  ;;  %v1333_v56 = vadd.f32 %v1301_v31, %v1265_v8  ;;  %v4808_v60 = vld [vmem:[#allocation14] ss:$0 sm:$0xff] }
 0x284   : > { %v3378_v26 = vpop.eup %3377  ;;  %v1037_v30 = vadd.f32 1.0, %v3376_v61  ;;  %v2008_v58 = vadd.f32 %v1976_v48, %v1877_v24  ;;  %v1504_v53 = vadd.f32 %v1472_v63, %v4566_v17  ;;  %v1505_v8 = vadd.f32 %v1473_v39, %v4571_v57 }
 0x285   : > { %3385 = vrcp.f32 %v1034_v44  ;;  %v1038_v37 = vadd.f32 1.0, %v3378_v26  ;;  %v1400_v49 = vadd.f32 %v1368_v19, %v1332_v13  ;;  %v1401_v16 = vadd.f32 %v1369_v25, %v1333_v56 }
 0x286   : > { %3387 = vrcp.f32 %v1037_v30  ;;  %v2047_v1 = vmul.f32 %v4802_v62, %v2008_v58  ;;  %v6207_v21 = vrot.slane %v4750_v50, 1  ;;  %v1540_v61 = vmul.f32 %v4536_v6, %v4583_v14 }
 0x287   : > { %v3380_v24 = vpop.eup %3379  ;;  %3389 = vrcp.f32 %v1038_v37  ;;  %v1541_v30 = vmul.f32 %v4536_v6, %v4597_v27  ;;  %v1609_v17 = vmul.f32 %v4514_v36, %v4556_v12  ;;  %v1610_v57 = vmul.f32 %v4514_v36, %v4590_v29 }
 0x288   : > { %v4817_v31 = vsel %vm1942_vm1, %v6207_v21, %v1911_v32  ;;  %v3382_v19 = vpop.eup %3381  ;;  %v4824_v58 = vadd.f32 %v4808_v60, %v2047_v1  ;;  %v1645_v63 = vmul.f32 %v4485_v2, %v4602_v47  ;;  %v4833_v39 = vmul.f32 %v3372_v22, %v4637_v34 }
 0x289   : > { %v3384_v32 = vpop.eup %3383  ;;  %v1572_v25 = vadd.f32 %v1540_v61, %v1504_v53  ;;  %v4835_v44 = vadd.f32 %v1541_v30, %v1505_v8  ;;  %v1646_v48 = vmul.f32 %v4485_v2, %v4583_v14  ;;  %v4840_v13 = vmul.f32 %v3380_v24, %v4652_v7 }
 0x28a   : > { %v2118_v12 = vsub.f32 0.0, %v4824_v58  ;;  %v1677_v56 = vadd.f32 %v1645_v63, %v1609_v17  ;;  %v1713_v26 = vmul.f32 %v4720_v43, %v4597_v27  ;;  %v1714_v34 = vmul.f32 %v4720_v43, %v4621_v45 }
 0x28b   : > { %v1678_v37 = vadd.f32 %v1646_v48, %v1610_v57  ;;  %v1781_v22 = vrot.slane %v1572_v25, 7  ;;  %v6153_v1 = vrot.slane %v4835_v44, 7  ;;  %v4849_v53 = vmul.f32 %v3384_v32, %v4669_v38 }
 0x28c   : > { %v2151_v8 = vmul.f32 1.442695, %v2118_v12  ;;  %v1745_v21 = vadd.f32 %v1713_v26, %v1677_v56  ;;  %v1266_v7 = vmul.f32 %v4474_v59, %v4590_v29  ;;  %v6209_v30 = vrot.slane %v4727_v23, 7 }
 0x28d   : > { %6208 = vst [vmem:[#allocation42_spill] sm:$0xff] %v4849_v53  ;;  %v4853_v24 = vadd.f32 %v1714_v34, %v1678_v37  ;;  %v1840_v61 = vsel %vm1811_vm0, %v1781_v22, %v6153_v1  ;;  %v1267_v38 = vmul.f32 %v4474_v59, %v4602_v47  ;;  %v1302_v56 = vmul.f32 %v4494_v11, %v4583_v14 }
 0x28e   : > { %v1841_v17 = vsel %vm1811_vm0, %v6209_v30, %v1781_v22  ;;  %3391 = vpow2.f32 %v2151_v8  ;;  %v1879_v63 = vadd.f32 %v1840_v61, %v1401_v16  ;;  %v1913_v32 = vrot.slane %v1745_v21, 1  ;;  %v6211_v21 = vld [vmem:[#allocation30_spill] sm:$0xff] }
 0x28f   : > { %v1846_v57 = vsel %vm1777_vm3, %v1841_v17, 0.0  ;;  %v3386_v25 = vpop.eup %3385  ;;  %v6157_v12 = vrot.slane %v4853_v24, 1  ;;  %v1303_v23 = vmul.f32 %v4494_v11, %v4597_v27  ;;  %v4873_v37 = vmul.f32 %v3382_v19, %v4659_v52 }
 0x290   : > { %v1878_v48 = vadd.f32 %v1846_v57, %v1400_v49  ;;  %v3388_v26 = vpop.eup %3387  ;;  %v6210_v34 = vrot.slane %v4754_v9, 1  ;;  %v1370_v49 = vmul.f32 %v4507_v28, %v4621_v45  ;;  %v1371_v22 = vmul.f32 %v4507_v28, %v4644_v0 }
 0x291   : > { %v3390_v8 = vpop.eup %3389  ;;  %v1465_v61 = vmul.f32 %v6211_v21, %v4849_v53  ;;  %v1970_v52 = vsel %vm1942_vm1, %v1913_v32, %v6157_v12  ;;  %v1334_v9 = vadd.f32 %v1302_v56, %v1266_v7  ;;  %v4890_v30 = vmul.f32 %v3386_v25, %v4675_v40  ;;  %v6216_v12 = vld [vmem:[#allocation32_spill] sm:$0xff] }
 0x292   : > { %v1971_v16 = vsel %vm1942_vm1, %v6210_v34, %v1913_v32  ;;  %v4893_v17 = vmul.f32 %v3390_v8, %v4705_v4  ;;  %v1978_v57 = vsel %vm1909_vm2, %v1970_v52, 0.0  ;;  %v1335_v34 = vadd.f32 %v1303_v23, %v1267_v38  ;;  %v6214_v8 = vld [vmem:[#allocation31_spill] sm:$0xff] }
 0x293   : > { %v2009_v19 = vadd.f32 %v1971_v16, %v1878_v48  ;;  %v4898_v1 = vmul.f32 %v3388_v26, %v4696_v51  ;;  %v2010_v50 = vadd.f32 %v1978_v57, %v1879_v63  ;;  %v1438_v32 = vmul.f32 %v6211_v21, %v4590_v29 }
 0x294   : > { %6212 = vst [vmem:[#allocation30_spill] sm:$0xff] %v4893_v17  ;;  %v1501_v40 = vmul.f32 %v4467_v54, %v4893_v17  ;;  %v1402_v7 = vadd.f32 %v1370_v49, %v1334_v9  ;;  %v1403_v25 = vadd.f32 %v1371_v22, %v1335_v34  ;;  %v1439_v4 = vmul.f32 %v6211_v21, %v4602_v47 }
 0x295   : > { %6213 = vst [vmem:[#allocation43_spill] sm:$0xff] %v4898_v1  ;;  %v2048_v53 = vmul.f32 %v4802_v62, %v2009_v19  ;;  %v2049_v48 = vmul.f32 %v4802_v62, %v2010_v50  ;;  %v1474_v51 = vmul.f32 %v4467_v54, %v4583_v14  ;;  %v1475_v63 = vmul.f32 %v4467_v54, %v4597_v27 }
 0x296   : > { %v1533_v29 = vadd.f32 %v1501_v40, %v1465_v61  ;;  %v1542_v56 = vmul.f32 %v4536_v6, %v4621_v45  ;;  %v1543_v23 = vmul.f32 %v4536_v6, %v4644_v0  ;;  %v1611_v26 = vmul.f32 %v4514_v36, %v4602_v47 }
 0x297   : > { %v4909_v38 = vadd.f32 %v4808_v60, %v2048_v53  ;;  %v4922_v50 = vadd.f32 %v4808_v60, %v2049_v48  ;;  %v1506_v16 = vadd.f32 %v1474_v51, %v1438_v32  ;;  %v1507_v49 = vadd.f32 %v1475_v63, %v1439_v4 }
 0x298   : > { %v3392_v22 = vpop.eup %3391  ;;  %v4926_v52 = vadd.f32 %v6214_v8, %v1533_v29  ;;  %v1612_v61 = vmul.f32 %v4514_v36, %v4583_v14  ;;  %v1647_v19 = vmul.f32 %v4485_v2, %v4597_v27  ;;  %v1648_v47 = vmul.f32 %v4485_v2, %v4621_v45 }
 0x299   : > { %v2119_v53 = vsub.f32 0.0, %v4909_v38  ;;  %v2214_v9 = vadd.f32 1.0, %v3392_v22  ;;  %v2120_v57 = vsub.f32 0.0, %v4922_v50  ;;  %v1574_v40 = vadd.f32 %v1542_v56, %v1506_v16 }
 0x29a   : > { %6215 = vst [vmem:[#allocation44_spill] sm:$0xff] %v4926_v52  ;;  %v6158_v32 = vrot.slane %v4926_v52, 7  ;;  %v4936_v4 = vadd.f32 %v1543_v23, %v1507_v49  ;;  %v1679_v48 = vadd.f32 %v1647_v19, %v1611_v26  ;;  %v1680_v51 = vadd.f32 %v1648_v47, %v1612_v61 }
 0x29b   : > { %v2153_v34 = vmul.f32 1.442695, %v2119_v53  ;;  %3393 = vrcp.f32 %v2214_v9  ;;  %v2155_v63 = vmul.f32 1.442695, %v2120_v57  ;;  %v1715_v29 = vmul.f32 %v4720_v43, %v4644_v0 }
 0x29c   : > { %v1716_v8 = vmul.f32 %v4720_v43, %v6216_v12  ;;  %v6217_v22 = vrot.slane %v4722_v55, 7  ;;  %v1783_v23 = vrot.slane %v1574_v40, 7  ;;  %v1784_v26 = vrot.slane %v4936_v4, 7 }
 0x29d   : > { %3395 = vpow2.f32 %v2153_v34  ;;  %v1747_v16 = vadd.f32 %v1715_v29, %v1679_v48  ;;  %v6218_v19 = vrot.slane %v4835_v44, 7  ;;  %v1268_v9 = vmul.f32 %v4474_v59, %v4583_v14 }
 0x29e   : > { %v1843_v56 = vsel %vm1811_vm0, %v6158_v32, %v6217_v22  ;;  %3397 = vpow2.f32 %v2155_v63  ;;  %v4951_v49 = vadd.f32 %v1716_v8, %v1680_v51  ;;  %v1838_v55 = vsel %vm1811_vm0, %v1783_v23, %v1784_v26 }
 0x29f   : > { %v1844_v53 = vsel %vm1777_vm3, %v1843_v56, 0.0  ;;  %v1839_v47 = vsel %vm1811_vm0, %v6218_v19, %v1783_v23  ;;  %v1881_v8 = vadd.f32 %v1838_v55, %v1403_v25  ;;  %v1915_v34 = vrot.slane %v1747_v16, 1  ;;  %v6220_v55 = vld [vmem:[#allocation33_spill] sm:$0xff] }
 0x2a0   : > { %v1876_v61 = vadd.f32 %v1844_v53, %v4690_v35  ;;  %v1848_v57 = vsel %vm1777_vm3, %v1839_v47, 0.0  ;;  %v1916_v35 = vrot.slane %v4951_v49, 1  ;;  %v1269_v51 = vmul.f32 %v4474_v59, %v4597_v27 }
 0x2a1   : > { %v1880_v48 = vadd.f32 %v1848_v57, %v1402_v7  ;;  %v1304_v44 = vmul.f32 %v4494_v11, %v4621_v45  ;;  %v6219_v29 = vrot.slane %v4853_v24, 1  ;;  %v1372_v7 = vmul.f32 %v4507_v28, %v6216_v12 }
 0x2a2   : > { %v2007_v40 = vadd.f32 %v4817_v31, %v1876_v61  ;;  %v1968_v63 = vsel %vm1942_vm1, %v1915_v34, %v1916_v35  ;;  %v1305_v31 = vmul.f32 %v4494_v11, %v4644_v0  ;;  %v1373_v24 = vmul.f32 %v4507_v28, %v6220_v55 }
 0x2a3   : > { %v1969_v25 = vsel %vm1942_vm1, %v6219_v29, %v1915_v34  ;;  %v1980_v56 = vsel %vm1909_vm2, %v1968_v63, 0.0  ;;  %v1336_v53 = vadd.f32 %v1304_v44, %v1268_v9  ;;  %v1440_v19 = vmul.f32 %v6211_v21, %v4583_v14 }
 0x2a4   : > { %v2046_v22 = vmul.f32 %v4802_v62, %v2007_v40  ;;  %v2011_v23 = vadd.f32 %v1969_v25, %v1880_v48  ;;  %v2012_v16 = vadd.f32 %v1980_v56, %v1881_v8  ;;  %v1337_v61 = vadd.f32 %v1305_v31, %v1269_v51 }
 0x2a5   : > { %v1404_v34 = vadd.f32 %v1372_v7, %v1336_v53  ;;  %v1441_v40 = vmul.f32 %v6211_v21, %v4597_v27  ;;  %v3394_v63 = vpop.eup %3393  ;;  %v1476_v48 = vmul.f32 %v4467_v54, %v4621_v45  ;;  %v1477_v51 = vmul.f32 %v4467_v54, %v4644_v0 }
 0x2a6   : > { %v4992_v47 = vadd.f32 %v4808_v60, %v2046_v22  ;;  %v2050_v57 = vmul.f32 %v4802_v62, %v2011_v23  ;;  %v2051_v9 = vmul.f32 %v4802_v62, %v2012_v16  ;;  %v1405_v8 = vadd.f32 %v1373_v24, %v1337_v61 }
 0x2a7   : > { %v3396_v14 = vpop.eup %3395  ;;  %v5004_v29 = vmul.f32 %v3394_v63, %v4824_v58  ;;  %v1544_v31 = vmul.f32 %v4536_v6, %v6216_v12  ;;  %v1508_v23 = vadd.f32 %v1476_v48, %v1440_v19  ;;  %v1509_v53 = vadd.f32 %v1477_v51, %v1441_v40 }
 0x2a8   : > { %v2117_v44 = vsub.f32 0.0, %v4992_v47  ;;  %v5007_v25 = vadd.f32 %v4808_v60, %v2050_v57  ;;  %v3398_v7 = vpop.eup %3397  ;;  %v2215_v22 = vadd.f32 1.0, %v3396_v14  ;;  %v5012_v56 = vadd.f32 %v4808_v60, %v2051_v9 }
 0x2a9   : > { %v2216_v61 = vadd.f32 1.0, %v3398_v7  ;;  %v1545_v58 = vmul.f32 %v4536_v6, %v6220_v55  ;;  %v1576_v63 = vadd.f32 %v1544_v31, %v1508_v23  ;;  %v1613_v32 = vmul.f32 %v4514_v36, %v4597_v27  ;;  %v6221_v27 = vld [vmem:[#allocation35_spill] sm:$0xff] }
 0x2aa   : > { %v2149_v16 = vmul.f32 1.442695, %v2117_v44  ;;  %v2121_v24 = vsub.f32 0.0, %v5007_v25  ;;  %3399 = vrcp.f32 %v2215_v22  ;;  %v2122_v57 = vsub.f32 0.0, %v5012_v56 }
 0x2ab   : > { %v5020_v9 = vadd.f32 %v1545_v58, %v1509_v53  ;;  %v1614_v19 = vmul.f32 %v4514_v36, %v4621_v45  ;;  %v1649_v48 = vmul.f32 %v4485_v2, %v4644_v0  ;;  %v1650_v51 = vmul.f32 %v4485_v2, %v6216_v12 }
 0x2ac   : > { %3401 = vpow2.f32 %v2149_v16  ;;  %v2157_v14 = vmul.f32 1.442695, %v2121_v24  ;;  %v2159_v40 = vmul.f32 1.442695, %v2122_v57  ;;  %v1717_v44 = vmul.f32 %v4720_v43, %v6220_v55 }
 0x2ad   : > { %3403 = vrcp.f32 %v2216_v61  ;;  %v1718_v31 = vmul.f32 %v4720_v43, %v6221_v27  ;;  %v1785_v7 = vrot.slane %v1576_v63, 7  ;;  %v1681_v22 = vadd.f32 %v1649_v48, %v1613_v32 }
 0x2ae   : > { %3405 = vpow2.f32 %v2157_v14  ;;  %v1682_v23 = vadd.f32 %v1650_v51, %v1614_v19  ;;  %v6159_v53 = vrot.slane %v5020_v9, 7  ;;  %v1270_v61 = vmul.f32 %v4474_v59, %v4621_v45 }
 0x2af   : > { %3407 = vpow2.f32 %v2159_v40  ;;  %v1837_v16 = vsel %vm1811_vm0, %v1784_v26, %v1785_v7  ;;  %v1271_v24 = vmul.f32 %v4474_v59, %v4644_v0  ;;  %v1306_v58 = vmul.f32 %v4494_v11, %v6216_v12 }
 0x2b0   : > { %v1749_v57 = vadd.f32 %v1717_v44, %v1681_v22  ;;  %v5043_v63 = vadd.f32 %v1718_v31, %v1682_v23  ;;  %v1836_v32 = vsel %vm1811_vm0, %v1785_v7, %v6159_v53  ;;  %v1850_v4 = vsel %vm1777_vm3, %v1837_v16, 0.0 }
 0x2b1   : > { %v1882_v26 = vadd.f32 %v1850_v4, %v1404_v34  ;;  %v1883_v14 = vadd.f32 %v1836_v32, %v1405_v8  ;;  %v1307_v19 = vmul.f32 %v4494_v11, %v6220_v55  ;;  %v1338_v40 = vadd.f32 %v1306_v58, %v1270_v61 }
 0x2b2   : > { %v1917_v48 = vrot.slane %v1749_v57, 1  ;;  %v6160_v51 = vrot.slane %v5043_v63, 1  ;;  %v1374_v44 = vmul.f32 %v4507_v28, %v6221_v27  ;;  %v1375_v31 = vmul.f32 %v4507_v28, %v4683_v18 }
 0x2b3   : > { %v1339_v22 = vadd.f32 %v1307_v19, %v1271_v24  ;;  %v1442_v7 = vmul.f32 %v6211_v21, %v4621_v45  ;;  %v1443_v34 = vmul.f32 %v6211_v21, %v4644_v0  ;;  %v1478_v8 = vmul.f32 %v4467_v54, %v6216_v12 }
 0x2b4   : > { %v3400_v23 = vpop.eup %3399  ;;  %v1966_v16 = vsel %vm1942_vm1, %v1917_v48, %v6160_v51  ;;  %v1967_v61 = vsel %vm1942_vm1, %v1916_v35, %v1917_v48  ;;  %v1406_v24 = vadd.f32 %v1374_v44, %v1338_v40  ;;  %v1479_v45 = vmul.f32 %v4467_v54, %v6220_v55 }
 0x2b5   : > { %v5075_v57 = vmul.f32 %v3400_v23, %v4909_v38  ;;  %v1982_v32 = vsel %vm1909_vm2, %v1966_v16, 0.0  ;;  %v2013_v4 = vadd.f32 %v1967_v61, %v1882_v26  ;;  %v1407_v19 = vadd.f32 %v1375_v31, %v1339_v22  ;;  %v6222_v61 = vld [vmem:[#allocation34_spill] sm:$0xff] }
 0x2b6   : > { %v3402_v58 = vpop.eup %3401  ;;  %v2014_v52 = vadd.f32 %v1982_v32, %v1883_v14  ;;  %v1510_v49 = vadd.f32 %v1478_v8, %v1442_v7  ;;  %v1511_v17 = vadd.f32 %v1479_v45, %v1443_v34  ;;  %v1546_v38 = vmul.f32 %v4536_v6, %v6221_v27 }
 0x2b7   : > { %v3404_v53 = vpop.eup %3403  ;;  %v2213_v51 = vadd.f32 1.0, %v3402_v58  ;;  %v2052_v40 = vmul.f32 %v4802_v62, %v2013_v4  ;;  %v1547_v48 = vmul.f32 %v4536_v6, %v4683_v18  ;;  %v1615_v14 = vmul.f32 %v4514_v36, %v4644_v0 }
 0x2b8   : > { %v3406_v1 = vpop.eup %3405  ;;  %v5080_v35 = vmul.f32 %v3404_v53, %v4922_v50  ;;  %v2053_v31 = vmul.f32 %v4802_v62, %v2014_v52  ;;  %v1578_v7 = vadd.f32 %v1546_v38, %v1510_v49  ;;  %v1651_v52 = vmul.f32 %v4485_v2, %v6220_v55 }
 0x2b9   : > { %v3408_v44 = vpop.eup %3407  ;;  %3409 = vrcp.f32 %v2213_v51  ;;  %v2217_v26 = vadd.f32 1.0, %v3406_v1  ;;  %v5093_v22 = vadd.f32 %v4808_v60, %v2052_v40  ;;  %v5098_v8 = vadd.f32 %v1547_v48, %v1511_v17 }
 0x2ba   : > { %v2310_v50 = vpack.c.bf16 %v5080_v35, %v5075_v57  ;;  %v2218_v53 = vadd.f32 1.0, %v3408_v44  ;;  %v5096_v34 = vadd.f32 %v4808_v60, %v2053_v31  ;;  %v1616_v1 = vmul.f32 %v4514_v36, %v6216_v12 }
 0x2bb   : > { %3411 = vrcp.f32 %v2217_v26  ;;  %v2123_v0 = vsub.f32 0.0, %v5093_v22  ;;  %v1652_v51 = vmul.f32 %v4485_v2, %v6221_v27  ;;  %v1719_v16 = vmul.f32 %v4720_v43, %v4683_v18 }
 0x2bc   : > { %3413 = vrcp.f32 %v2218_v53  ;;  %v2124_v23 = vsub.f32 0.0, %v5096_v34  ;;  %v1720_v17 = vmul.f32 %v4720_v43, %v6222_v61  ;;  %v1787_v45 = vrot.slane %v1578_v7, 7 }
 0x2bd   : > { %v2161_v58 = vmul.f32 1.442695, %v2123_v0  ;;  %v1683_v32 = vadd.f32 %v1651_v52, %v1615_v14  ;;  %v1684_v4 = vadd.f32 %v1652_v51, %v1616_v1  ;;  %v6166_v49 = vrot.slane %v5098_v8, 7 }
 0x2be   : > { %v2163_v40 = vmul.f32 1.442695, %v2124_v23  ;;  %v6223_v38 = vrot.slane %v5020_v9, 7  ;;  %v1272_v44 = vmul.f32 %v4474_v59, %v6216_v12  ;;  %v1273_v26 = vmul.f32 %v4474_v59, %v6220_v55 }
 0x2bf   : > { %3415 = vpow2.f32 %v2161_v58  ;;  %v1751_v31 = vadd.f32 %v1719_v16, %v1683_v32  ;;  %v5121_v53 = vadd.f32 %v1720_v17, %v1684_v4  ;;  %v1834_v14 = vsel %vm1811_vm0, %v1787_v45, %v6166_v49  ;;  %v6224_v58 = vld [vmem:[#allocation36_spill] sm:$0xff] }
 0x2c0   : > { %v1835_v48 = vsel %vm1811_vm0, %v6223_v38, %v1787_v45  ;;  %3417 = vpow2.f32 %v2163_v40  ;;  %v1885_v7 = vadd.f32 %v1834_v14, %v1407_v19  ;;  %v1308_v1 = vmul.f32 %v4494_v11, %v6221_v27 }
 0x2c1   : > { %v1852_v9 = vsel %vm1777_vm3, %v1835_v48, 0.0  ;;  %v1919_v52 = vrot.slane %v1751_v31, 1  ;;  %v6165_v51 = vrot.slane %v5121_v53, 1  ;;  %v1309_v23 = vmul.f32 %v4494_v11, %v4683_v18 }
 0x2c2   : > { %v1884_v0 = vadd.f32 %v1852_v9, %v1406_v24  ;;  %v1340_v17 = vadd.f32 %v1308_v1, %v1272_v44  ;;  %v1376_v45 = vmul.f32 %v4507_v28, %v6222_v61  ;;  %v1377_v32 = vmul.f32 %v4507_v28, %v6224_v58 }
 0x2c3   : > { %v3410_v16 = vpop.eup %3409  ;;  %v1444_v19 = vmul.f32 %v6211_v21, %v6216_v12  ;;  %v1964_v24 = vsel %vm1942_vm1, %v1919_v52, %v6165_v51  ;;  %v6225_v40 = vrot.slane %v5043_v63, 1  ;;  %v1341_v48 = vadd.f32 %v1309_v23, %v1273_v26 }
 0x2c4   : > { %v2277_v4 = vmul.f32 %v3410_v16, %v4992_v47  ;;  %v1984_v31 = vsel %vm1909_vm2, %v1964_v24, 0.0  ;;  %v1408_v9 = vadd.f32 %v1376_v45, %v1340_v17  ;;  %v1445_v12 = vmul.f32 %v6211_v21, %v6220_v55 }
 0x2c5   : > { %v1965_v38 = vsel %vm1942_vm1, %v6225_v40, %v1919_v52  ;;  %v3412_v44 = vpop.eup %3411  ;;  %v2016_v51 = vadd.f32 %v1984_v31, %v1885_v7  ;;  %v1409_v63 = vadd.f32 %v1377_v32, %v1341_v48  ;;  %v1480_v52 = vmul.f32 %v4467_v54, %v6221_v27 }
 0x2c6   : > { %v2015_v14 = vadd.f32 %v1965_v38, %v1884_v0  ;;  %v3414_v47 = vpop.eup %3413  ;;  %v2309_v1 = vpack.c.bf16 %v5004_v29, %v2277_v4  ;;  %v2281_v16 = vmul.f32 %v3412_v44, %v5007_v25  ;;  %v1481_v0 = vmul.f32 %v4467_v54, %v4683_v18 }
 0x2c7   : > { %v2282_v49 = vmul.f32 %v3414_v47, %v5012_v56  ;;  %v2055_v23 = vmul.f32 %v4802_v62, %v2016_v51  ;;  %v1548_v29 = vmul.f32 %v4536_v6, %v6222_v61  ;;  %v1549_v25 = vmul.f32 %v4536_v6, %v6224_v58 }
 0x2c8   : > { %v2054_v26 = vmul.f32 %v4802_v62, %v2015_v14  ;;  %3053 = vmatprep.mubr.bf16.mxu1 %v2309_v1  ;;  %v1617_v56 = vmul.f32 %v4514_v36, %v6220_v55  ;;  %v1512_v45 = vadd.f32 %v1480_v52, %v1444_v19  ;;  %v1513_v32 = vadd.f32 %v1481_v0, %v1445_v12 }
 0x2c9   : > { %3054 = vmatmul.mubr.bf16.vlgmr.msra.gmra.mrb[0].mxu1 %v2310_v50  ;;  %v2311_v7 = vpack.c.bf16 %v2282_v49, %v2281_v16  ;;  %v3416_v51 = vpop.eup %3415  ;;  %v5175_v4 = vadd.f32 %v4808_v60, %v2055_v23  ;;  %v1618_v24 = vmul.f32 %v4514_v36, %v6221_v27  ;;  %v1653_v55 = vmul.f32 %v4485_v2, %v4683_v18 }
 0x2ca   : > { %v5172_v17 = vadd.f32 %v4808_v60, %v2054_v26  ;;  %v1654_v57 = vmul.f32 %v4485_v2, %v6222_v61  ;;  %v3418_v35 = vpop.eup %3417  ;;  %v2219_v50 = vadd.f32 1.0, %v3416_v51  ;;  %v1580_v19 = vadd.f32 %v1548_v29, %v1512_v45 }
 0x2cb   : > { %3057 = vmatprep.mubr.bf16.mxu1 %v2311_v7  ;;  %v5184_v40 = vadd.f32 %v1549_v25, %v1513_v32  ;;  %v2220_v38 = vadd.f32 1.0, %v3418_v35  ;;  %v2126_v48 = vsub.f32 0.0, %v5175_v4  ;;  %v1685_v44 = vadd.f32 %v1653_v55, %v1617_v56 }
 0x2cc   : > { %v2125_v49 = vsub.f32 0.0, %v5172_v17  ;;  %v1686_v31 = vadd.f32 %v1654_v57, %v1618_v24  ;;  %3419 = vrcp.f32 %v2219_v50  ;;  %v1721_v12 = vmul.f32 %v4720_v43, %v6224_v58 }
 0x2cd   : > { %v1722_v47 = vmul.f32 %v4720_v43, %v4693_v42  ;;  %3421 = vrcp.f32 %v2220_v38  ;;  %v2167_v1 = vmul.f32 1.442695, %v2126_v48  ;;  %v1789_v16 = vrot.slane %v1580_v19, 7 }
 0x2ce   : > { %v2165_v14 = vmul.f32 1.442695, %v2125_v49  ;;  %v1790_v26 = vrot.slane %v5184_v40, 7  ;;  %v1753_v52 = vadd.f32 %v1721_v12, %v1685_v44  ;;  %v1274_v23 = vmul.f32 %v4474_v59, %v6221_v27 }
 0x2cf   : > { %v5192_v0 = vadd.f32 %v1722_v47, %v1686_v31  ;;  %v6226_v25 = vrot.slane %v5098_v8, 7  ;;  %v1275_v7 = vmul.f32 %v4474_v59, %v4683_v18  ;;  %v1310_v57 = vmul.f32 %v4494_v11, %v6222_v61 }
 0x2d0   : > { %3423 = vpow2.f32 %v2165_v14  ;;  %v1832_v29 = vsel %vm1811_vm0, %v1789_v16, %v1790_v26  ;;  %v1921_v51 = vrot.slane %v1753_v52, 1  ;;  %v1311_v8 = vmul.f32 %v4494_v11, %v6224_v58 }
 0x2d1   : > { %3425 = vpow2.f32 %v2167_v1  ;;  %v1833_v56 = vsel %vm1811_vm0, %v6226_v25, %v1789_v16  ;;  %v1887_v32 = vadd.f32 %v1832_v29, %v1409_v63  ;;  %v1922_v24 = vrot.slane %v5192_v0, 1 }
 0x2d2   : > { %v1854_v45 = vsel %vm1777_vm3, %v1833_v56, 0.0  ;;  %v1378_v35 = vmul.f32 %v4507_v28, %v4693_v42  ;;  %v6227_v63 = vrot.slane %v5121_v53, 1  ;;  %v1446_v19 = vmul.f32 %v6211_v21, %v6221_v27 }
 0x2d3   : > { %v1886_v55 = vadd.f32 %v1854_v45, %v1408_v9  ;;  %v1962_v50 = vsel %vm1942_vm1, %v1921_v51, %v1922_v24  ;;  %v1379_v9 = vmul.f32 %v4507_v28, %v4735_v46  ;;  %v1342_v44 = vadd.f32 %v1310_v57, %v1274_v23 }
 0x2d4   : > { %v1963_v49 = vsel %vm1942_vm1, %v6227_v63, %v1921_v51  ;;  %v1986_v38 = vsel %vm1909_vm2, %v1962_v50, 0.0  ;;  %v1343_v31 = vadd.f32 %v1311_v8, %v1275_v7  ;;  %v1447_v12 = vmul.f32 %v6211_v21, %v4683_v18 }
 0x2d5   : > { %v2017_v48 = vadd.f32 %v1963_v49, %v1886_v55  ;;  %v2018_v14 = vadd.f32 %v1986_v38, %v1887_v32  ;;  %v1482_v53 = vmul.f32 %v4467_v54, %v6222_v61  ;;  %v1483_v47 = vmul.f32 %v4467_v54, %v6224_v58 }
 0x2d6   : > { %v1410_v16 = vadd.f32 %v1378_v35, %v1342_v44  ;;  %v1411_v27 = vadd.f32 %v1379_v9, %v1343_v31  ;;  %v1550_v52 = vmul.f32 %v4536_v6, %v4693_v42  ;;  %v3420_v29 = vpop.eup %3419  ;;  %v1551_v7 = vmul.f32 %v4536_v6, %v4735_v46 }
 0x2d7   : > { %v2056_v1 = vmul.f32 %v4802_v62, %v2017_v48  ;;  %v2057_v23 = vmul.f32 %v4802_v62, %v2018_v14  ;;  %v1514_v25 = vadd.f32 %v1482_v53, %v1446_v19  ;;  %v1515_v56 = vadd.f32 %v1483_v47, %v1447_v12  ;;  %v3422_v45 = vpop.eup %3421 }
 0x2d8   : > { %v2283_v32 = vmul.f32 %v3420_v29, %v5093_v22  ;;  %v1619_v55 = vmul.f32 %v4514_v36, %v4683_v18  ;;  %v1620_v57 = vmul.f32 %v4514_v36, %v6222_v61  ;;  %v2284_v35 = vmul.f32 %v3422_v45, %v5096_v34 }
 0x2d9   : > { %v5243_v51 = vadd.f32 %v4808_v60, %v2056_v1  ;;  %v5251_v50 = vadd.f32 %v4808_v60, %v2057_v23  ;;  %v1582_v63 = vadd.f32 %v1550_v52, %v1514_v25  ;;  %v5253_v49 = vadd.f32 %v1551_v7, %v1515_v56 }
 0x2da   : > { %v3424_v8 = vpop.eup %3423  ;;  %v1655_v38 = vmul.f32 %v4485_v2, %v6224_v58  ;;  %v1656_v18 = vmul.f32 %v4485_v2, %v4693_v42  ;;  %v2312_v48 = vpack.c.bf16 %v2284_v35, %v2283_v32  ;;  %v1723_v31 = vmul.f32 %v4720_v43, %v4735_v46 }
 0x2db   : > { %v3426_v9 = vpop.eup %3425  ;;  %v2221_v22 = vadd.f32 1.0, %v3424_v8  ;;  %v2127_v19 = vsub.f32 0.0, %v5243_v51  ;;  %v2128_v34 = vsub.f32 0.0, %v5251_v50  ;;  %v1724_v1 = vmul.f32 %v4720_v43, %v4687_v10 }
 0x2dc   : > { %v2222_v44 = vadd.f32 1.0, %v3426_v9  ;;  %v1687_v12 = vadd.f32 %v1655_v38, %v1619_v55  ;;  %v1688_v53 = vadd.f32 %v1656_v18, %v1620_v57  ;;  %3058 = vmatmul.mubr.bf16.gmra.mrb[4].mxu1 %v2312_v48  ;;  %v1791_v52 = vrot.slane %v1582_v63, 7 }
 0x2dd   : > { %3427 = vrcp.f32 %v2221_v22  ;;  %v2169_v14 = vmul.f32 1.442695, %v2127_v19  ;;  %v2171_v47 = vmul.f32 1.442695, %v2128_v34  ;;  %v1792_v23 = vrot.slane %v5253_v49, 7 }
 0x2de   : > { %3429 = vrcp.f32 %v2222_v44  ;;  %v1755_v29 = vadd.f32 %v1723_v31, %v1687_v12  ;;  %v1276_v25 = vmul.f32 %v4474_v59, %v6222_v61  ;;  %v5268_v56 = vadd.f32 %v1724_v1, %v1688_v53 }
 0x2df   : > { %3431 = vpow2.f32 %v2169_v14  ;;  %v1831_v7 = vsel %vm1811_vm0, %v1790_v26, %v1791_v52  ;;  %v1277_v45 = vmul.f32 %v4474_v59, %v6224_v58  ;;  %v1830_v32 = vsel %vm1811_vm0, %v1791_v52, %v1792_v23 }
 0x2e0   : > { %3433 = vpow2.f32 %v2171_v47  ;;  %v1856_v55 = vsel %vm1777_vm3, %v1831_v7, 0.0  ;;  %v1923_v57 = vrot.slane %v1755_v29, 1  ;;  %v1312_v8 = vmul.f32 %v4494_v11, %v4693_v42 }
 0x2e1   : > { %v1888_v35 = vadd.f32 %v1856_v55, %v1410_v16  ;;  %v1889_v40 = vadd.f32 %v1830_v32, %v1411_v27  ;;  %v1924_v63 = vrot.slane %v5268_v56, 1  ;;  %v1313_v26 = vmul.f32 %v4494_v11, %v4735_v46 }
 0x2e2   : > { %v1961_v9 = vsel %vm1942_vm1, %v1922_v24, %v1923_v57  ;;  %v1344_v22 = vadd.f32 %v1312_v8, %v1276_v25  ;;  %v1380_v19 = vmul.f32 %v4507_v28, %v4687_v10  ;;  %v1381_v38 = vmul.f32 %v4507_v28, %v4718_v41 }
 0x2e3   : > { %v1960_v16 = vsel %vm1942_vm1, %v1923_v57, %v1924_v63  ;;  %v2019_v27 = vadd.f32 %v1961_v9, %v1888_v35  ;;  %v1345_v18 = vadd.f32 %v1313_v26, %v1277_v45  ;;  %v1448_v0 = vmul.f32 %v6211_v21, %v6222_v61 }
 0x2e4   : > { %v1988_v24 = vsel %vm1909_vm2, %v1960_v16, 0.0  ;;  %v1412_v48 = vadd.f32 %v1380_v19, %v1344_v22  ;;  %v1449_v44 = vmul.f32 %v6211_v21, %v6224_v58  ;;  %v1484_v34 = vmul.f32 %v4467_v54, %v4693_v42 }
 0x2e5   : > { %v2020_v31 = vadd.f32 %v1988_v24, %v1889_v40  ;;  %v2058_v14 = vmul.f32 %v4802_v62, %v2019_v27  ;;  %v1413_v12 = vadd.f32 %v1381_v38, %v1345_v18  ;;  %v1485_v53 = vmul.f32 %v4467_v54, %v4735_v46 }
 0x2e6   : > { %v1516_v1 = vadd.f32 %v1484_v34, %v1448_v0  ;;  %v1552_v61 = vmul.f32 %v4536_v6, %v4687_v10  ;;  %v1553_v52 = vmul.f32 %v4536_v6, %v4718_v41  ;;  %v1621_v29 = vmul.f32 %v4514_v36, %v6224_v58  ;;  %v5337_v34 = vld [vmem:[#allocation11 + $0x8] ss:$0 sm:$0xff] }
 0x2e7   : > { %v3428_v47 = vpop.eup %3427  ;;  %v2059_v45 = vmul.f32 %v4802_v62, %v2020_v31  ;;  %v5319_v32 = vadd.f32 %v4808_v60, %v2058_v14  ;;  %v1517_v55 = vadd.f32 %v1485_v53, %v1449_v44  ;;  %v1622_v40 = vmul.f32 %v4514_v36, %v4693_v42 }
 0x2e8   : > { %v3430_v25 = vpop.eup %3429  ;;  %v2285_v7 = vmul.f32 %v3428_v47, %v5172_v17  ;;  %v1584_v35 = vadd.f32 %v1552_v61, %v1516_v1  ;;  %v1657_v26 = vmul.f32 %v4485_v2, %v4735_v46  ;;  %v1725_v24 = vmul.f32 %v4720_v43, %v4718_v41 }
 0x2e9   : > { %v3432_v57 = vpop.eup %3431  ;;  %v2286_v8 = vmul.f32 %v3430_v25, %v5175_v4  ;;  %v5327_v17 = vadd.f32 %v4808_v60, %v2059_v45  ;;  %v2129_v22 = vsub.f32 0.0, %v5319_v32  ;;  %v5330_v19 = vadd.f32 %v1553_v52, %v1517_v55 }
 0x2ea   : > { %v3434_v58 = vpop.eup %3433  ;;  %v2223_v9 = vadd.f32 1.0, %v3432_v57  ;;  %v1658_v4 = vmul.f32 %v4485_v2, %v4687_v10  ;;  %v1689_v27 = vadd.f32 %v1657_v26, %v1621_v29  ;;  %v1726_v31 = vmul.f32 %v5337_v34, %v4757_v5 }
 0x2eb   : > { %v2313_v38 = vpack.c.bf16 %v2286_v8, %v2285_v7  ;;  %v2224_v16 = vadd.f32 1.0, %v3434_v58  ;;  %v2130_v18 = vsub.f32 0.0, %v5327_v17  ;;  %v2173_v0 = vmul.f32 1.442695, %v2129_v22 }
 0x2ec   : > { %3435 = vrcp.f32 %v2223_v9  ;;  %v1690_v44 = vadd.f32 %v1658_v4, %v1622_v40  ;;  %v1793_v14 = vrot.slane %v1584_v35, 7  ;;  %v1757_v47 = vadd.f32 %v1725_v24, %v1689_v27 }
 0x2ed   : > { %3061 = vmatprep.mubr.bf16.mxu1 %v2313_v38  ;;  %3437 = vrcp.f32 %v2224_v16  ;;  %v2175_v53 = vmul.f32 1.442695, %v2130_v18  ;;  %v1794_v1 = vrot.slane %v5330_v19, 7  ;;  %v1278_v52 = vmul.f32 %v4474_v59, %v4693_v42 }
 0x2ee   : > { %3439 = vpow2.f32 %v2173_v0  ;;  %v5342_v61 = vadd.f32 %v1726_v31, %v1690_v44  ;;  %v1829_v43 = vsel %vm1811_vm0, %v1792_v23, %v1793_v14  ;;  %v1279_v29 = vmul.f32 %v4474_v59, %v4735_v46 }
 0x2ef   : > { %3441 = vpow2.f32 %v2175_v53  ;;  %v1828_v25 = vsel %vm1811_vm0, %v1793_v14, %v1794_v1  ;;  %v1858_v7 = vsel %vm1777_vm3, %v1829_v43, 0.0  ;;  %v1925_v45 = vrot.slane %v1757_v47, 1 }
 0x2f0   : > { %v1890_v49 = vadd.f32 %v1858_v7, %v1412_v48  ;;  %v1891_v55 = vadd.f32 %v1828_v25, %v1413_v12  ;;  %v1926_v23 = vrot.slane %v5342_v61, 1  ;;  %v1314_v57 = vmul.f32 %v4494_v11, %v4687_v10 }
 0x2f1   : > { %v1959_v8 = vsel %vm1942_vm1, %v1924_v63, %v1925_v45  ;;  %v1315_v35 = vmul.f32 %v4494_v11, %v4718_v41  ;;  %v1382_v40 = vmul.f32 %v4507_v28, %v4757_v5  ;;  %v1383_v48 = vmul.f32 %v4507_v28, %v4769_v3 }
 0x2f2   : > { %v1958_v12 = vsel %vm1942_vm1, %v1925_v45, %v1926_v23  ;;  %v2021_v26 = vadd.f32 %v1959_v8, %v1890_v49  ;;  %v1346_v58 = vadd.f32 %v1314_v57, %v1278_v52  ;;  %v1450_v56 = vmul.f32 %v6211_v21, %v4693_v42 }
 0x2f3   : > { %v1990_v63 = vsel %vm1909_vm2, %v1958_v12, 0.0  ;;  %v1347_v9 = vadd.f32 %v1315_v35, %v1279_v29  ;;  %v1451_v22 = vmul.f32 %v6211_v21, %v4735_v46  ;;  %v1486_v38 = vmul.f32 %v4467_v54, %v4687_v10 }
 0x2f4   : > { %v2022_v16 = vadd.f32 %v1990_v63, %v1891_v55  ;;  %v2060_v4 = vmul.f32 %v4802_v62, %v2021_v26  ;;  %v1414_v27 = vadd.f32 %v1382_v40, %v1346_v58  ;;  %v1487_v18 = vmul.f32 %v4467_v54, %v4718_v41 }
 0x2f5   : > { %v1415_v24 = vadd.f32 %v1383_v48, %v1347_v9  ;;  %v1518_v42 = vadd.f32 %v1486_v38, %v1450_v56  ;;  %v1554_v44 = vmul.f32 %v4536_v6, %v4757_v5  ;;  %v1555_v31 = vmul.f32 %v4536_v6, %v4769_v3  ;;  %v6228_v56 = vld [vmem:[#allocation37_spill] sm:$0xff] }
 0x2f6   : > { %v3436_v0 = vpop.eup %3435  ;;  %v2061_v47 = vmul.f32 %v4802_v62, %v2022_v16  ;;  %v5393_v43 = vadd.f32 %v4808_v60, %v2060_v4  ;;  %v1519_v52 = vadd.f32 %v1487_v18, %v1451_v22  ;;  %v1623_v45 = vmul.f32 %v4514_v36, %v4735_v46 }
 0x2f7   : > { %v3438_v14 = vpop.eup %3437  ;;  %v2287_v53 = vmul.f32 %v3436_v0, %v5243_v51  ;;  %v1586_v7 = vadd.f32 %v1554_v44, %v1518_v42  ;;  %v1624_v49 = vmul.f32 %v4514_v36, %v4687_v10  ;;  %v1660_v40 = vmul.f32 %v4485_v2, %v4757_v5 }
 0x2f8   : > { %v3440_v29 = vpop.eup %3439  ;;  %v2288_v25 = vmul.f32 %v3438_v14, %v5251_v50  ;;  %v5401_v57 = vadd.f32 %v4808_v60, %v2061_v47  ;;  %v2131_v62 = vsub.f32 0.0, %v5393_v43  ;;  %v5404_v51 = vadd.f32 %v1555_v31, %v1519_v52 }
 0x2f9   : > { %v2225_v55 = vadd.f32 1.0, %v3440_v29  ;;  %v3442_v8 = vpop.eup %3441  ;;  %v1659_v50 = vmul.f32 %v4485_v2, %v4718_v41  ;;  %v1727_v46 = vmul.f32 %v5337_v34, %v4769_v3  ;;  %v1692_v58 = vadd.f32 %v1660_v40, %v1624_v49  ;;  %v5461_v40 = vld [vmem:[#allocation12] ss:$0 sm:$0xff] }
 0x2fa   : > { %v2314_v35 = vpack.c.bf16 %v2288_v25, %v2287_v53  ;;  %v2226_v48 = vadd.f32 1.0, %v3442_v8  ;;  %v2132_v60 = vsub.f32 0.0, %v5401_v57  ;;  %v2177_v12 = vmul.f32 1.442695, %v2131_v62 }
 0x2fb   : > { %3443 = vrcp.f32 %v2225_v55  ;;  %v1691_v26 = vadd.f32 %v1659_v50, %v1623_v45  ;;  %v1728_v63 = vmul.f32 %v5337_v34, %v6228_v56  ;;  %v1795_v9 = vrot.slane %v1586_v7, 7 }
 0x2fc   : > { %3062 = vmatmul.mubr.bf16.gmra.mrb[8].mxu1 %v2314_v35  ;;  %3445 = vrcp.f32 %v2226_v48  ;;  %v2179_v22 = vmul.f32 1.442695, %v2132_v60  ;;  %v1796_v38 = vrot.slane %v5404_v51, 7  ;;  %v1280_v16 = vmul.f32 %v4474_v59, %v4687_v10 }
 0x2fd   : > { %3447 = vpow2.f32 %v2177_v12  ;;  %v1759_v4 = vadd.f32 %v1727_v46, %v1691_v26  ;;  %v5418_v18 = vadd.f32 %v1728_v63, %v1692_v58  ;;  %v1827_v0 = vsel %vm1811_vm0, %v1794_v1, %v1795_v9 }
 0x2fe   : > { %3449 = vpow2.f32 %v2179_v22  ;;  %v1826_v42 = vsel %vm1811_vm0, %v1795_v9, %v1796_v38  ;;  %v1860_v44 = vsel %vm1777_vm3, %v1827_v0, 0.0  ;;  %v1281_v31 = vmul.f32 %v4474_v59, %v4718_v41 }
 0x2ff   : > { %v1892_v14 = vadd.f32 %v1860_v44, %v1414_v27  ;;  %v1893_v53 = vadd.f32 %v1826_v42, %v1415_v24  ;;  %v1927_v47 = vrot.slane %v1759_v4, 1  ;;  %v1928_v19 = vrot.slane %v5418_v18, 1 }
 0x300   : > { %v1316_v1 = vmul.f32 %v4494_v11, %v4757_v5  ;;  %v1317_v52 = vmul.f32 %v4494_v11, %v4769_v3  ;;  %v1384_v29 = vmul.f32 %v4507_v28, %v6228_v56  ;;  %v1385_v25 = vmul.f32 %v4507_v28, %v4760_v33 }
 0x301   : > { %v1956_v27 = vsel %vm1942_vm1, %v1927_v47, %v1928_v19  ;;  %v1957_v24 = vsel %vm1942_vm1, %v1926_v23, %v1927_v47  ;;  %v1452_v7 = vmul.f32 %v6211_v21, %v4687_v10  ;;  %v1453_v45 = vmul.f32 %v6211_v21, %v4718_v41 }
 0x302   : > { %v1992_v49 = vsel %vm1909_vm2, %v1956_v27, 0.0  ;;  %v2023_v55 = vadd.f32 %v1957_v24, %v1892_v14  ;;  %v1348_v62 = vadd.f32 %v1316_v1, %v1280_v16  ;;  %v1349_v8 = vadd.f32 %v1317_v52, %v1281_v31  ;;  %v5468_v16 = vld [vmem:[#allocation14] ss:$0 sm:$0xff] }
 0x303   : > { %v2024_v35 = vadd.f32 %v1992_v49, %v1893_v53  ;;  %v1488_v50 = vmul.f32 %v4467_v54, %v4757_v5  ;;  %v1489_v61 = vmul.f32 %v4467_v54, %v4769_v3  ;;  %v1556_v23 = vmul.f32 %v4536_v6, %v6228_v56 }
 0x304   : > { %v2062_v46 = vmul.f32 %v5461_v40, %v2023_v55  ;;  %v1416_v48 = vadd.f32 %v1384_v29, %v1348_v62  ;;  %v1417_v60 = vadd.f32 %v1385_v25, %v1349_v8  ;;  %v1557_v12 = vmul.f32 %v4536_v6, %v4760_v33  ;;  %v6229_v55 = vld [vmem:[#allocation40_spill] sm:$0xff] }
 0x305   : > { %v3444_v10 = vpop.eup %3443  ;;  %v2063_v58 = vmul.f32 %v5461_v40, %v2024_v35  ;;  %v1520_v63 = vadd.f32 %v1488_v50, %v1452_v7  ;;  %v1521_v9 = vadd.f32 %v1489_v61, %v1453_v45  ;;  %v1625_v0 = vmul.f32 %v4514_v36, %v4718_v41 }
 0x306   : > { %v2289_v26 = vmul.f32 %v3444_v10, %v5319_v32  ;;  %v3446_v22 = vpop.eup %3445  ;;  %v5471_v4 = vadd.f32 %v5468_v16, %v2062_v46  ;;  %v1626_v42 = vmul.f32 %v4514_v36, %v4757_v5  ;;  %v1661_v44 = vmul.f32 %v4485_v2, %v4769_v3 }
 0x307   : > { %v3448_v32 = vpop.eup %3447  ;;  %v2290_v31 = vmul.f32 %v3446_v22, %v5327_v17  ;;  %v5481_v14 = vadd.f32 %v5468_v16, %v2063_v58  ;;  %v1588_v53 = vadd.f32 %v1556_v23, %v1520_v63  ;;  %v5483_v47 = vadd.f32 %v1557_v12, %v1521_v9 }
 0x308   : > { %v3450_v1 = vpop.eup %3449  ;;  %v2227_v52 = vadd.f32 1.0, %v3448_v32  ;;  %v2133_v29 = vsub.f32 0.0, %v5471_v4  ;;  %v1662_v41 = vmul.f32 %v4485_v2, %v6228_v56  ;;  %v1693_v25 = vadd.f32 %v1661_v44, %v1625_v0 }
 0x309   : > { %v2315_v27 = vpack.c.bf16 %v2290_v31, %v2289_v26  ;;  %v2228_v24 = vadd.f32 1.0, %v3450_v1  ;;  %v2134_v7 = vsub.f32 0.0, %v5481_v14  ;;  %v1729_v17 = vmul.f32 %v5337_v34, %v4760_v33 }
 0x30a   : > { %3451 = vrcp.f32 %v2227_v52  ;;  %v2181_v45 = vmul.f32 1.442695, %v2133_v29  ;;  %v1694_v49 = vadd.f32 %v1662_v41, %v1626_v42  ;;  %v1730_v62 = vmul.f32 %v5337_v34, %v6229_v55 }
 0x30b   : > { %3065 = vmatprep.mubr.bf16.mxu1 %v2315_v27  ;;  %3453 = vrcp.f32 %v2228_v24  ;;  %v2183_v8 = vmul.f32 1.442695, %v2134_v7  ;;  %v1761_v35 = vadd.f32 %v1729_v17, %v1693_v25  ;;  %v1797_v50 = vrot.slane %v1588_v53, 7 }
 0x30c   : > { %3455 = vpow2.f32 %v2181_v45  ;;  %v5493_v61 = vadd.f32 %v1730_v62, %v1694_v49  ;;  %v1798_v23 = vrot.slane %v5483_v47, 7  ;;  %v1282_v10 = vmul.f32 %v4474_v59, %v4757_v5 }
 0x30d   : > { %3457 = vpow2.f32 %v2183_v8  ;;  %v1825_v46 = vsel %vm1811_vm0, %v1796_v38, %v1797_v50  ;;  %v1929_v12 = vrot.slane %v1761_v35, 1  ;;  %v1283_v26 = vmul.f32 %v4474_v59, %v4769_v3 }
 0x30e   : > { %v1824_v58 = vsel %vm1811_vm0, %v1797_v50, %v1798_v23  ;;  %v1862_v63 = vsel %vm1777_vm3, %v1825_v46, 0.0  ;;  %v1930_v9 = vrot.slane %v5493_v61, 1  ;;  %v1318_v51 = vmul.f32 %v4494_v11, %v6228_v56 }
 0x30f   : > { %v1894_v22 = vadd.f32 %v1862_v63, %v1416_v48  ;;  %v1895_v0 = vadd.f32 %v1824_v58, %v1417_v60  ;;  %v1955_v38 = vsel %vm1942_vm1, %v1928_v19, %v1929_v12  ;;  %v1319_v42 = vmul.f32 %v4494_v11, %v4760_v33 }
 0x310   : > { %v1954_v44 = vsel %vm1942_vm1, %v1929_v12, %v1930_v9  ;;  %v1350_v32 = vadd.f32 %v1318_v51, %v1282_v10  ;;  %v1386_v31 = vmul.f32 %v4507_v28, %v6229_v55  ;;  %v1387_v48 = vmul.f32 %v4507_v28, %v4833_v39 }
 0x311   : > { %v1994_v18 = vsel %vm1909_vm2, %v1954_v44, 0.0  ;;  %v2025_v60 = vadd.f32 %v1955_v38, %v1894_v22  ;;  %v1351_v19 = vadd.f32 %v1319_v42, %v1283_v26  ;;  %v1454_v53 = vmul.f32 %v6211_v21, %v4757_v5 }
 0x312   : > { %v2026_v1 = vadd.f32 %v1994_v18, %v1895_v0  ;;  %v1418_v52 = vadd.f32 %v1386_v31, %v1350_v32  ;;  %v1455_v29 = vmul.f32 %v6211_v21, %v4769_v3  ;;  %v1490_v41 = vmul.f32 %v4467_v54, %v6228_v56 }
 0x313   : > { %v2064_v25 = vmul.f32 %v5461_v40, %v2025_v60  ;;  %v1419_v27 = vadd.f32 %v1387_v48, %v1351_v19  ;;  %v1491_v24 = vmul.f32 %v4467_v54, %v4760_v33  ;;  %v1558_v7 = vmul.f32 %v4536_v6, %v6229_v55  ;;  %v6230_v19 = vld [vmem:[#allocation39_spill] sm:$0xff] }
 0x314   : > { %v3452_v17 = vpop.eup %3451  ;;  %v2065_v5 = vmul.f32 %v5461_v40, %v2026_v1  ;;  %v1522_v45 = vadd.f32 %v1490_v41, %v1454_v53  ;;  %v1559_v49 = vmul.f32 %v4536_v6, %v4833_v39  ;;  %v1627_v62 = vmul.f32 %v4514_v36, %v4769_v3 }
 0x315   : > { %v3454_v8 = vpop.eup %3453  ;;  %v2291_v35 = vmul.f32 %v3452_v17, %v5393_v43  ;;  %v5547_v50 = vadd.f32 %v5468_v16, %v2064_v25  ;;  %v1523_v10 = vadd.f32 %v1491_v24, %v1455_v29  ;;  %v1628_v46 = vmul.f32 %v4514_v36, %v6228_v56 }
 0x316   : > { %v3456_v12 = vpop.eup %3455  ;;  %v2292_v26 = vmul.f32 %v3454_v8, %v5401_v57  ;;  %v5553_v58 = vadd.f32 %v5468_v16, %v2065_v5  ;;  %v1590_v63 = vadd.f32 %v1558_v7, %v1522_v45  ;;  %v1663_v3 = vmul.f32 %v4485_v2, %v4760_v33 }
 0x317   : > { %v3458_v51 = vpop.eup %3457  ;;  %v2229_v22 = vadd.f32 1.0, %v3456_v12  ;;  %v2135_v43 = vsub.f32 0.0, %v5547_v50  ;;  %v5558_v0 = vadd.f32 %v1559_v49, %v1523_v10  ;;  %v1664_v38 = vmul.f32 %v4485_v2, %v6229_v55 }
 0x318   : > { %v2316_v42 = vpack.c.bf16 %v2292_v26, %v2291_v35  ;;  %v2230_v44 = vadd.f32 1.0, %v3458_v51  ;;  %v2136_v57 = vsub.f32 0.0, %v5553_v58  ;;  %v1695_v32 = vadd.f32 %v1663_v3, %v1627_v62  ;;  %v6231_v26 = vld [vmem:[#allocation41_spill] sm:$0xff] }
 0x319   : > { %3459 = vrcp.f32 %v2229_v22  ;;  %v2185_v31 = vmul.f32 1.442695, %v2135_v43  ;;  %v1696_v48 = vadd.f32 %v1664_v38, %v1628_v46  ;;  %v1731_v18 = vmul.f32 %v5337_v34, %v4833_v39 }
 0x31a   : > { %3066 = vmatmul.mubr.bf16.gmra.mrb[12].mxu1 %v2316_v42  ;;  %3461 = vrcp.f32 %v2230_v44  ;;  %v2187_v60 = vmul.f32 1.442695, %v2136_v57  ;;  %v1732_v53 = vmul.f32 %v5337_v34, %v6230_v19  ;;  %v1799_v1 = vrot.slane %v1590_v63, 7 }
 0x31b   : > { %3463 = vpow2.f32 %v2185_v31  ;;  %v1763_v29 = vadd.f32 %v1731_v18, %v1695_v32  ;;  %v1800_v41 = vrot.slane %v5558_v0, 7  ;;  %v1284_v25 = vmul.f32 %v4474_v59, %v6228_v56 }
 0x31c   : > { %3465 = vpow2.f32 %v2187_v60  ;;  %v5570_v24 = vadd.f32 %v1732_v53, %v1696_v48  ;;  %v1823_v7 = vsel %vm1811_vm0, %v1798_v23, %v1799_v1  ;;  %v1285_v17 = vmul.f32 %v4474_v59, %v4760_v33 }
 0x31d   : > { %v1822_v5 = vsel %vm1811_vm0, %v1799_v1, %v1800_v41  ;;  %v1864_v45 = vsel %vm1777_vm3, %v1823_v7, 0.0  ;;  %v1931_v49 = vrot.slane %v1763_v29, 1  ;;  %v1320_v62 = vmul.f32 %v4494_v11, %v6229_v55 }
 0x31e   : > { %v1896_v8 = vadd.f32 %v1864_v45, %v1418_v52  ;;  %v1897_v47 = vadd.f32 %v1822_v5, %v1419_v27  ;;  %v1932_v35 = vrot.slane %v5570_v24, 1  ;;  %v1321_v23 = vmul.f32 %v4494_v11, %v4833_v39 }
 0x31f   : > { %v1953_v10 = vsel %vm1942_vm1, %v1930_v9, %v1931_v49  ;;  %v1352_v46 = vadd.f32 %v1320_v62, %v1284_v25  ;;  %v1388_v12 = vmul.f32 %v4507_v28, %v6230_v19  ;;  %v1389_v63 = vmul.f32 %v4507_v28, %v6231_v26 }
 0x320   : > { %v1952_v52 = vsel %vm1942_vm1, %v1931_v49, %v1932_v35  ;;  %v2027_v27 = vadd.f32 %v1953_v10, %v1896_v8  ;;  %v1353_v3 = vadd.f32 %v1321_v23, %v1285_v17  ;;  %v1456_v61 = vmul.f32 %v6211_v21, %v6228_v56 }
 0x321   : > { %v1996_v9 = vsel %vm1909_vm2, %v1952_v52, 0.0  ;;  %v1420_v51 = vadd.f32 %v1388_v12, %v1352_v46  ;;  %v1457_v22 = vmul.f32 %v6211_v21, %v4760_v33  ;;  %v1492_v43 = vmul.f32 %v4467_v54, %v6229_v55 }
 0x322   : > { %v2028_v38 = vadd.f32 %v1996_v9, %v1897_v47  ;;  %v2066_v42 = vmul.f32 %v5461_v40, %v2027_v27  ;;  %v1421_v44 = vadd.f32 %v1389_v63, %v1353_v3  ;;  %v1493_v57 = vmul.f32 %v4467_v54, %v4833_v39 }
 0x323   : > { %v3460_v32 = vpop.eup %3459  ;;  %v1524_v31 = vadd.f32 %v1492_v43, %v1456_v61  ;;  %v1560_v56 = vmul.f32 %v4536_v6, %v6230_v19  ;;  %v1561_v48 = vmul.f32 %v4536_v6, %v6231_v26  ;;  %v1629_v18 = vmul.f32 %v4514_v36, %v4760_v33 }
 0x324   : > { %v3462_v60 = vpop.eup %3461  ;;  %v2293_v53 = vmul.f32 %v3460_v32, %v5471_v4  ;;  %v2067_v1 = vmul.f32 %v5461_v40, %v2028_v38  ;;  %v5621_v29 = vadd.f32 %v5468_v16, %v2066_v42  ;;  %v1525_v25 = vadd.f32 %v1493_v57, %v1457_v22 }
 0x325   : > { %v3464_v7 = vpop.eup %3463  ;;  %v2294_v17 = vmul.f32 %v3462_v60, %v5481_v14  ;;  %v1592_v5 = vadd.f32 %v1560_v56, %v1524_v31  ;;  %v1630_v45 = vmul.f32 %v4514_v36, %v6229_v55  ;;  %v1665_v49 = vmul.f32 %v4485_v2, %v4833_v39 }
 0x326   : > { %v3466_v33 = vpop.eup %3465  ;;  %v2231_v62 = vadd.f32 1.0, %v3464_v7  ;;  %v5629_v4 = vadd.f32 %v5468_v16, %v2067_v1  ;;  %v2137_v8 = vsub.f32 0.0, %v5621_v29  ;;  %v5632_v47 = vadd.f32 %v1561_v48, %v1525_v25 }
 0x327   : > { %v2317_v23 = vpack.c.bf16 %v2294_v17, %v2293_v53  ;;  %v2232_v10 = vadd.f32 1.0, %v3466_v33  ;;  %v1666_v14 = vmul.f32 %v4485_v2, %v6230_v19  ;;  %v1697_v46 = vadd.f32 %v1665_v49, %v1629_v18 }
 0x328   : > { %3467 = vrcp.f32 %v2231_v62  ;;  %v2138_v12 = vsub.f32 0.0, %v5629_v4  ;;  %v2189_v63 = vmul.f32 1.442695, %v2137_v8  ;;  %v1733_v52 = vmul.f32 %v5337_v34, %v6231_v26 }
 0x329   : > { %3069 = vmatprep.mubr.bf16.mxu1 %v2317_v23  ;;  %3469 = vrcp.f32 %v2232_v10  ;;  %v1698_v27 = vadd.f32 %v1666_v14, %v1630_v45  ;;  %v1734_v3 = vmul.f32 %v5337_v34, %v4873_v37  ;;  %v1801_v61 = vrot.slane %v1592_v5, 7 }
 0x32a   : > { %3471 = vpow2.f32 %v2189_v63  ;;  %v2191_v9 = vmul.f32 1.442695, %v2138_v12  ;;  %v1765_v22 = vadd.f32 %v1733_v52, %v1697_v46  ;;  %v1802_v43 = vrot.slane %v5632_v47, 7 }
 0x32b   : > { %v5642_v38 = vadd.f32 %v1734_v3, %v1698_v27  ;;  %v1821_v42 = vsel %vm1811_vm0, %v1800_v41, %v1801_v61  ;;  %v1286_v57 = vmul.f32 %v4474_v59, %v6229_v55  ;;  %v1287_v32 = vmul.f32 %v4474_v59, %v4833_v39 }
 0x32c   : > { %3473 = vpow2.f32 %v2191_v9  ;;  %v1820_v31 = vsel %vm1811_vm0, %v1801_v61, %v1802_v43  ;;  %v1866_v56 = vsel %vm1777_vm3, %v1821_v42, 0.0  ;;  %v1933_v48 = vrot.slane %v1765_v22, 1 }
 0x32d   : > { %v1898_v0 = vadd.f32 %v1866_v56, %v1420_v51  ;;  %v1899_v18 = vadd.f32 %v1820_v31, %v1421_v44  ;;  %v1934_v41 = vrot.slane %v5642_v38, 1  ;;  %v1322_v60 = vmul.f32 %v4494_v11, %v6230_v19 }
 0x32e   : > { %v1951_v53 = vsel %vm1942_vm1, %v1932_v35, %v1933_v48  ;;  %v1323_v1 = vmul.f32 %v4494_v11, %v6231_v26  ;;  %v1390_v25 = vmul.f32 %v4507_v28, %v4873_v37  ;;  %v1391_v51 = vmul.f32 %v4507_v28, %v4890_v30 }
 0x32f   : > { %v1950_v44 = vsel %vm1942_vm1, %v1933_v48, %v1934_v41  ;;  %v2029_v7 = vadd.f32 %v1951_v53, %v1898_v0  ;;  %v1354_v17 = vadd.f32 %v1322_v60, %v1286_v57  ;;  %v1458_v24 = vmul.f32 %v6211_v21, %v6229_v55 }
 0x330   : > { %v1998_v35 = vsel %vm1909_vm2, %v1950_v44, 0.0  ;;  %v1355_v5 = vadd.f32 %v1323_v1, %v1287_v32  ;;  %v1459_v45 = vmul.f32 %v6211_v21, %v4833_v39  ;;  %v1494_v49 = vmul.f32 %v4467_v54, %v6230_v19 }
 0x331   : > { %v2030_v33 = vadd.f32 %v1998_v35, %v1899_v18  ;;  %v2068_v62 = vmul.f32 %v5461_v40, %v2029_v7  ;;  %v1422_v8 = vadd.f32 %v1390_v25, %v1354_v17  ;;  %v1495_v23 = vmul.f32 %v4467_v54, %v6231_v26 }
 0x332   : > { %v3468_v10 = vpop.eup %3467  ;;  %v1423_v14 = vadd.f32 %v1391_v51, %v1355_v5  ;;  %v1526_v55 = vadd.f32 %v1494_v49, %v1458_v24  ;;  %v1562_v46 = vmul.f32 %v4536_v6, %v4873_v37  ;;  %v1563_v12 = vmul.f32 %v4536_v6, %v4890_v30 }
 0x333   : > { %v3470_v63 = vpop.eup %3469  ;;  %v2295_v52 = vmul.f32 %v3468_v10, %v5547_v50  ;;  %v2069_v27 = vmul.f32 %v5461_v40, %v2030_v33  ;;  %v5693_v3 = vadd.f32 %v5468_v16, %v2068_v62  ;;  %v1527_v61 = vadd.f32 %v1495_v23, %v1459_v45 }
 0x334   : > { %v3472_v9 = vpop.eup %3471  ;;  %v2296_v22 = vmul.f32 %v3470_v63, %v5553_v58  ;;  %v1594_v42 = vadd.f32 %v1562_v46, %v1526_v55  ;;  %v1631_v57 = vmul.f32 %v4514_v36, %v4833_v39  ;;  %v1632_v32 = vmul.f32 %v4514_v36, %v6230_v19 }
 0x335   : > { %v2233_v31 = vadd.f32 1.0, %v3472_v9  ;;  %v5701_v56 = vadd.f32 %v5468_v16, %v2069_v27  ;;  %v2139_v50 = vsub.f32 0.0, %v5693_v3  ;;  %v5704_v48 = vadd.f32 %v1563_v12, %v1527_v61  ;;  %v6232_v27 = vld [vmem:[#allocation42_spill] sm:$0xff] }
 0x336   : > { %v3474_v0 = vpop.eup %3473  ;;  %v2318_v18 = vpack.c.bf16 %v2296_v22, %v2295_v52  ;;  %v1667_v58 = vmul.f32 %v4485_v2, %v6231_v26  ;;  %v1668_v60 = vmul.f32 %v4485_v2, %v4873_v37  ;;  %v1735_v39 = vmul.f32 %v5337_v34, %v4890_v30 }
 0x337   : > { %v2234_v53 = vadd.f32 1.0, %v3474_v0  ;;  %3475 = vrcp.f32 %v2233_v31  ;;  %v2140_v1 = vsub.f32 0.0, %v5701_v56  ;;  %v2193_v25 = vmul.f32 1.442695, %v2139_v50 }
 0x338   : > { %3070 = vmatmul.mubr.bf16.gmra.mrb[16].mxu1 %v2318_v18  ;;  %v1699_v51 = vadd.f32 %v1667_v58, %v1631_v57  ;;  %v1700_v44 = vadd.f32 %v1668_v60, %v1632_v32  ;;  %v1736_v7 = vmul.f32 %v5337_v34, %v4840_v13  ;;  %v1803_v17 = vrot.slane %v1594_v42, 7 }
 0x339   : > { %3477 = vrcp.f32 %v2234_v53  ;;  %v2195_v24 = vmul.f32 1.442695, %v2140_v1  ;;  %v1804_v35 = vrot.slane %v5704_v48, 7  ;;  %v1288_v5 = vmul.f32 %v4474_v59, %v6230_v19 }
 0x33a   : > { %3479 = vpow2.f32 %v2193_v25  ;;  %v1767_v45 = vadd.f32 %v1735_v39, %v1699_v51  ;;  %v5718_v49 = vadd.f32 %v1736_v7, %v1700_v44  ;;  %v1819_v33 = vsel %vm1811_vm0, %v1802_v43, %v1803_v17 }
 0x33b   : > { %3481 = vpow2.f32 %v2195_v24  ;;  %v1818_v62 = vsel %vm1811_vm0, %v1803_v17, %v1804_v35  ;;  %v1868_v23 = vsel %vm1777_vm3, %v1819_v33, 0.0  ;;  %v1289_v10 = vmul.f32 %v4474_v59, %v6231_v26 }
 0x33c   : > { %v1900_v55 = vadd.f32 %v1868_v23, %v1422_v8  ;;  %v1901_v46 = vadd.f32 %v1818_v62, %v1423_v14  ;;  %v1935_v12 = vrot.slane %v1767_v45, 1  ;;  %v1936_v47 = vrot.slane %v5718_v49, 1 }
 0x33d   : > { %v1324_v43 = vmul.f32 %v4494_v11, %v4873_v37  ;;  %v1325_v63 = vmul.f32 %v4494_v11, %v4890_v30  ;;  %v1392_v52 = vmul.f32 %v4507_v28, %v4840_v13  ;;  %v1393_v61 = vmul.f32 %v4507_v28, %v6232_v27 }
 0x33e   : > { %v1948_v8 = vsel %vm1942_vm1, %v1935_v12, %v1936_v47  ;;  %v1949_v14 = vsel %vm1942_vm1, %v1934_v41, %v1935_v12  ;;  %v1460_v9 = vmul.f32 %v6211_v21, %v6230_v19  ;;  %v1461_v22 = vmul.f32 %v6211_v21, %v6231_v26 }
 0x33f   : > { %v2000_v42 = vsel %vm1909_vm2, %v1948_v8, 0.0  ;;  %v2031_v57 = vadd.f32 %v1949_v14, %v1900_v55  ;;  %v1356_v32 = vadd.f32 %v1324_v43, %v1288_v5  ;;  %v1357_v31 = vadd.f32 %v1325_v63, %v1289_v10  ;;  %v6233_v14 = vld [vmem:[#allocation43_spill] sm:$0xff] }
 0x340   : > { %v2032_v50 = vadd.f32 %v2000_v42, %v1901_v46  ;;  %v1496_v0 = vmul.f32 %v4467_v54, %v4873_v37  ;;  %v1497_v38 = vmul.f32 %v4467_v54, %v4890_v30  ;;  %v1564_v41 = vmul.f32 %v4536_v6, %v4840_v13 }
 0x341   : > { %v3476_v19 = vpop.eup %3475  ;;  %v2070_v18 = vmul.f32 %v5461_v40, %v2031_v57  ;;  %v1424_v58 = vadd.f32 %v1392_v52, %v1356_v32  ;;  %v1425_v60 = vadd.f32 %v1393_v61, %v1357_v31  ;;  %v1565_v39 = vmul.f32 %v4536_v6, %v6232_v27 }
 0x342   : > { %v2297_v53 = vmul.f32 %v3476_v19, %v5621_v29  ;;  %v2071_v1 = vmul.f32 %v5461_v40, %v2032_v50  ;;  %v1528_v25 = vadd.f32 %v1496_v0, %v1460_v9  ;;  %v1529_v51 = vadd.f32 %v1497_v38, %v1461_v22 }
 0x343   : > { %v3478_v44 = vpop.eup %3477  ;;  %v5767_v7 = vadd.f32 %v5468_v16, %v2070_v18  ;;  %v1633_v17 = vmul.f32 %v4514_v36, %v6231_v26  ;;  %v1634_v24 = vmul.f32 %v4514_v36, %v4873_v37  ;;  %v1669_v5 = vmul.f32 %v4485_v2, %v4890_v30 }
 0x344   : > { %v3480_v45 = vpop.eup %3479  ;;  %v2298_v29 = vmul.f32 %v3478_v44, %v5629_v4  ;;  %v5777_v33 = vadd.f32 %v5468_v16, %v2071_v1  ;;  %v1596_v62 = vadd.f32 %v1564_v41, %v1528_v25  ;;  %v5779_v23 = vadd.f32 %v1565_v39, %v1529_v51 }
 0x345   : > { %v3482_v10 = vpop.eup %3481  ;;  %v2235_v55 = vadd.f32 1.0, %v3480_v45  ;;  %v2141_v46 = vsub.f32 0.0, %v5767_v7  ;;  %v1670_v26 = vmul.f32 %v4485_v2, %v4840_v13  ;;  %v1701_v12 = vadd.f32 %v1669_v5, %v1633_v17 }
 0x346   : > { %v2319_v43 = vpack.c.bf16 %v2298_v29, %v2297_v53  ;;  %v2236_v63 = vadd.f32 1.0, %v3482_v10  ;;  %v2142_v52 = vsub.f32 0.0, %v5777_v33  ;;  %v1737_v4 = vmul.f32 %v5337_v34, %v6232_v27 }
 0x347   : > { %3483 = vrcp.f32 %v2235_v55  ;;  %v2197_v61 = vmul.f32 1.442695, %v2141_v46  ;;  %v1702_v8 = vadd.f32 %v1670_v26, %v1634_v24  ;;  %v1738_v9 = vmul.f32 %v5337_v34, %v6233_v14 }
 0x348   : > { %3073 = vmatprep.mubr.bf16.mxu1 %v2319_v43  ;;  %3485 = vrcp.f32 %v2236_v63  ;;  %v2199_v22 = vmul.f32 1.442695, %v2142_v52  ;;  %v1769_v42 = vadd.f32 %v1737_v4, %v1701_v12  ;;  %v1805_v57 = vrot.slane %v1596_v62, 7 }
 0x349   : > { %3487 = vpow2.f32 %v2197_v61  ;;  %v5789_v32 = vadd.f32 %v1738_v9, %v1702_v8  ;;  %v1806_v31 = vrot.slane %v5779_v23, 7  ;;  %v1290_v50 = vmul.f32 %v4474_v59, %v4873_v37 }
 0x34a   : > { %3489 = vpow2.f32 %v2199_v22  ;;  %v1817_v0 = vsel %vm1811_vm0, %v1804_v35, %v1805_v57  ;;  %v1937_v38 = vrot.slane %v1769_v42, 1  ;;  %v1291_v41 = vmul.f32 %v4474_v59, %v4890_v30 }
 0x34b   : > { %v1816_v19 = vsel %vm1811_vm0, %v1805_v57, %v1806_v31  ;;  %v1870_v18 = vsel %vm1777_vm3, %v1817_v0, 0.0  ;;  %v1938_v39 = vrot.slane %v5789_v32, 1  ;;  %v1326_v48 = vmul.f32 %v4494_v11, %v4840_v13 }
 0x34c   : > { %v1902_v53 = vadd.f32 %v1870_v18, %v1424_v58  ;;  %v1903_v1 = vadd.f32 %v1816_v19, %v1425_v60  ;;  %v1947_v35 = vsel %vm1942_vm1, %v1936_v47, %v1937_v38  ;;  %v1327_v25 = vmul.f32 %v4494_v11, %v6232_v27  ;;  %v6234_v47 = vld [vmem:[#allocation30_spill] sm:$0xff] }
 0x34d   : > { %v1672_v51 = vmul.f32 %v4485_v2, %v6233_v14  ;;  %v1946_v44 = vsel %vm1942_vm1, %v1937_v38, %v1938_v39  ;;  %v1358_v17 = vadd.f32 %v1326_v48, %v1290_v50  ;;  %v1394_v58 = vmul.f32 %v4507_v28, %v6233_v14 }
 0x34e   : > { %v2002_v49 = vsel %vm1909_vm2, %v1946_v44, 0.0  ;;  %v2033_v60 = vadd.f32 %v1947_v35, %v1902_v53  ;;  %v1395_v24 = vmul.f32 %v4507_v28, %v6234_v47  ;;  %v1462_v5 = vmul.f32 %v6211_v21, %v4873_v37 }
 0x34f   : > { %v2034_v45 = vadd.f32 %v2002_v49, %v1903_v1  ;;  %v1426_v29 = vadd.f32 %v1394_v58, %v1358_v17  ;;  %v1463_v62 = vmul.f32 %v6211_v21, %v4890_v30  ;;  %v1498_v10 = vmul.f32 %v4467_v54, %v4840_v13 }
 0x350   : > { %v2072_v55 = vmul.f32 %v5461_v40, %v2033_v60  ;;  %v1359_v46 = vadd.f32 %v1327_v25, %v1291_v41  ;;  %v1499_v26 = vmul.f32 %v4467_v54, %v6232_v27  ;;  %v1566_v12 = vmul.f32 %v4536_v6, %v6233_v14 }
 0x351   : > { %v3484_v43 = vpop.eup %3483  ;;  %v2073_v37 = vmul.f32 %v5461_v40, %v2034_v45  ;;  %v1530_v63 = vadd.f32 %v1498_v10, %v1462_v5  ;;  %v1567_v52 = vmul.f32 %v4536_v6, %v6234_v47  ;;  %v1635_v4 = vmul.f32 %v4514_v36, %v4890_v30 }
 0x352   : > { %v3486_v61 = vpop.eup %3485  ;;  %v2299_v8 = vmul.f32 %v3484_v43, %v5693_v3  ;;  %v5845_v9 = vadd.f32 %v5468_v16, %v2072_v55  ;;  %v1531_v22 = vadd.f32 %v1499_v26, %v1463_v62  ;;  %v1636_v42 = vmul.f32 %v4514_v36, %v4840_v13 }
 0x353   : > { %v3488_v57 = vpop.eup %3487  ;;  %v2300_v50 = vmul.f32 %v3486_v61, %v5701_v56  ;;  %v5851_v0 = vadd.f32 %v5468_v16, %v2073_v37  ;;  %v1598_v6 = vadd.f32 %v1566_v12, %v1530_v63  ;;  %v1671_v30 = vmul.f32 %v4485_v2, %v6232_v27 }
 0x354   : > { %v3490_v38 = vpop.eup %3489  ;;  %v2237_v41 = vadd.f32 1.0, %v3488_v57  ;;  %v2143_v3 = vsub.f32 0.0, %v5845_v9  ;;  %v5856_v19 = vadd.f32 %v1567_v52, %v1531_v22  ;;  %v1704_v18 = vadd.f32 %v1672_v51, %v1636_v42  ;;  %v6235_v42 = vld [vmem:[#allocation31_spill] sm:$0xff] }
 0x355   : > { %v2320_v48 = vpack.c.bf16 %v2300_v50, %v2299_v8  ;;  %v2238_v53 = vadd.f32 1.0, %v3490_v38  ;;  %v2144_v1 = vsub.f32 0.0, %v5851_v0  ;;  %v1703_v35 = vadd.f32 %v1671_v30, %v1635_v4 }
 0x356   : > { %3491 = vrcp.f32 %v2237_v41  ;;  %v2201_v56 = vmul.f32 1.442695, %v2143_v3  ;;  %v1739_v25 = vmul.f32 %v5337_v34, %v6234_v47  ;;  %v1740_v44 = vmul.f32 0.0, %v5337_v34 }
 0x357   : > { %3074 = vmatmul.mubr.bf16.gmra.mrb[20].mxu1 %v2320_v48  ;;  %3493 = vrcp.f32 %v2238_v53  ;;  %v2203_v17 = vmul.f32 1.442695, %v2144_v1  ;;  %v1807_v58 = vrot.slane %v1598_v6, 7  ;;  %v1808_v49 = vrot.slane %v5856_v19, 7 }
 0x358   : > { %3495 = vpow2.f32 %v2201_v56  ;;  %v1427_v51 = vadd.f32 %v1395_v24, %v1359_v46  ;;  %v1771_v60 = vadd.f32 %v1739_v25, %v1703_v35  ;;  %v1772_v5 = vadd.f32 %v1740_v44, %v1704_v18  ;;  %v6236_v35 = vld [vmem:[#allocation44_spill] sm:$0xff] }
 0x359   : > { %v1500_v45 = vmul.f32 %v4467_v54, %v6233_v14  ;;  %3497 = vpow2.f32 %v2203_v17  ;;  %v1814_v62 = vsel %vm1811_vm0, %v1807_v58, %v1808_v49  ;;  %v1815_v34 = vsel %vm1811_vm0, %v1806_v31, %v1807_v58 }
 0x35a   : > { %v1872_v10 = vsel %vm1777_vm3, %v1815_v34, 0.0  ;;  %v1905_v55 = vadd.f32 %v1814_v62, %v1427_v51  ;;  %v1939_v26 = vrot.slane %v1771_v60, 1  ;;  %v1940_v24 = vrot.slane %v1772_v5, 1 }
 0x35b   : > { %v1904_v46 = vadd.f32 %v1872_v10, %v1426_v29  ;;  %v1292_v12 = vmul.f32 %v4474_v59, %v4840_v13  ;;  %v1328_v54 = vmul.f32 %v4494_v11, %v6233_v14  ;;  %v1329_v43 = vmul.f32 %v4494_v11, %v6234_v47 }
 0x35c   : > { %v1944_v23 = vsel %vm1942_vm1, %v1939_v26, %v1940_v24  ;;  %v1945_v31 = vsel %vm1942_vm1, %v1938_v39, %v1939_v26  ;;  %v1464_v29 = vmul.f32 %v6211_v21, %v4840_v13  ;;  %v1293_v14 = vmul.f32 %v4474_v59, %v6232_v27 }
 0x35d   : > { %v2004_v37 = vsel %vm1909_vm2, %v1944_v23, 0.0  ;;  %v2035_v63 = vadd.f32 %v1945_v31, %v1904_v46  ;;  %v1360_v52 = vadd.f32 %v1328_v54, %v1292_v12  ;;  %v1637_v61 = vmul.f32 %v4514_v36, %v6232_v27 }
 0x35e   : > { %v2036_v11 = vadd.f32 %v2004_v37, %v1905_v55  ;;  %v1532_v4 = vadd.f32 %v1500_v45, %v1464_v29  ;;  %v1673_v32 = vmul.f32 %v4485_v2, %v6234_v47  ;;  %v1361_v8 = vadd.f32 %v1329_v43, %v1293_v14  ;;  %v6238_v45 = vld [vmem:[#allocation38_spill] sm:$0xff] }
 0x35f   : > { %v2074_v39 = vmul.f32 %v5461_v40, %v2035_v63  ;;  %v1396_v13 = vmul.f32 0.0, %v4507_v28  ;;  %v6237_v56 = vrot.slane %v6236_v35, 7  ;;  %v6239_v62 = vrot.slane %v6238_v45, 1 }
 0x360   : > { %v3492_v21 = vpop.eup %3491  ;;  %v2075_v22 = vmul.f32 %v5461_v40, %v2036_v11  ;;  %v1600_v57 = vadd.f32 %v6235_v42, %v1532_v4  ;;  %v1705_v59 = vadd.f32 %v1673_v32, %v1637_v61 }
 0x361   : > { %v3494_v50 = vpop.eup %3493  ;;  %v2301_v6 = vmul.f32 %v3492_v21, %v5767_v7  ;;  %v2113_v30 = vadd.f32 %v5468_v16, %v2074_v39  ;;  %v1428_v19 = vadd.f32 %v1396_v13, %v1360_v52  ;;  %v1429_v18 = vadd.f32 %v1396_v13, %v1361_v8 }
 0x362   : > { %v3496_v36 = vpop.eup %3495  ;;  %v2302_v27 = vmul.f32 %v3494_v50, %v5777_v33  ;;  %v2114_v2 = vadd.f32 %v5468_v16, %v2075_v22  ;;  %v1773_v47 = vadd.f32 %v1740_v44, %v1705_v59  ;;  %v1809_v38 = vrot.slane %v1600_v57, 7  ;;  %v5925_v50 = vld [vmem:[#allocation17] ss:$0 sm:$0xff] }
 0x363   : > { %v3498_v41 = vpop.eup %3497  ;;  %v2239_v28 = vadd.f32 1.0, %v3496_v36  ;;  %v2145_v3 = vsub.f32 0.0, %v2113_v30 }
 0x364   : > { %v2321_v48 = vpack.c.bf16 %v2302_v27, %v2301_v6  ;;  %v2240_v53 = vadd.f32 1.0, %v3498_v41  ;;  %v2146_v1 = vsub.f32 0.0, %v2114_v2  ;;  %v1812_v7 = vsel %vm1811_vm0, %v1809_v38, %v6237_v56 }
 0x365   : > { %3499 = vrcp.f32 %v2239_v28  ;;  %v2205_v25 = vmul.f32 1.442695, %v2145_v3  ;;  %v1813_v33 = vsel %vm1811_vm0, %v1808_v49, %v1809_v38  ;;  %v1907_v44 = vadd.f32 %v1812_v7, %v1429_v18  ;;  %v3522_v18 = vld [vmem:[%s4356_s27 + $0x20] sm:$0xff]  ;;  %v3524_v7 = vld [vmem:[%s4356_s27 + $0x28] sm:$0xff] }
 0x366   : > { %3077 = vmatprep.mubr.bf16.mxu1 %v2321_v48  ;;  %3501 = vrcp.f32 %v2240_v53  ;;  %v2207_v17 = vmul.f32 1.442695, %v2146_v1  ;;  %v1874_v58 = vsel %vm1777_vm3, %v1813_v33, 0.0  ;;  %v1941_v51 = vrot.slane %v1773_v47, 1  ;;  %v3523_v1 = vld [vmem:[%s4356_s27 + $0x10] sm:$0xff]  ;;  %v3525_v33 = vld [vmem:[%s4356_s27 + $0x18] sm:$0xff] }
 0x367   : > { %3503 = vpow2.f32 %v2205_v25  ;;  %v1906_v60 = vadd.f32 %v1874_v58, %v1428_v19 }
 0x368   : > { %3505 = vpow2.f32 %v2207_v17  ;;  %v1943_v5 = vsel %vm1942_vm1, %v1940_v24, %v1941_v51  ;;  %v1974_v34 = vsel %vm1942_vm1, %v1941_v51, %v6239_v62 }
 0x369   : > { %v2006_v49 = vsel %vm1909_vm2, %v1974_v34, 0.0  ;;  %v2037_v10 = vadd.f32 %v1943_v5, %v1906_v60 }
 0x36a   : > { %v2038_v55 = vadd.f32 %v2006_v49, %v1907_v44 }
 0x36b   : > { %v2076_v26 = vmul.f32 %v5461_v40, %v2037_v10 }
 0x36c   : > { %v2077_v46 = vmul.f32 %v5461_v40, %v2038_v55  ;;  %v3526_v55 = vld [vmem:[%s4356_s27 + $0x40] sm:$0xff] }
 0x36d   : > { %v2115_v12 = vadd.f32 %v5468_v16, %v2076_v26 }
 0x36e   : > { %v2116_v54 = vadd.f32 %v5468_v16, %v2077_v46 }
 0x36f   : > { %v3500_v43 = vpop.eup %3499  ;;  %v2147_v24 = vsub.f32 0.0, %v2115_v12 }
 0x370   : > { %v3502_v23 = vpop.eup %3501  ;;  %v2148_v31 = vsub.f32 0.0, %v2116_v54  ;;  %v2303_v20 = vmul.f32 %v3500_v43, %v5845_v9 }
 0x371   : > { %v3504_v29 = vpop.eup %3503  ;;  %v2304_v15 = vmul.f32 %v3502_v23, %v5851_v0  ;;  %v2209_v37 = vmul.f32 1.442695, %v2147_v24  ;;  %v3528_v24 = vld [vmem:[%s4356_s27 + $0x48] sm:$0xff] }
 0x372   : > { %v3506_v63 = vpop.eup %3505  ;;  %v2241_v14 = vadd.f32 1.0, %v3504_v29  ;;  %v2211_v52 = vmul.f32 1.442695, %v2148_v31  ;;  %v3529_v31 = vld [vmem:[%s4356_s27 + $0x38] sm:$0xff] }
 0x373   : > { %v2322_v11 = vpack.c.bf16 %v2304_v15, %v2303_v20  ;;  %v2242_v4 = vadd.f32 1.0, %v3506_v63  ;;  %3507 = vpow2.f32 %v2209_v37 }
 0x374   : > { %3509 = vrcp.f32 %v2241_v14 }
 0x375   : > { %3078 = vmatmul.mubr.bf16.gmra.mrb[24].mxu1 %v2322_v11  ;;  %3511 = vrcp.f32 %v2242_v4 }
 0x376   : > { %3513 = vpow2.f32 %v2211_v52 }
 0x37d   : > { %v3508_v40 = vpop.eup %3507 }
 0x37e   : > { %v3510_v16 = vpop.eup %3509  ;;  %v2243_v61 = vadd.f32 1.0, %v3508_v40 }
 0x37f   : > { %v3512_v32 = vpop.eup %3511  ;;  %v2305_v39 = vmul.f32 %v3510_v16, %v2113_v30  ;;  %v5927_v30 = vld [vmem:[#allocation18] ss:$0 sm:$0xff] }
 0x380   : > { %v3514_v8 = vpop.eup %3513  ;;  %v2306_v9 = vmul.f32 %v3512_v32, %v2114_v2  ;;  %3515 = vrcp.f32 %v2243_v61  ;;  %v3530_v61 = vld [vmem:[%s4356_s27 + $0x60] sm:$0xff] }
 0x381   : > { %v2244_v0 = vadd.f32 1.0, %v3514_v8  ;;  %v3531_v8 = vld [vmem:[%s4356_s27 + $0x50] sm:$0xff] }
 0x382   : > { %v2323_v13 = vpack.c.bf16 %v2306_v9, %v2305_v39 }
 0x383   : > { %3517 = vrcp.f32 %v2244_v0 }
 0x384   : > { %3081 = vmatprep.mubr.bf16.mxu1 %v2323_v13  ;;  %v3532_v13 = vld [vmem:[%s4356_s27 + $0x68] sm:$0xff] }
 0x38a   : > { %v3516_v21 = vpop.eup %3515 }
 0x38b   : > { %v2307_v22 = vmul.f32 %v3516_v21, %v2115_v12  ;;  %v3527_v12 = vld [vmem:[%s4356_s27 + $0x30] sm:$0xff] }
 0x38d   : > { %v3518_v42 = vpop.eup %3517 }
 0x38e   : > { %v2308_v57 = vmul.f32 %v3518_v42, %v2116_v54 }
 0x390   : > { %v2324_v59 = vpack.c.bf16 %v2308_v57, %v2307_v22  ;;  %v3533_v22 = vld [vmem:[%s4356_s27 + $0x58] sm:$0xff] }
 0x392   : > { %3082 = vmatmul.mubr.bf16.gmra.mrb[28].mxu1 %v2324_v59 }
 0x39c   : > { %v3055_v6 = vpop.f32.mrb[0].mxu1 }
 0x39d   : > { %v2559_v36 = vmul.f32 %v3055_v6, %v5925_v50  ;;  %v2423_v27 = vpop.f32.mrb[1].mxu1 }
 0x39e   : > { %v2557_v2 = vmul.f32 %v5925_v50, %v2423_v27  ;;  %v3056_v47 = vpop.f32.mrb[2].mxu1 }
 0x39f   : > { %v2598_v38 = vadd.f32 %v5927_v30, %v2559_v36  ;;  %v2560_v41 = vmul.f32 %v3056_v47, %v5925_v50  ;;  %v2426_v28 = vpop.f32.mrb[3].mxu1 }
 0x3a0   : > { %v2596_v3 = vadd.f32 %v5927_v30, %v2557_v2  ;;  %v2558_v19 = vmul.f32 %v5925_v50, %v2426_v28 }
 0x3a1   : > { %v2630_v48 = vadd.f32 %v3522_v18, %v2598_v38  ;;  %v2599_v53 = vadd.f32 %v5927_v30, %v2560_v41 }
 0x3a2   : > { %v2628_v35 = vadd.f32 %v3523_v1, %v2596_v3  ;;  %v2597_v56 = vadd.f32 %v5927_v30, %v2558_v19  ;;  %v3534_v3 = vld [vmem:[%s4356_s27 + $0x80] sm:$0xff] }
 0x3a3   : > { %2662 = vst [vmem:[%s5940_s28 + $0x10] sm:$0xff] %v2630_v48  ;;  %v2631_v25 = vadd.f32 %v3524_v7, %v2599_v53  ;;  %v3535_v48 = vld [vmem:[%s4356_s27 + $0x70] sm:$0xff]  ;;  %v3537_v7 = vld [vmem:[%s4356_s27 + $0x78] sm:$0xff] }
 0x3a4   : > { %2660 = vst [vmem:[%s5940_s28] sm:$0xff] %v2628_v35  ;;  %v2629_v44 = vadd.f32 %v3525_v33, %v2597_v56  ;;  %v3536_v35 = vld [vmem:[%s4356_s27 + $0x88] sm:$0xff] }
 0x3a5   : > { %2663 = vst [vmem:[%s5940_s28 + $0x18] sm:$0xff] %v2631_v25 }
 0x3a6   : > { %2661 = vst [vmem:[%s5940_s28 + $0x8] sm:$0xff] %v2629_v44 }
 0x3af   : > { %v3059_v17 = vpop.f32.mrb[4].mxu1 }
 0x3b0   : > { %v2563_v58 = vmul.f32 %v3059_v17, %v5925_v50  ;;  %v2439_v51 = vpop.f32.mrb[5].mxu1 }
 0x3b1   : > { %v2561_v60 = vmul.f32 %v5925_v50, %v2439_v51  ;;  %v3060_v5 = vpop.f32.mrb[6].mxu1 }
 0x3b2   : > { %v2602_v45 = vadd.f32 %v5927_v30, %v2563_v58  ;;  %v2564_v62 = vmul.f32 %v3060_v5, %v5925_v50  ;;  %v2442_v34 = vpop.f32.mrb[7].mxu1 }
 0x3b3   : > { %v2600_v49 = vadd.f32 %v5927_v30, %v2561_v60  ;;  %v2562_v10 = vmul.f32 %v5925_v50, %v2442_v34 }
 0x3b4   : > { %v2634_v26 = vadd.f32 %v3526_v55, %v2602_v45  ;;  %v2603_v46 = vadd.f32 %v5927_v30, %v2564_v62 }
 0x3b5   : > { %v2632_v54 = vadd.f32 %v3527_v12, %v2600_v49  ;;  %v2601_v43 = vadd.f32 %v5927_v30, %v2562_v10  ;;  %v3538_v49 = vld [vmem:[%s4356_s27 + $0xa0] sm:$0xff] }
 0x3b6   : > { %2666 = vst [vmem:[%s5940_s28 + $0x30] sm:$0xff] %v2634_v26  ;;  %v2635_v23 = vadd.f32 %v3528_v24, %v2603_v46  ;;  %v3539_v26 = vld [vmem:[%s4356_s27 + $0x90] sm:$0xff]  ;;  %v3541_v24 = vld [vmem:[%s4356_s27 + $0x98] sm:$0xff] }
 0x3b7   : > { %2664 = vst [vmem:[%s5940_s28 + $0x20] sm:$0xff] %v2632_v54  ;;  %v2633_v29 = vadd.f32 %v3529_v31, %v2601_v43  ;;  %v3540_v54 = vld [vmem:[%s4356_s27 + $0xa8] sm:$0xff] }
 0x3b8   : > { %2667 = vst [vmem:[%s5940_s28 + $0x38] sm:$0xff] %v2635_v23 }
 0x3b9   : > { %2665 = vst [vmem:[%s5940_s28 + $0x28] sm:$0xff] %v2633_v29 }
 0x3cf   : > { %v3063_v20 = vpop.f32.mrb[8].mxu1 }
 0x3d0   : > { %v2567_v15 = vmul.f32 %v3063_v20, %v5925_v50  ;;  %v2455_v37 = vpop.f32.mrb[9].mxu1 }
 0x3d1   : > { %v2565_v63 = vmul.f32 %v5925_v50, %v2455_v37  ;;  %v3064_v14 = vpop.f32.mrb[10].mxu1 }
 0x3d2   : > { %v2606_v52 = vadd.f32 %v5927_v30, %v2567_v15  ;;  %v2568_v11 = vmul.f32 %v3064_v14, %v5925_v50  ;;  %v2458_v4 = vpop.f32.mrb[11].mxu1 }
 0x3d3   : > { %v2604_v40 = vadd.f32 %v5927_v30, %v2565_v63  ;;  %v2566_v16 = vmul.f32 %v5925_v50, %v2458_v4 }
 0x3d4   : > { %v2638_v32 = vadd.f32 %v3530_v61, %v2606_v52  ;;  %v2607_v39 = vadd.f32 %v5927_v30, %v2568_v11 }
 0x3d5   : > { %v2636_v9 = vadd.f32 %v3531_v8, %v2604_v40  ;;  %v2605_v0 = vadd.f32 %v5927_v30, %v2566_v16  ;;  %v3542_v40 = vld [vmem:[%s4356_s27 + $0xc0] sm:$0xff] }
 0x3d6   : > { %2670 = vst [vmem:[%s5940_s28 + $0x50] sm:$0xff] %v2638_v32  ;;  %v2639_v21 = vadd.f32 %v3532_v13, %v2607_v39  ;;  %v3543_v32 = vld [vmem:[%s4356_s27 + $0xb0] sm:$0xff]  ;;  %v3545_v13 = vld [vmem:[%s4356_s27 + $0xb8] sm:$0xff] }
 0x3d7   : > { %2668 = vst [vmem:[%s5940_s28 + $0x40] sm:$0xff] %v2636_v9  ;;  %v2637_v42 = vadd.f32 %v3533_v22, %v2605_v0  ;;  %v3544_v9 = vld [vmem:[%s4356_s27 + $0xc8] sm:$0xff] }
 0x3d8   : > { %2671 = vst [vmem:[%s5940_s28 + $0x58] sm:$0xff] %v2639_v21 }
 0x3d9   : > { %2669 = vst [vmem:[%s5940_s28 + $0x48] sm:$0xff] %v2637_v42 }
 0x3ed   : > { %v3067_v57 = vpop.f32.mrb[12].mxu1 }
 0x3ee   : > { %v2571_v59 = vmul.f32 %v3067_v57, %v5925_v50  ;;  %v2471_v6 = vpop.f32.mrb[13].mxu1 }
 0x3ef   : > { %v2569_v36 = vmul.f32 %v5925_v50, %v2471_v6  ;;  %v3068_v27 = vpop.f32.mrb[14].mxu1 }
 0x3f0   : > { %v2610_v2 = vadd.f32 %v5927_v30, %v2571_v59  ;;  %v2572_v47 = vmul.f32 %v3068_v27, %v5925_v50  ;;  %v2474_v38 = vpop.f32.mrb[15].mxu1 }
 0x3f1   : > { %v2608_v41 = vadd.f32 %v5927_v30, %v2569_v36  ;;  %v2570_v28 = vmul.f32 %v5925_v50, %v2474_v38 }
 0x3f2   : > { %v2642_v19 = vadd.f32 %v3534_v3, %v2610_v2  ;;  %v2611_v18 = vadd.f32 %v5927_v30, %v2572_v47 }
 0x3f3   : > { %v2640_v53 = vadd.f32 %v3535_v48, %v2608_v41  ;;  %v2609_v1 = vadd.f32 %v5927_v30, %v2570_v28  ;;  %v3546_v41 = vld [vmem:[%s4356_s27 + $0xe0] sm:$0xff] }
 0x3f4   : > { %2674 = vst [vmem:[%s5940_s28 + $0x70] sm:$0xff] %v2642_v19  ;;  %v2643_v56 = vadd.f32 %v3536_v35, %v2611_v18  ;;  %v3547_v19 = vld [vmem:[%s4356_s27 + $0xd0] sm:$0xff]  ;;  %v3549_v35 = vld [vmem:[%s4356_s27 + $0xd8] sm:$0xff] }
 0x3f5   : > { %2672 = vst [vmem:[%s5940_s28 + $0x60] sm:$0xff] %v2640_v53  ;;  %v2641_v25 = vadd.f32 %v3537_v7, %v2609_v1  ;;  %v3548_v53 = vld [vmem:[%s4356_s27 + $0xe8] sm:$0xff] }
 0x3f6   : > { %2675 = vst [vmem:[%s5940_s28 + $0x78] sm:$0xff] %v2643_v56 }
 0x3f7   : > { %2673 = vst [vmem:[%s5940_s28 + $0x68] sm:$0xff] %v2641_v25 }
 0x40b   : > { %v3071_v33 = vpop.f32.mrb[16].mxu1 }
 0x40c   : > { %v2575_v44 = vmul.f32 %v3071_v33, %v5925_v50  ;;  %v2487_v17 = vpop.f32.mrb[17].mxu1 }
 0x40d   : > { %v2573_v58 = vmul.f32 %v5925_v50, %v2487_v17  ;;  %v3072_v51 = vpop.f32.mrb[18].mxu1 }
 0x40e   : > { %v2614_v60 = vadd.f32 %v5927_v30, %v2575_v44  ;;  %v2576_v5 = vmul.f32 %v3072_v51, %v5925_v50  ;;  %v2490_v45 = vpop.f32.mrb[19].mxu1 }
 0x40f   : > { %v2612_v62 = vadd.f32 %v5927_v30, %v2573_v58  ;;  %v2574_v34 = vmul.f32 %v5925_v50, %v2490_v45 }
 0x410   : > { %v2646_v10 = vadd.f32 %v3538_v49, %v2614_v60  ;;  %v2615_v55 = vadd.f32 %v5927_v30, %v2576_v5 }
 0x411   : > { %v2644_v46 = vadd.f32 %v3539_v26, %v2612_v62  ;;  %v2613_v12 = vadd.f32 %v5927_v30, %v2574_v34  ;;  %v3550_v62 = vld [vmem:[%s4356_s27 + $0x100] sm:$0xff] }
 0x412   : > { %2678 = vst [vmem:[%s5940_s28 + $0x90] sm:$0xff] %v2646_v10  ;;  %v2647_v43 = vadd.f32 %v3540_v54, %v2615_v55  ;;  %v3551_v10 = vld [vmem:[%s4356_s27 + $0xf0] sm:$0xff] }
 0x413   : > { %2676 = vst [vmem:[%s5940_s28 + $0x80] sm:$0xff] %v2644_v46  ;;  %v2645_v23 = vadd.f32 %v3541_v24, %v2613_v12  ;;  %v3552_v46 = vld [vmem:[%s4356_s27 + $0x108] sm:$0xff] }
 0x414   : > { %2679 = vst [vmem:[%s5940_s28 + $0x98] sm:$0xff] %v2647_v43 }
 0x415   : > { %2677 = vst [vmem:[%s5940_s28 + $0x88] sm:$0xff] %v2645_v23 }
 0x42a   : > { %v3075_v31 = vpop.f32.mrb[20].mxu1 }
 0x42b   : > { %v2579_v29 = vmul.f32 %v3075_v31, %v5925_v50  ;;  %v2503_v20 = vpop.f32.mrb[21].mxu1 }
 0x42c   : > { %v2577_v15 = vmul.f32 %v5925_v50, %v2503_v20  ;;  %v3076_v37 = vpop.f32.mrb[22].mxu1 }
 0x42d   : > { %v2618_v63 = vadd.f32 %v5927_v30, %v2579_v29  ;;  %v2580_v14 = vmul.f32 %v3076_v37, %v5925_v50  ;;  %v2506_v52 = vpop.f32.mrb[23].mxu1 }
 0x42e   : > { %v2616_v11 = vadd.f32 %v5927_v30, %v2577_v15  ;;  %v2578_v4 = vmul.f32 %v5925_v50, %v2506_v52 }
 0x42f   : > { %v2650_v16 = vadd.f32 %v3542_v40, %v2618_v63  ;;  %v2619_v61 = vadd.f32 %v5927_v30, %v2580_v14 }
 0x430   : > { %v2648_v39 = vadd.f32 %v3543_v32, %v2616_v11  ;;  %v2617_v8 = vadd.f32 %v5927_v30, %v2578_v4 }
 0x431   : > { %2682 = vst [vmem:[%s5940_s28 + $0xb0] sm:$0xff] %v2650_v16  ;;  %v2651_v0 = vadd.f32 %v3544_v9, %v2619_v61 }
 0x432   : > { %2680 = vst [vmem:[%s5940_s28 + $0xa0] sm:$0xff] %v2648_v39  ;;  %v2649_v21 = vadd.f32 %v3545_v13, %v2617_v8 }
 0x433   : > { %2683 = vst [vmem:[%s5940_s28 + $0xb8] sm:$0xff] %v2651_v0 }
 0x434   : > { %2681 = vst [vmem:[%s5940_s28 + $0xa8] sm:$0xff] %v2649_v21 }
 0x448   : > { %v3079_v22 = vpop.f32.mrb[24].mxu1 }
 0x449   : > { %v2583_v42 = vmul.f32 %v3079_v22, %v5925_v50  ;;  %v2519_v57 = vpop.f32.mrb[25].mxu1 }
 0x44a   : > { %v2581_v59 = vmul.f32 %v5925_v50, %v2519_v57  ;;  %v3080_v6 = vpop.f32.mrb[26].mxu1 }
 0x44b   : > { %v2622_v36 = vadd.f32 %v5927_v30, %v2583_v42  ;;  %v2584_v27 = vmul.f32 %v3080_v6, %v5925_v50  ;;  %v2522_v2 = vpop.f32.mrb[27].mxu1 }
 0x44c   : > { %v2620_v47 = vadd.f32 %v5927_v30, %v2581_v59  ;;  %v2582_v38 = vmul.f32 %v5925_v50, %v2522_v2 }
 0x44d   : > { %v2654_v28 = vadd.f32 %v3546_v41, %v2622_v36  ;;  %v2623_v3 = vadd.f32 %v5927_v30, %v2584_v27 }
 0x44e   : > { %v2652_v18 = vadd.f32 %v3547_v19, %v2620_v47  ;;  %v2621_v48 = vadd.f32 %v5927_v30, %v2582_v38 }
 0x44f   : > { %2686 = vst [vmem:[%s5940_s28 + $0xd0] sm:$0xff] %v2654_v28  ;;  %v2655_v1 = vadd.f32 %v3548_v53, %v2623_v3 }
 0x450   : > { %2684 = vst [vmem:[%s5940_s28 + $0xc0] sm:$0xff] %v2652_v18  ;;  %v2653_v56 = vadd.f32 %v3549_v35, %v2621_v48 }
 0x451   : > { %2687 = vst [vmem:[%s5940_s28 + $0xd8] sm:$0xff] %v2655_v1 }
 0x452   : > { %2685 = vst [vmem:[%s5940_s28 + $0xc8] sm:$0xff] %v2653_v56 }
 0x465   : > { %v3083_v7 = vpop.f32.mrb[28].mxu1 }
 0x466   : > { %v2587_v25 = vmul.f32 %v3083_v7, %v5925_v50  ;;  %v2535_v33 = vpop.f32.mrb[29].mxu1 }
 0x467   : > { %v2585_v44 = vmul.f32 %v5925_v50, %v2535_v33  ;;  %v3084_v17 = vpop.f32.mrb[30].mxu1 }
 0x468   : > { %v2626_v58 = vadd.f32 %v5927_v30, %v2587_v25  ;;  %v2588_v51 = vmul.f32 %v3084_v17, %v5925_v50  ;;  %v2538_v60 = vpop.f32.mrb[31].mxu1 }
 0x469   : > { %v2624_v5 = vadd.f32 %v5927_v30, %v2585_v44  ;;  %v2586_v45 = vmul.f32 %v5925_v50, %v2538_v60  ;;  %v3553_v50 = vld [vmem:[%s4356_s27 + $0xf8] sm:$0xff] }
 0x46a   : > { %v2658_v34 = vadd.f32 %v3550_v62, %v2626_v58  ;;  %v2627_v49 = vadd.f32 %v5927_v30, %v2588_v51 }
 0x46b   : > { %v2656_v55 = vadd.f32 %v3551_v10, %v2624_v5  ;;  %v2625_v26 = vadd.f32 %v5927_v30, %v2586_v45 }
 0x46c   : > { %2690 = vst [vmem:[%s5940_s28 + $0xf0] sm:$0xff] %v2658_v34  ;;  %v2659_v12 = vadd.f32 %v3552_v46, %v2627_v49 }
 0x46d   : > { %2688 = vst [vmem:[%s5940_s28 + $0xe0] sm:$0xff] %v2656_v55  ;;  %v2657_v54 = vadd.f32 %v3553_v50, %v2625_v26 }
 0x46e   : > { %2691 = vst [vmem:[%s5940_s28 + $0xf8] sm:$0xff] %v2659_v12 }
 0x46f   : > { %2689 = vst [vmem:[%s5940_s28 + $0xe8] sm:$0xff] %v2657_v54 }
 0x470   : > { %3849 = shalt.err (!%p3846_p8)
}
 0x471   : > { %s3850_s27 = scalar_lea.hbm %s6061_s1, 4096  ;;  %s3854_s26 = scalar_lea.hbm %s6241_s2, 8192 }
 0x472   : > { %p3851_p3 = scmp.ne.s32.totalorder %s6061_s1, %s3850_s27  ;;  %p3855_p0 = scmp.lt.u32.totalorder %s6061_s1, %s6241_s2 }
 0x473   : > { %p3856_p1 = scmp.lt.u32.totalorder %s3854_s26, %s3850_s27  ;;  %p3858_p6 = scmp.lt.u32.totalorder %s3850_s27, %s6061_s1 }
 0x474   : > { %p3852_p12 = pnand %p3851_p3, %p6242_p5 }
 0x475   : > { %p3857_p7 = por %p3856_p1, %p3855_p0 }
 0x476   : > { %p3853_p13 = pneg %p3852_p12 }
 0x477   : > { %p3859_p10 = por %p3858_p6, %p3857_p7 }
 0x479   : > { %p3860_p11 = pnand %p3859_p10, %p3853_p13 }
 0x47b   : > { %3863 = shalt.err (!%p3860_p11)
}
 0x47c   : > { %s3955_s23 = smov 128   ;;  %s3956_s12 = smov 8  }
 0x47d   : > { %3126 = dma.vmem_to_hbm [thread:$0]  (%p6242_p5), %s6063_s10, 4096, %s6061_s1, %s2693_s3, %s3955_s23, %s3955_s23, %s3956_s12  }
 0x47e PF: > { %s2724_s29 = sand.u32 1, %s3918_s13   ;;  %p6243_p2 = scmp.ne.s32.totalorder %s6187_s30, 0 }
 0x47f   : > { %p6244_p4 = scmp.ge.s32.totalorder %s3938_s18, 2  ;;  %s2725_s20 = scalar_lea.sflag [#allocation5], %s2724_s29 }
 0x481   : > { %p3161_p9 = pnand %p6244_p4, %p6243_p2 }
 0x483   : > { %3913 = dma.done.wait (!%p3161_p9), %s2725_s20, 4096  }
 0x484   : > { %3915 = vsyncadd (!%p3161_p9), %s2725_s20, 4294963200  ;;  %s31_s18 = sadd.s32 1, %s3938_s18   ;;  %s6245_s13 = smov %s3922_s14 }
 0x485   : > { %p28_p8 = scmp.ge.s32.totalorder %s31_s18, 4   ;;  %s6246_s14 = smov %s3926_s15 }
 0x486   : > { %s6247_s15 = smov %s4297_s22  ;;  %s6248_s16 = smov %s3934_s17 }
 0x487   : > { %s6249_s17 = smov %s6251_s0  ;;  %30 = sbr.rel (!%p28_p8) target bundleno = 17 (0x11), region = 149 }
 0x48e   :  { %2730 = vsyncpa [#allocation4], 1 }
 0x48f   :  { %2732 = vsyncpa [#allocation4 + $0x1], 1 }
 0x490   :  { %2733 = vsyncpa [#allocation7], 1 }
 0x491   :  { %2734 = vsyncpa [#allocation10], 1 }
 0x492   :  { %2735 = vsyncpa [#allocation13], 1 }
 0x493   :  { %2736 = vsyncpa [#allocation16], 1 }
 0x494   :  { %2737 = vsyncpa [#allocation19], 1 }
 0x495   :  { %2738 = vsyncpa [#allocation5], 1 }
 0x496   :  { %2740 = vsyncpa [#allocation5 + $0x1], 1 }

</bundles_post_ra>
